<compile_context>
chip_gen: v5e
topology: v5e:2x2
jax: 0.10.0
libtpu: 0.0.40
codegen_flags: <defaults>
</compile_context>

<pallas_src>
import functools

import jax
import jax.numpy as jnp
from jax.experimental import pallas as pl
from jax.experimental.pallas import tpu as pltpu


def _round_up(x, m):
    return ((x + m - 1) // m) * m


def _vmem_capacity_bytes():
    try:
        return int(pltpu.get_tpu_info().vmem_capacity_bytes)
    except Exception:
        return 64 << 20   # conservative default (v7x per-core VMEM)


def _pick_time_chunk(T, Bblk, Hp, din_max, stream_bytes, budget_bytes):
    """Largest time chunk whose VMEM working set fits the budget."""
    G3 = 3 * Hp
    fixed = (2 * 2 * din_max * G3 * 4     # W_ih^T (double-buffered by the pipeline)
             + 2 * 2 * Hp * G3 * 4        # W_hh^T (double-buffered)
             + 2 * 2 * (G3 + Hp) * 4      # biases
             + 2 * Bblk * Hp * 4)         # h carry scratch
    for tc in (256, 128, 64, 32, 16, 8, 4, 2, 1):
        if tc > max(T, 1):
            continue
        streamed = (2 * 2 * tc * Bblk * din_max * stream_bytes   # x block (dbl-buf)
                    + 2 * 2 * tc * Bblk * Hp * stream_bytes      # out block (dbl-buf)
                    + 2 * 2 * tc * Bblk * G3 * 4)                # gi scratch (+headroom)
        if fixed + streamed <= budget_bytes:
            return tc
    return 1


def _pick_unroll(Tc, Bblk, Hp):
    """Keep live gate temps (~unroll * (Bblk*3Hp + 2*Bblk*Hp) words) under ~48 vregs."""
    if Tc <= 8:
        return True
    vregs_per_step = (Bblk * 3 * Hp + 2 * Bblk * Hp) / 1024.0
    u = int(48.0 / max(vregs_per_step, 1.0))
    return max(1, min(8, u))


# ---------------------------------------------------------------------------
# Pallas kernel: one time chunk of the bidirectional GRU for one batch block.
#   grid = (num_batch_blocks [parallel], num_time_chunks [arbitrary])
#   * input projection for the whole chunk (both directions) -> gi VMEM scratch
#   * serial recurrence over Tc steps, both directions fused per step
# ---------------------------------------------------------------------------
def _birnn_gru_kernel(x_ref, wihT_ref, whhT_ref, bias_ref, bhn_ref,
                      out_ref, gi_ref, h_ref, *, Tc, Hp, unroll):
    c = pl.program_id(1)

    # Reset the per-direction hidden-state carry at the first time chunk of a
    # batch block (batch axis is outer, so c==0 marks the start of every sweep).
    @pl.when(c == 0)
    def _():
        h_ref[...] = jnp.zeros_like(h_ref)

    Bblk = x_ref.shape[2]
    Din = x_ref.shape[3]

    # ---- input projection for the whole chunk (off the serial path) --------
    # gi = x @ W_ih^T + (b_ih + [b_hr, b_hz, 0]);  b_hn is handled inside step().
    for d in range(2):
        x2d = x_ref[d].astype(jnp.float32).reshape(Tc * Bblk, Din)
        gi = jnp.dot(x2d, wihT_ref[d], preferred_element_type=jnp.float32)
        gi_ref[d] = (gi + bias_ref[d]).reshape(Tc, Bblk, 3 * Hp)

    b_hn_f = bhn_ref[0]   # (1, Hp)
    b_hn_b = bhn_ref[1]

    def gate(gi_t, gh, b_hn, h_prev):
        # PyTorch GRU gate order r, z, n; splits land on 128-lane boundaries.
        r = jax.nn.sigmoid(gi_t[:, :Hp] + gh[:, :Hp])
        z = jax.nn.sigmoid(gi_t[:, Hp:2 * Hp] + gh[:, Hp:2 * Hp])
        n = jnp.tanh(gi_t[:, 2 * Hp:] + r * (gh[:, 2 * Hp:] + b_hn))
        return n + z * (h_prev - n)          # == (1-z)*n + z*h

    def step(t, carry):
        h_f, h_b = carry
        # Two independent MXU matmuls issued back-to-back: on single-TC chips the
        # second push overlaps the first result drain. W_hh^T is read through the
        # ref each step so no (Hp, 3Hp) value is held live in vregs across the loop.
        gh_f = jnp.dot(h_f, whhT_ref[0], preferred_element_type=jnp.float32)
        gh_b = jnp.dot(h_b, whhT_ref[1], preferred_element_type=jnp.float32)
        h_f = gate(gi_ref[0, t], gh_f, b_hn_f, h_f)
        h_b = gate(gi_ref[1, t], gh_b, b_hn_b, h_b)
        out_ref[0, t] = h_f.astype(out_ref.dtype)
        out_ref[1, t] = h_b.astype(out_ref.dtype)
        return (h_f, h_b)

    h_f, h_b = jax.lax.fori_loop(0, Tc, step, (h_ref[0], h_ref[1]), unroll=unroll)
    h_ref[0] = h_f
    h_ref[1] = h_b


def _gru_layer_pallas(inp, wihT, whhT, bias, bhn, *, Hp, Tc, Bblk,
                      stream_dtype, vmem_limit):
    """One bidirectional GRU layer. inp: (2, Tp, Bp, Din_p) -> (2, Tp, Bp, Hp)."""
    ndir, Tp, Bp, Din_p = inp.shape
    assert ndir == 2 and Tp % Tc == 0 and Bp % Bblk == 0
    NB = Bp // Bblk
    C = Tp // Tc
    G3 = 3 * Hp

    kernel = functools.partial(_birnn_gru_kernel, Tc=Tc, Hp=Hp,
                               unroll=_pick_unroll(Tc, Bblk, Hp))
    return pl.pallas_call(
        kernel,
        out_shape=jax.ShapeDtypeStruct((2, Tp, Bp, Hp), stream_dtype),
        grid=(NB, C),
        in_specs=[
            pl.BlockSpec((2, Tc, Bblk, Din_p), lambda b, c: (0, c, b, 0)),  # x chunk
            pl.BlockSpec((2, Din_p, G3), lambda b, c: (0, 0, 0)),           # W_ih^T (resident)
            pl.BlockSpec((2, Hp, G3), lambda b, c: (0, 0, 0)),              # W_hh^T (resident)
            pl.BlockSpec((2, 1, G3), lambda b, c: (0, 0, 0)),               # folded proj bias
            pl.BlockSpec((2, 1, Hp), lambda b, c: (0, 0, 0)),               # b_hn
        ],
        out_specs=pl.BlockSpec((2, Tc, Bblk, Hp), lambda b, c: (0, c, b, 0)),
        scratch_shapes=[
            pltpu.VMEM((2, Tc, Bblk, G3), jnp.float32),   # gi chunk
            pltpu.VMEM((2, Bblk, Hp), jnp.float32),       # per-direction h carry
        ],
        compiler_params=pltpu.CompilerParams(
            dimension_semantics=("parallel", "arbitrary"),
            vmem_limit_bytes=vmem_limit,
        ),
    )(inp, wihT, whhT, bias, bhn)


# ---------------------------------------------------------------------------
# reverse_padded_sequence: per-example time reversal of the first `length` steps,
# padding positions stay in place. x: (T, B, D), lengths: (B,) int32.
# ---------------------------------------------------------------------------
def reverse_padded_sequence(x, lengths):
    T = x.shape[0]
    t_idx = jnp.arange(T, dtype=jnp.int32)[:, None]              # (T, 1)
    lens = lengths[None, :].astype(jnp.int32)                    # (1, B)
    rev_idx = jnp.where(t_idx < lens, lens - 1 - t_idx, t_idx)   # (T, B)
    return jnp.take_along_axis(x, rev_idx[:, :, None], axis=0)


# ---------------------------------------------------------------------------
# Parameter init (matches reset_parameters: weights~N(0,0.01), bias=0) and prep
# (gate-wise padding to Hp=mult-of-128, pre-transpose, bias folding, dir-stacking).
# ---------------------------------------------------------------------------
def init_params(key, word_dim, hidden_dim, num_layers):
    def make_encoder(key):
        layers = []
        for layer in range(num_layers):
            din = word_dim if layer == 0 else hidden_dim
            key, k1, k2 = jax.random.split(key, 3)
            w_ih = 0.01 * jax.random.normal(k1, (3 * hidden_dim, din), jnp.float32)
            w_hh = 0.01 * jax.random.normal(k2, (3 * hidden_dim, hidden_dim), jnp.float32)
            b_ih = jnp.zeros((3 * hidden_dim,), jnp.float32)
            b_hh = jnp.zeros((3 * hidden_dim,), jnp.float32)
            layers.append((w_ih, w_hh, b_ih, b_hh))
        return layers, key

    fwd, key = make_encoder(key)
    bwd, key = make_encoder(key)
    return {"forward": fwd, "backward": bwd}


def _pad_gates_mat(w, H, Hp, din_p):
    din = w.shape[1]
    w = jnp.pad(w, ((0, 0), (0, din_p - din)))
    w3 = w.reshape(3, H, din_p)
    w3 = jnp.pad(w3, ((0, 0), (0, Hp - H), (0, 0)))
    return w3.reshape(3 * Hp, din_p)


def _pad_gates_vec(b, H, Hp):
    return jnp.pad(b.reshape(3, H), ((0, 0), (0, Hp - H))).reshape(3 * Hp)


def prepare_params(raw_params, word_dim, hidden_dim):
    H = hidden_dim
    Hp = _round_up(H, 128)
    num_layers = len(raw_params["forward"])
    layers = []
    for l in range(num_layers):
        din_p = _round_up(word_dim, 128) if l == 0 else Hp
        wihT_s, whhT_s, bias_s, bhn_s = [], [], [], []
        for direction in ("forward", "backward"):
            w_ih, w_hh, b_ih, b_hh = raw_params[direction][l]
            w_ih_p = _pad_gates_mat(w_ih, H, Hp, din_p)     # (3Hp, din_p)
            w_hh_p = _pad_gates_mat(w_hh, H, Hp, Hp)        # (3Hp, Hp)
            b_ih_p = _pad_gates_vec(b_ih, H, Hp)            # (3Hp,)
            b_hh_p = _pad_gates_vec(b_hh, H, Hp)            # (3Hp,)
            # Fold b_hr / b_hz into the projection bias; b_hn stays in r*(gh_n + b_hn).
            bias_comb = b_ih_p + jnp.concatenate(
                [b_hh_p[:Hp], b_hh_p[Hp:2 * Hp], jnp.zeros((Hp,), jnp.float32)])
            wihT_s.append(w_ih_p.T)                          # (din_p, 3Hp)
            whhT_s.append(w_hh_p.T)                          # (Hp, 3Hp)
            bias_s.append(bias_comb.reshape(1, 3 * Hp))
            bhn_s.append(b_hh_p[2 * Hp:].reshape(1, Hp))
        layers.append({
            "wihT": jnp.stack(wihT_s),   # (2, din_p, 3Hp)
            "whhT": jnp.stack(whhT_s),   # (2, Hp, 3Hp)
            "bias": jnp.stack(bias_s),   # (2, 1, 3Hp)
            "bhn": jnp.stack(bhn_s),     # (2, 1, Hp)
        })
    return {"layers": layers, "H": H, "Hp": Hp}


# ---------------------------------------------------------------------------
# BiRNN forward (GRU): matches BiRNN.forward(input, length)
# ---------------------------------------------------------------------------
def birnn_forward(prepared, x_btD, lengths, *, stream_dtype=jnp.float32):
    stream_dtype = jnp.dtype(stream_dtype)
    H, Hp = prepared["H"], prepared["Hp"]
    B, T, D = x_btD.shape

    xt = jnp.transpose(x_btD, (1, 0, 2)).astype(jnp.float32)   # (T, B, D) time-major
    rev_xt = reverse_padded_sequence(xt, lengths)

    # --- VMEM-budgeted tiling -------------------------------------------------
    b_mult = 16 if stream_dtype == jnp.dtype(jnp.bfloat16) else 8
    Bp = _round_up(B, b_mult)
    Bblk = min(Bp, 128)
    Bp = _round_up(Bp, Bblk)
    din0_p = _round_up(D, 128)
    din_max = max(din0_p, Hp)

    vmem_cap = _vmem_capacity_bytes()
    budget = int(0.6 * min(vmem_cap, 96 << 20))
    Tc = _pick_time_chunk(T, Bblk, Hp, din_max, stream_dtype.itemsize, budget)
    Tp = _round_up(T, Tc)
    vmem_limit = int(min(0.9 * vmem_cap, 100 << 20))

    def pad_tbd(a):
        return jnp.pad(a, ((0, Tp - T), (0, Bp - B), (0, din0_p - D)))

    # Stack both directions: (2, Tp, Bp, din0_p); streamed dtype (f32 or bf16).
    inp = jnp.stack([pad_tbd(xt), pad_tbd(rev_xt)], axis=0).astype(stream_dtype)

    for layer in prepared["layers"]:
        inp = _gru_layer_pallas(
            inp, layer["wihT"], layer["whhT"], layer["bias"], layer["bhn"],
            Hp=Hp, Tc=Tc, Bblk=Bblk, stream_dtype=stream_dtype,
            vmem_limit=vmem_limit)                     # (2, Tp, Bp, Hp)

    out = inp.astype(jnp.float32)
    fwd = out[0, :T, :B, :H]
    bwd = reverse_padded_sequence(out[1, :T, :B, :H], lengths)
    return jnp.concatenate([fwd, bwd], axis=2)         # (T, B, 2H)


# ---------------------------------------------------------------------------
# Pure-JAX reference GRU (lax.scan) for correctness (unpadded params).
# ---------------------------------------------------------------------------
def _gru_layer_ref(x, w_ih, w_hh, b_ih, b_hh):
    B = x.shape[1]
    H = w_hh.shape[1]

    def step(h, xt):
        gi = xt @ w_ih.T + b_ih
        gh = h @ w_hh.T + b_hh
        i_r, i_z, i_n = jnp.split(gi, 3, axis=-1)
        h_r, h_z, h_n = jnp.split(gh, 3, axis=-1)
        r = jax.nn.sigmoid(i_r + h_r)
        z = jax.nn.sigmoid(i_z + h_z)
        n = jnp.tanh(i_n + r * h_n)
        hn = (1.0 - z) * n + z * h
        return hn, hn

    _, ys = jax.lax.scan(step, jnp.zeros((B, H), jnp.float32), x)
    return ys


def birnn_forward_ref(raw_params, x_btD, lengths):
    xt = jnp.transpose(x_btD, (1, 0, 2))
    rev_in = reverse_padded_sequence(xt, lengths)

    def stack(x, layer_params):
        h = x
        for (w_ih, w_hh, b_ih, b_hh) in layer_params:
            h = _gru_layer_ref(h, w_ih, w_hh, b_ih, b_hh)
        return h

    fwd = stack(xt, raw_params["forward"])
    bwd = reverse_padded_sequence(stack(rev_in, raw_params["backward"]), lengths)
    return jnp.concatenate([fwd, bwd], axis=2)


if __name__ == "__main__":
    # Small shapes consistent with the module: batch=2, seq=8, word_dim=16,
    # hidden_dim=32, num_layers=2.
    B, T, WORD_DIM, HIDDEN_DIM, NUM_LAYERS = 2, 8, 16, 32, 2

    key = jax.random.PRNGKey(0)
    key, kx = jax.random.split(key)
    x = jax.random.normal(kx, (B, T, WORD_DIM), jnp.float32)
    lengths = jnp.array([T, 5], dtype=jnp.int32)   # padded sequence lengths

    raw_params = init_params(key, WORD_DIM, HIDDEN_DIM, NUM_LAYERS)
    prepared = prepare_params(raw_params, WORD_DIM, HIDDEN_DIM)

    ref = birnn_forward_ref(raw_params, x, lengths)

    # f32 streaming path (tight check).
    out_f32 = jax.jit(
        lambda xx, ll: birnn_forward(prepared, xx, ll, stream_dtype=jnp.float32)
    )(x, lengths)
    out_f32 = jax.block_until_ready(out_f32)
    assert out_f32.shape == (T, B, 2 * HIDDEN_DIM), out_f32.shape
    assert jnp.allclose(out_f32, ref, atol=1e-4, rtol=1e-2), \
        float(jnp.max(jnp.abs(out_f32 - ref)))

    # bf16 streaming of the layer input/output slabs (v6e/v7x HBM/VMEM saver);
    # h carry, matmul accumulation and gate math stay f32 -> loose tolerance only.
    out_bf16 = jax.jit(
        lambda xx, ll: birnn_forward(prepared, xx, ll, stream_dtype=jnp.bfloat16)
    )(x, lengths)
    out_bf16 = jax.block_until_ready(out_bf16)
    assert out_bf16.shape == (T, B, 2 * HIDDEN_DIM), out_bf16.shape
    assert jnp.allclose(out_bf16, ref, atol=3e-2, rtol=5e-2), \
        float(jnp.max(jnp.abs(out_bf16 - ref)))

    print("KERNEL_OK")
</pallas_src>

<mosaic_0001>
module attributes {stable_mosaic.version = 11 : i64} {
  func.func @_birnn_gru_kernel(%arg0: i32, %arg1: i32, %arg2: memref<2x8x8x128xf32, #tpu.memory_space<vmem>>, %arg3: memref<2x128x384xf32, #tpu.memory_space<vmem>>, %arg4: memref<2x128x384xf32, #tpu.memory_space<vmem>>, %arg5: memref<2x1x384xf32, #tpu.memory_space<vmem>>, %arg6: memref<2x1x128xf32, #tpu.memory_space<vmem>>, %arg7: memref<2x8x8x128xf32, #tpu.memory_space<vmem>>, %arg8: memref<2x8x8x384xf32, #tpu.memory_space<vmem>>, %arg9: memref<2x8x128xf32, #tpu.memory_space<vmem>>) attributes {dimension_semantics = [#tpu.dimension_semantics<parallel>, #tpu.dimension_semantics<arbitrary>], iteration_bounds = array<i64: 1, 1>, scalar_prefetch = 0 : i64, scratch_operands = 2 : i64, tpu.core_type = #tpu.core_type<tc>, window_params = [{transform_indices = @transform_0, window_bounds = array<i64: 2, 8, 8, 128>}, {pipeline_mode = #tpu.pipeline_mode<synchronous>, transform_indices = @transform_1, window_bounds = array<i64: 2, 128, 384>}, {pipeline_mode = #tpu.pipeline_mode<synchronous>, transform_indices = @transform_2, window_bounds = array<i64: 2, 128, 384>}, {pipeline_mode = #tpu.pipeline_mode<synchronous>, transform_indices = @transform_3, window_bounds = array<i64: 2, 1, 384>}, {pipeline_mode = #tpu.pipeline_mode<synchronous>, transform_indices = @transform_4, window_bounds = array<i64: 2, 1, 128>}, {transform_indices = @transform_5, window_bounds = array<i64: 2, 8, 8, 128>}]} {
    %c0_i32 = arith.constant 0 : i32
    %0 = arith.cmpi eq, %arg1, %c0_i32 : i32
    %1 = arith.extui %0 : i1 to i32
    %c0_i32_0 = arith.constant 0 : i32
    %2 = arith.cmpi ne, %1, %c0_i32_0 : i32
    scf.if %2 {
      %cst_239 = arith.constant 0.000000e+00 : f32
      %621 = vector.broadcast %cst_239 : f32 to vector<2x8x128xf32>
      %c0_240 = arith.constant 0 : index
      %c0_241 = arith.constant 0 : index
      %c0_242 = arith.constant 0 : index
      %622 = vector.load %arg9[%c0_240, %c0_241, %c0_242] : memref<2x8x128xf32, #tpu.memory_space<vmem>>, vector<2x8x128xf32>
      tpu.vector_store %arg9[%c0_240, %c0_241, %c0_242], %621 {strides = array<i32>} : memref<2x8x128xf32, #tpu.memory_space<vmem>>, vector<2x8x128xf32>,
    } else {
    }
    %c0 = arith.constant 0 : index
    %c0_1 = arith.constant 0 : index
    %c0_2 = arith.constant 0 : index
    %c0_3 = arith.constant 0 : index
    %3 = vector.load %arg2[%c0, %c0_1, %c0_2, %c0_3] : memref<2x8x8x128xf32, #tpu.memory_space<vmem>>, vector<1x8x8x128xf32>
    %4 = vector.shape_cast %3 : vector<1x8x8x128xf32> to vector<8x8x128xf32>
    %5 = vector.shape_cast %4 : vector<8x8x128xf32> to vector<64x128xf32>
    %c0_4 = arith.constant 0 : index
    %c0_5 = arith.constant 0 : index
    %c0_6 = arith.constant 0 : index
    %6 = vector.load %arg3[%c0_4, %c0_5, %c0_6] : memref<2x128x384xf32, #tpu.memory_space<vmem>>, vector<1x128x384xf32>
    %7 = vector.shape_cast %6 : vector<1x128x384xf32> to vector<128x384xf32>
    %cst = arith.constant dense<0.000000e+00> : vector<64x384xf32>
    %8 = tpu.matmul %5, %7, %cst {dimension_numbers = #tpu.dot_dimension_numbers<[1], [0], [0], [1], [0, 0, 1, 1], [], []>} : vector<64x128xf32>, vector<128x384xf32>, vector<64x384xf32> -> vector<64x384xf32>
    %c0_7 = arith.constant 0 : index
    %c0_8 = arith.constant 0 : index
    %c0_9 = arith.constant 0 : index
    %9 = vector.load %arg5[%c0_7, %c0_8, %c0_9] : memref<2x1x384xf32, #tpu.memory_space<vmem>>, vector<1x1x384xf32>
    %10 = vector.shape_cast %9 : vector<1x1x384xf32> to vector<1x384xf32>
    %11 = vector.broadcast %10 : vector<1x384xf32> to vector<64x384xf32>
    %12 = arith.addf %8, %11 : vector<64x384xf32>
    %13 = vector.shape_cast %12 : vector<64x384xf32> to vector<8x8x384xf32>
    %c0_10 = arith.constant 0 : index
    %c0_11 = arith.constant 0 : index
    %c0_12 = arith.constant 0 : index
    %c0_13 = arith.constant 0 : index
    %14 = vector.load %arg8[%c0_10, %c0_11, %c0_12, %c0_13] : memref<2x8x8x384xf32, #tpu.memory_space<vmem>>, vector<1x8x8x384xf32>
    %15 = vector.shape_cast %14 : vector<1x8x8x384xf32> to vector<8x8x384xf32>
    %16 = vector.shape_cast %13 : vector<8x8x384xf32> to vector<1x8x8x384xf32>
    tpu.vector_store %arg8[%c0_10, %c0_11, %c0_12, %c0_13], %16 {strides = array<i32>} : memref<2x8x8x384xf32, #tpu.memory_space<vmem>>, vector<1x8x8x384xf32>,
    %c1 = arith.constant 1 : index
    %c0_14 = arith.constant 0 : index
    %c0_15 = arith.constant 0 : index
    %c0_16 = arith.constant 0 : index
    %17 = vector.load %arg2[%c1, %c0_14, %c0_15, %c0_16] : memref<2x8x8x128xf32, #tpu.memory_space<vmem>>, vector<1x8x8x128xf32>
    %18 = vector.shape_cast %17 : vector<1x8x8x128xf32> to vector<8x8x128xf32>
    %19 = vector.shape_cast %18 : vector<8x8x128xf32> to vector<64x128xf32>
    %c1_17 = arith.constant 1 : index
    %c0_18 = arith.constant 0 : index
    %c0_19 = arith.constant 0 : index
    %20 = vector.load %arg3[%c1_17, %c0_18, %c0_19] : memref<2x128x384xf32, #tpu.memory_space<vmem>>, vector<1x128x384xf32>
    %21 = vector.shape_cast %20 : vector<1x128x384xf32> to vector<128x384xf32>
    %cst_20 = arith.constant dense<0.000000e+00> : vector<64x384xf32>
    %22 = tpu.matmul %19, %21, %cst_20 {dimension_numbers = #tpu.dot_dimension_numbers<[1], [0], [0], [1], [0, 0, 1, 1], [], []>} : vector<64x128xf32>, vector<128x384xf32>, vector<64x384xf32> -> vector<64x384xf32>
    %c1_21 = arith.constant 1 : index
    %c0_22 = arith.constant 0 : index
    %c0_23 = arith.constant 0 : index
    %23 = vector.load %arg5[%c1_21, %c0_22, %c0_23] : memref<2x1x384xf32, #tpu.memory_space<vmem>>, vector<1x1x384xf32>
    %24 = vector.shape_cast %23 : vector<1x1x384xf32> to vector<1x384xf32>
    %25 = vector.broadcast %24 : vector<1x384xf32> to vector<64x384xf32>
    %26 = arith.addf %22, %25 : vector<64x384xf32>
    %27 = vector.shape_cast %26 : vector<64x384xf32> to vector<8x8x384xf32>
    %c1_24 = arith.constant 1 : index
    %c0_25 = arith.constant 0 : index
    %c0_26 = arith.constant 0 : index
    %c0_27 = arith.constant 0 : index
    %28 = vector.load %arg8[%c1_24, %c0_25, %c0_26, %c0_27] : memref<2x8x8x384xf32, #tpu.memory_space<vmem>>, vector<1x8x8x384xf32>
    %29 = vector.shape_cast %28 : vector<1x8x8x384xf32> to vector<8x8x384xf32>
    %30 = vector.shape_cast %27 : vector<8x8x384xf32> to vector<1x8x8x384xf32>
    tpu.vector_store %arg8[%c1_24, %c0_25, %c0_26, %c0_27], %30 {strides = array<i32>} : memref<2x8x8x384xf32, #tpu.memory_space<vmem>>, vector<1x8x8x384xf32>,
    %c0_28 = arith.constant 0 : index
    %c0_29 = arith.constant 0 : index
    %c0_30 = arith.constant 0 : index
    %31 = vector.load %arg6[%c0_28, %c0_29, %c0_30] : memref<2x1x128xf32, #tpu.memory_space<vmem>>, vector<1x1x128xf32>
    %32 = vector.shape_cast %31 : vector<1x1x128xf32> to vector<1x128xf32>
    %c1_31 = arith.constant 1 : index
    %c0_32 = arith.constant 0 : index
    %c0_33 = arith.constant 0 : index
    %33 = vector.load %arg6[%c1_31, %c0_32, %c0_33] : memref<2x1x128xf32, #tpu.memory_space<vmem>>, vector<1x1x128xf32>
    %34 = vector.shape_cast %33 : vector<1x1x128xf32> to vector<1x128xf32>
    %c0_34 = arith.constant 0 : index
    %c0_35 = arith.constant 0 : index
    %c0_36 = arith.constant 0 : index
    %35 = vector.load %arg9[%c0_34, %c0_35, %c0_36] : memref<2x8x128xf32, #tpu.memory_space<vmem>>, vector<1x8x128xf32>
    %36 = vector.shape_cast %35 : vector<1x8x128xf32> to vector<8x128xf32>
    %c1_37 = arith.constant 1 : index
    %c0_38 = arith.constant 0 : index
    %c0_39 = arith.constant 0 : index
    %37 = vector.load %arg9[%c1_37, %c0_38, %c0_39] : memref<2x8x128xf32, #tpu.memory_space<vmem>>, vector<1x8x128xf32>
    %38 = vector.shape_cast %37 : vector<1x8x128xf32> to vector<8x128xf32>
    %c0_i32_40 = arith.constant 0 : i32
    %c0_41 = arith.constant 0 : index
    %c0_42 = arith.constant 0 : index
    %c0_43 = arith.constant 0 : index
    %39 = vector.load %arg4[%c0_41, %c0_42, %c0_43] : memref<2x128x384xf32, #tpu.memory_space<vmem>>, vector<1x128x384xf32>
    %40 = vector.shape_cast %39 : vector<1x128x384xf32> to vector<128x384xf32>
    %cst_44 = arith.constant dense<0.000000e+00> : vector<8x384xf32>
    %41 = tpu.matmul %36, %40, %cst_44 {dimension_numbers = #tpu.dot_dimension_numbers<[1], [0], [0], [1], [0, 0, 1, 1], [], []>} : vector<8x128xf32>, vector<128x384xf32>, vector<8x384xf32> -> vector<8x384xf32>
    %c1_45 = arith.constant 1 : index
    %c0_46 = arith.constant 0 : index
    %c0_47 = arith.constant 0 : index
    %42 = vector.load %arg4[%c1_45, %c0_46, %c0_47] : memref<2x128x384xf32, #tpu.memory_space<vmem>>, vector<1x128x384xf32>
    %43 = vector.shape_cast %42 : vector<1x128x384xf32> to vector<128x384xf32>
    %cst_48 = arith.constant dense<0.000000e+00> : vector<8x384xf32>
    %44 = tpu.matmul %38, %43, %cst_48 {dimension_numbers = #tpu.dot_dimension_numbers<[1], [0], [0], [1], [0, 0, 1, 1], [], []>} : vector<8x128xf32>, vector<128x384xf32>, vector<8x384xf32> -> vector<8x384xf32>
    %c0_49 = arith.constant 0 : index
    %45 = arith.index_cast %c0_i32_40 : i32 to index
    %c0_50 = arith.constant 0 : index
    %c0_51 = arith.constant 0 : index
    %46 = vector.load %arg8[%c0_49, %45, %c0_50, %c0_51] : memref<2x8x8x384xf32, #tpu.memory_space<vmem>>, vector<1x1x8x384xf32>
    %47 = vector.shape_cast %46 : vector<1x1x8x384xf32> to vector<8x384xf32>
    %48 = vector.extract_strided_slice %47 {offsets = [0, 0], sizes = [8, 128], strides = [1, 1]} : vector<8x384xf32> to vector<8x128xf32>
    %49 = vector.extract_strided_slice %41 {offsets = [0, 0], sizes = [8, 128], strides = [1, 1]} : vector<8x384xf32> to vector<8x128xf32>
    %50 = arith.addf %48, %49 : vector<8x128xf32>
    %51 = arith.negf %50 : vector<8x128xf32>
    %52 = math.exp %51 : vector<8x128xf32>
    %cst_52 = arith.constant 1.000000e+00 : f32
    %53 = vector.broadcast %cst_52 : f32 to vector<8x128xf32>
    %54 = arith.addf %53, %52 : vector<8x128xf32>
    %55 = arith.divf %53, %54 : vector<8x128xf32>
    %56 = vector.extract_strided_slice %47 {offsets = [0, 128], sizes = [8, 128], strides = [1, 1]} : vector<8x384xf32> to vector<8x128xf32>
    %57 = vector.extract_strided_slice %41 {offsets = [0, 128], sizes = [8, 128], strides = [1, 1]} : vector<8x384xf32> to vector<8x128xf32>
    %58 = arith.addf %56, %57 : vector<8x128xf32>
    %59 = arith.negf %58 : vector<8x128xf32>
    %60 = math.exp %59 : vector<8x128xf32>
    %cst_53 = arith.constant 1.000000e+00 : f32
    %61 = vector.broadcast %cst_53 : f32 to vector<8x128xf32>
    %62 = arith.addf %61, %60 : vector<8x128xf32>
    %63 = arith.divf %61, %62 : vector<8x128xf32>
    %64 = vector.extract_strided_slice %47 {offsets = [0, 256], sizes = [8, 128], strides = [1, 1]} : vector<8x384xf32> to vector<8x128xf32>
    %65 = vector.extract_strided_slice %41 {offsets = [0, 256], sizes = [8, 128], strides = [1, 1]} : vector<8x384xf32> to vector<8x128xf32>
    %66 = vector.broadcast %32 : vector<1x128xf32> to vector<8x128xf32>
    %67 = arith.addf %65, %66 : vector<8x128xf32>
    %68 = arith.mulf %55, %67 : vector<8x128xf32>
    %69 = arith.addf %64, %68 : vector<8x128xf32>
    %70 = math.tanh %69 : vector<8x128xf32>
    %71 = arith.subf %36, %70 : vector<8x128xf32>
    %72 = arith.mulf %63, %71 : vector<8x128xf32>
    %73 = arith.addf %70, %72 : vector<8x128xf32>
    %c1_54 = arith.constant 1 : index
    %74 = arith.index_cast %c0_i32_40 : i32 to index
    %c0_55 = arith.constant 0 : index
    %c0_56 = arith.constant 0 : index
    %75 = vector.load %arg8[%c1_54, %74, %c0_55, %c0_56] : memref<2x8x8x384xf32, #tpu.memory_space<vmem>>, vector<1x1x8x384xf32>
    %76 = vector.shape_cast %75 : vector<1x1x8x384xf32> to vector<8x384xf32>
    %77 = vector.extract_strided_slice %76 {offsets = [0, 0], sizes = [8, 128], strides = [1, 1]} : vector<8x384xf32> to vector<8x128xf32>
    %78 = vector.extract_strided_slice %44 {offsets = [0, 0], sizes = [8, 128], strides = [1, 1]} : vector<8x384xf32> to vector<8x128xf32>
    %79 = arith.addf %77, %78 : vector<8x128xf32>
    %80 = arith.negf %79 : vector<8x128xf32>
    %81 = math.exp %80 : vector<8x128xf32>
    %cst_57 = arith.constant 1.000000e+00 : f32
    %82 = vector.broadcast %cst_57 : f32 to vector<8x128xf32>
    %83 = arith.addf %82, %81 : vector<8x128xf32>
    %84 = arith.divf %82, %83 : vector<8x128xf32>
    %85 = vector.extract_strided_slice %76 {offsets = [0, 128], sizes = [8, 128], strides = [1, 1]} : vector<8x384xf32> to vector<8x128xf32>
    %86 = vector.extract_strided_slice %44 {offsets = [0, 128], sizes = [8, 128], strides = [1, 1]} : vector<8x384xf32> to vector<8x128xf32>
    %87 = arith.addf %85, %86 : vector<8x128xf32>
    %88 = arith.negf %87 : vector<8x128xf32>
    %89 = math.exp %88 : vector<8x128xf32>
    %cst_58 = arith.constant 1.000000e+00 : f32
    %90 = vector.broadcast %cst_58 : f32 to vector<8x128xf32>
    %91 = arith.addf %90, %89 : vector<8x128xf32>
    %92 = arith.divf %90, %91 : vector<8x128xf32>
    %93 = vector.extract_strided_slice %76 {offsets = [0, 256], sizes = [8, 128], strides = [1, 1]} : vector<8x384xf32> to vector<8x128xf32>
    %94 = vector.extract_strided_slice %44 {offsets = [0, 256], sizes = [8, 128], strides = [1, 1]} : vector<8x384xf32> to vector<8x128xf32>
    %95 = vector.broadcast %34 : vector<1x128xf32> to vector<8x128xf32>
    %96 = arith.addf %94, %95 : vector<8x128xf32>
    %97 = arith.mulf %84, %96 : vector<8x128xf32>
    %98 = arith.addf %93, %97 : vector<8x128xf32>
    %99 = math.tanh %98 : vector<8x128xf32>
    %100 = arith.subf %38, %99 : vector<8x128xf32>
    %101 = arith.mulf %92, %100 : vector<8x128xf32>
    %102 = arith.addf %99, %101 : vector<8x128xf32>
    %c0_59 = arith.constant 0 : index
    %103 = arith.index_cast %c0_i32_40 : i32 to index
    %c0_60 = arith.constant 0 : index
    %c0_61 = arith.constant 0 : index
    %104 = vector.load %arg7[%c0_59, %103, %c0_60, %c0_61] : memref<2x8x8x128xf32, #tpu.memory_space<vmem>>, vector<1x1x8x128xf32>
    %105 = vector.shape_cast %104 : vector<1x1x8x128xf32> to vector<8x128xf32>
    %106 = vector.shape_cast %73 : vector<8x128xf32> to vector<1x1x8x128xf32>
    tpu.vector_store %arg7[%c0_59, %103, %c0_60, %c0_61], %106 {strides = array<i32>} : memref<2x8x8x128xf32, #tpu.memory_space<vmem>>, vector<1x1x8x128xf32>,
    %c1_62 = arith.constant 1 : index
    %107 = arith.index_cast %c0_i32_40 : i32 to index
    %c0_63 = arith.constant 0 : index
    %c0_64 = arith.constant 0 : index
    %108 = vector.load %arg7[%c1_62, %107, %c0_63, %c0_64] : memref<2x8x8x128xf32, #tpu.memory_space<vmem>>, vector<1x1x8x128xf32>
    %109 = vector.shape_cast %108 : vector<1x1x8x128xf32> to vector<8x128xf32>
    %110 = vector.shape_cast %102 : vector<8x128xf32> to vector<1x1x8x128xf32>
    tpu.vector_store %arg7[%c1_62, %107, %c0_63, %c0_64], %110 {strides = array<i32>} : memref<2x8x8x128xf32, #tpu.memory_space<vmem>>, vector<1x1x8x128xf32>,
    %c1_i32 = arith.constant 1 : i32
    %c0_65 = arith.constant 0 : index
    %c0_66 = arith.constant 0 : index
    %c0_67 = arith.constant 0 : index
    %111 = vector.load %arg4[%c0_65, %c0_66, %c0_67] : memref<2x128x384xf32, #tpu.memory_space<vmem>>, vector<1x128x384xf32>
    %112 = vector.shape_cast %111 : vector<1x128x384xf32> to vector<128x384xf32>
    %cst_68 = arith.constant dense<0.000000e+00> : vector<8x384xf32>
    %113 = tpu.matmul %73, %112, %cst_68 {dimension_numbers = #tpu.dot_dimension_numbers<[1], [0], [0], [1], [0, 0, 1, 1], [], []>} : vector<8x128xf32>, vector<128x384xf32>, vector<8x384xf32> -> vector<8x384xf32>
    %c1_69 = arith.constant 1 : index
    %c0_70 = arith.constant 0 : index
    %c0_71 = arith.constant 0 : index
    %114 = vector.load %arg4[%c1_69, %c0_70, %c0_71] : memref<2x128x384xf32, #tpu.memory_space<vmem>>, vector<1x128x384xf32>
    %115 = vector.shape_cast %114 : vector<1x128x384xf32> to vector<128x384xf32>
    %cst_72 = arith.constant dense<0.000000e+00> : vector<8x384xf32>
    %116 = tpu.matmul %102, %115, %cst_72 {dimension_numbers = #tpu.dot_dimension_numbers<[1], [0], [0], [1], [0, 0, 1, 1], [], []>} : vector<8x128xf32>, vector<128x384xf32>, vector<8x384xf32> -> vector<8x384xf32>
    %c0_73 = arith.constant 0 : index
    %117 = arith.index_cast %c1_i32 : i32 to index
    %c0_74 = arith.constant 0 : index
    %c0_75 = arith.constant 0 : index
    %118 = vector.load %arg8[%c0_73, %117, %c0_74, %c0_75] : memref<2x8x8x384xf32, #tpu.memory_space<vmem>>, vector<1x1x8x384xf32>
    %119 = vector.shape_cast %118 : vector<1x1x8x384xf32> to vector<8x384xf32>
    %120 = vector.extract_strided_slice %119 {offsets = [0, 0], sizes = [8, 128], strides = [1, 1]} : vector<8x384xf32> to vector<8x128xf32>
    %121 = vector.extract_strided_slice %113 {offsets = [0, 0], sizes = [8, 128], strides = [1, 1]} : vector<8x384xf32> to vector<8x128xf32>
    %122 = arith.addf %120, %121 : vector<8x128xf32>
    %123 = arith.negf %122 : vector<8x128xf32>
    %124 = math.exp %123 : vector<8x128xf32>
    %cst_76 = arith.constant 1.000000e+00 : f32
    %125 = vector.broadcast %cst_76 : f32 to vector<8x128xf32>
    %126 = arith.addf %125, %124 : vector<8x128xf32>
    %127 = arith.divf %125, %126 : vector<8x128xf32>
    %128 = vector.extract_strided_slice %119 {offsets = [0, 128], sizes = [8, 128], strides = [1, 1]} : vector<8x384xf32> to vector<8x128xf32>
    %129 = vector.extract_strided_slice %113 {offsets = [0, 128], sizes = [8, 128], strides = [1, 1]} : vector<8x384xf32> to vector<8x128xf32>
    %130 = arith.addf %128, %129 : vector<8x128xf32>
    %131 = arith.negf %130 : vector<8x128xf32>
    %132 = math.exp %131 : vector<8x128xf32>
    %cst_77 = arith.constant 1.000000e+00 : f32
    %133 = vector.broadcast %cst_77 : f32 to vector<8x128xf32>
    %134 = arith.addf %133, %132 : vector<8x128xf32>
    %135 = arith.divf %133, %134 : vector<8x128xf32>
    %136 = vector.extract_strided_slice %119 {offsets = [0, 256], sizes = [8, 128], strides = [1, 1]} : vector<8x384xf32> to vector<8x128xf32>
    %137 = vector.extract_strided_slice %113 {offsets = [0, 256], sizes = [8, 128], strides = [1, 1]} : vector<8x384xf32> to vector<8x128xf32>
    %138 = vector.broadcast %32 : vector<1x128xf32> to vector<8x128xf32>
    %139 = arith.addf %137, %138 : vector<8x128xf32>
    %140 = arith.mulf %127, %139 : vector<8x128xf32>
    %141 = arith.addf %136, %140 : vector<8x128xf32>
    %142 = math.tanh %141 : vector<8x128xf32>
    %143 = arith.subf %73, %142 : vector<8x128xf32>
    %144 = arith.mulf %135, %143 : vector<8x128xf32>
    %145 = arith.addf %142, %144 : vector<8x128xf32>
    %c1_78 = arith.constant 1 : index
    %146 = arith.index_cast %c1_i32 : i32 to index
    %c0_79 = arith.constant 0 : index
    %c0_80 = arith.constant 0 : index
    %147 = vector.load %arg8[%c1_78, %146, %c0_79, %c0_80] : memref<2x8x8x384xf32, #tpu.memory_space<vmem>>, vector<1x1x8x384xf32>
    %148 = vector.shape_cast %147 : vector<1x1x8x384xf32> to vector<8x384xf32>
    %149 = vector.extract_strided_slice %148 {offsets = [0, 0], sizes = [8, 128], strides = [1, 1]} : vector<8x384xf32> to vector<8x128xf32>
    %150 = vector.extract_strided_slice %116 {offsets = [0, 0], sizes = [8, 128], strides = [1, 1]} : vector<8x384xf32> to vector<8x128xf32>
    %151 = arith.addf %149, %150 : vector<8x128xf32>
    %152 = arith.negf %151 : vector<8x128xf32>
    %153 = math.exp %152 : vector<8x128xf32>
    %cst_81 = arith.constant 1.000000e+00 : f32
    %154 = vector.broadcast %cst_81 : f32 to vector<8x128xf32>
    %155 = arith.addf %154, %153 : vector<8x128xf32>
    %156 = arith.divf %154, %155 : vector<8x128xf32>
    %157 = vector.extract_strided_slice %148 {offsets = [0, 128], sizes = [8, 128], strides = [1, 1]} : vector<8x384xf32> to vector<8x128xf32>
    %158 = vector.extract_strided_slice %116 {offsets = [0, 128], sizes = [8, 128], strides = [1, 1]} : vector<8x384xf32> to vector<8x128xf32>
    %159 = arith.addf %157, %158 : vector<8x128xf32>
    %160 = arith.negf %159 : vector<8x128xf32>
    %161 = math.exp %160 : vector<8x128xf32>
    %cst_82 = arith.constant 1.000000e+00 : f32
    %162 = vector.broadcast %cst_82 : f32 to vector<8x128xf32>
    %163 = arith.addf %162, %161 : vector<8x128xf32>
    %164 = arith.divf %162, %163 : vector<8x128xf32>
    %165 = vector.extract_strided_slice %148 {offsets = [0, 256], sizes = [8, 128], strides = [1, 1]} : vector<8x384xf32> to vector<8x128xf32>
    %166 = vector.extract_strided_slice %116 {offsets = [0, 256], sizes = [8, 128], strides = [1, 1]} : vector<8x384xf32> to vector<8x128xf32>
    %167 = vector.broadcast %34 : vector<1x128xf32> to vector<8x128xf32>
    %168 = arith.addf %166, %167 : vector<8x128xf32>
    %169 = arith.mulf %156, %168 : vector<8x128xf32>
    %170 = arith.addf %165, %169 : vector<8x128xf32>
    %171 = math.tanh %170 : vector<8x128xf32>
    %172 = arith.subf %102, %171 : vector<8x128xf32>
    %173 = arith.mulf %164, %172 : vector<8x128xf32>
    %174 = arith.addf %171, %173 : vector<8x128xf32>
    %c0_83 = arith.constant 0 : index
    %175 = arith.index_cast %c1_i32 : i32 to index
    %c0_84 = arith.constant 0 : index
    %c0_85 = arith.constant 0 : index
    %176 = vector.load %arg7[%c0_83, %175, %c0_84, %c0_85] : memref<2x8x8x128xf32, #tpu.memory_space<vmem>>, vector<1x1x8x128xf32>
    %177 = vector.shape_cast %176 : vector<1x1x8x128xf32> to vector<8x128xf32>
    %178 = vector.shape_cast %145 : vector<8x128xf32> to vector<1x1x8x128xf32>
    tpu.vector_store %arg7[%c0_83, %175, %c0_84, %c0_85], %178 {strides = array<i32>} : memref<2x8x8x128xf32, #tpu.memory_space<vmem>>, vector<1x1x8x128xf32>,
    %c1_86 = arith.constant 1 : index
    %179 = arith.index_cast %c1_i32 : i32 to index
    %c0_87 = arith.constant 0 : index
    %c0_88 = arith.constant 0 : index
    %180 = vector.load %arg7[%c1_86, %179, %c0_87, %c0_88] : memref<2x8x8x128xf32, #tpu.memory_space<vmem>>, vector<1x1x8x128xf32>
    %181 = vector.shape_cast %180 : vector<1x1x8x128xf32> to vector<8x128xf32>
    %182 = vector.shape_cast %174 : vector<8x128xf32> to vector<1x1x8x128xf32>
    tpu.vector_store %arg7[%c1_86, %179, %c0_87, %c0_88], %182 {strides = array<i32>} : memref<2x8x8x128xf32, #tpu.memory_space<vmem>>, vector<1x1x8x128xf32>,
    %c2_i32 = arith.constant 2 : i32
    %c0_89 = arith.constant 0 : index
    %c0_90 = arith.constant 0 : index
    %c0_91 = arith.constant 0 : index
    %183 = vector.load %arg4[%c0_89, %c0_90, %c0_91] : memref<2x128x384xf32, #tpu.memory_space<vmem>>, vector<1x128x384xf32>
    %184 = vector.shape_cast %183 : vector<1x128x384xf32> to vector<128x384xf32>
    %cst_92 = arith.constant dense<0.000000e+00> : vector<8x384xf32>
    %185 = tpu.matmul %145, %184, %cst_92 {dimension_numbers = #tpu.dot_dimension_numbers<[1], [0], [0], [1], [0, 0, 1, 1], [], []>} : vector<8x128xf32>, vector<128x384xf32>, vector<8x384xf32> -> vector<8x384xf32>
    %c1_93 = arith.constant 1 : index
    %c0_94 = arith.constant 0 : index
    %c0_95 = arith.constant 0 : index
    %186 = vector.load %arg4[%c1_93, %c0_94, %c0_95] : memref<2x128x384xf32, #tpu.memory_space<vmem>>, vector<1x128x384xf32>
    %187 = vector.shape_cast %186 : vector<1x128x384xf32> to vector<128x384xf32>
    %cst_96 = arith.constant dense<0.000000e+00> : vector<8x384xf32>
    %188 = tpu.matmul %174, %187, %cst_96 {dimension_numbers = #tpu.dot_dimension_numbers<[1], [0], [0], [1], [0, 0, 1, 1], [], []>} : vector<8x128xf32>, vector<128x384xf32>, vector<8x384xf32> -> vector<8x384xf32>
    %c0_97 = arith.constant 0 : index
    %189 = arith.index_cast %c2_i32 : i32 to index
    %c0_98 = arith.constant 0 : index
    %c0_99 = arith.constant 0 : index
    %190 = vector.load %arg8[%c0_97, %189, %c0_98, %c0_99] : memref<2x8x8x384xf32, #tpu.memory_space<vmem>>, vector<1x1x8x384xf32>
    %191 = vector.shape_cast %190 : vector<1x1x8x384xf32> to vector<8x384xf32>
    %192 = vector.extract_strided_slice %191 {offsets = [0, 0], sizes = [8, 128], strides = [1, 1]} : vector<8x384xf32> to vector<8x128xf32>
    %193 = vector.extract_strided_slice %185 {offsets = [0, 0], sizes = [8, 128], strides = [1, 1]} : vector<8x384xf32> to vector<8x128xf32>
    %194 = arith.addf %192, %193 : vector<8x128xf32>
    %195 = arith.negf %194 : vector<8x128xf32>
    %196 = math.exp %195 : vector<8x128xf32>
    %cst_100 = arith.constant 1.000000e+00 : f32
    %197 = vector.broadcast %cst_100 : f32 to vector<8x128xf32>
    %198 = arith.addf %197, %196 : vector<8x128xf32>
    %199 = arith.divf %197, %198 : vector<8x128xf32>
    %200 = vector.extract_strided_slice %191 {offsets = [0, 128], sizes = [8, 128], strides = [1, 1]} : vector<8x384xf32> to vector<8x128xf32>
    %201 = vector.extract_strided_slice %185 {offsets = [0, 128], sizes = [8, 128], strides = [1, 1]} : vector<8x384xf32> to vector<8x128xf32>
    %202 = arith.addf %200, %201 : vector<8x128xf32>
    %203 = arith.negf %202 : vector<8x128xf32>
    %204 = math.exp %203 : vector<8x128xf32>
    %cst_101 = arith.constant 1.000000e+00 : f32
    %205 = vector.broadcast %cst_101 : f32 to vector<8x128xf32>
    %206 = arith.addf %205, %204 : vector<8x128xf32>
    %207 = arith.divf %205, %206 : vector<8x128xf32>
    %208 = vector.extract_strided_slice %191 {offsets = [0, 256], sizes = [8, 128], strides = [1, 1]} : vector<8x384xf32> to vector<8x128xf32>
    %209 = vector.extract_strided_slice %185 {offsets = [0, 256], sizes = [8, 128], strides = [1, 1]} : vector<8x384xf32> to vector<8x128xf32>
    %210 = vector.broadcast %32 : vector<1x128xf32> to vector<8x128xf32>
    %211 = arith.addf %209, %210 : vector<8x128xf32>
    %212 = arith.mulf %199, %211 : vector<8x128xf32>
    %213 = arith.addf %208, %212 : vector<8x128xf32>
    %214 = math.tanh %213 : vector<8x128xf32>
    %215 = arith.subf %145, %214 : vector<8x128xf32>
    %216 = arith.mulf %207, %215 : vector<8x128xf32>
    %217 = arith.addf %214, %216 : vector<8x128xf32>
    %c1_102 = arith.constant 1 : index
    %218 = arith.index_cast %c2_i32 : i32 to index
    %c0_103 = arith.constant 0 : index
    %c0_104 = arith.constant 0 : index
    %219 = vector.load %arg8[%c1_102, %218, %c0_103, %c0_104] : memref<2x8x8x384xf32, #tpu.memory_space<vmem>>, vector<1x1x8x384xf32>
    %220 = vector.shape_cast %219 : vector<1x1x8x384xf32> to vector<8x384xf32>
    %221 = vector.extract_strided_slice %220 {offsets = [0, 0], sizes = [8, 128], strides = [1, 1]} : vector<8x384xf32> to vector<8x128xf32>
    %222 = vector.extract_strided_slice %188 {offsets = [0, 0], sizes = [8, 128], strides = [1, 1]} : vector<8x384xf32> to vector<8x128xf32>
    %223 = arith.addf %221, %222 : vector<8x128xf32>
    %224 = arith.negf %223 : vector<8x128xf32>
    %225 = math.exp %224 : vector<8x128xf32>
    %cst_105 = arith.constant 1.000000e+00 : f32
    %226 = vector.broadcast %cst_105 : f32 to vector<8x128xf32>
    %227 = arith.addf %226, %225 : vector<8x128xf32>
    %228 = arith.divf %226, %227 : vector<8x128xf32>
    %229 = vector.extract_strided_slice %220 {offsets = [0, 128], sizes = [8, 128], strides = [1, 1]} : vector<8x384xf32> to vector<8x128xf32>
    %230 = vector.extract_strided_slice %188 {offsets = [0, 128], sizes = [8, 128], strides = [1, 1]} : vector<8x384xf32> to vector<8x128xf32>
    %231 = arith.addf %229, %230 : vector<8x128xf32>
    %232 = arith.negf %231 : vector<8x128xf32>
    %233 = math.exp %232 : vector<8x128xf32>
    %cst_106 = arith.constant 1.000000e+00 : f32
    %234 = vector.broadcast %cst_106 : f32 to vector<8x128xf32>
    %235 = arith.addf %234, %233 : vector<8x128xf32>
    %236 = arith.divf %234, %235 : vector<8x128xf32>
    %237 = vector.extract_strided_slice %220 {offsets = [0, 256], sizes = [8, 128], strides = [1, 1]} : vector<8x384xf32> to vector<8x128xf32>
    %238 = vector.extract_strided_slice %188 {offsets = [0, 256], sizes = [8, 128], strides = [1, 1]} : vector<8x384xf32> to vector<8x128xf32>
    %239 = vector.broadcast %34 : vector<1x128xf32> to vector<8x128xf32>
    %240 = arith.addf %238, %239 : vector<8x128xf32>
    %241 = arith.mulf %228, %240 : vector<8x128xf32>
    %242 = arith.addf %237, %241 : vector<8x128xf32>
    %243 = math.tanh %242 : vector<8x128xf32>
    %244 = arith.subf %174, %243 : vector<8x128xf32>
    %245 = arith.mulf %236, %244 : vector<8x128xf32>
    %246 = arith.addf %243, %245 : vector<8x128xf32>
    %c0_107 = arith.constant 0 : index
    %247 = arith.index_cast %c2_i32 : i32 to index
    %c0_108 = arith.constant 0 : index
    %c0_109 = arith.constant 0 : index
    %248 = vector.load %arg7[%c0_107, %247, %c0_108, %c0_109] : memref<2x8x8x128xf32, #tpu.memory_space<vmem>>, vector<1x1x8x128xf32>
    %249 = vector.shape_cast %248 : vector<1x1x8x128xf32> to vector<8x128xf32>
    %250 = vector.shape_cast %217 : vector<8x128xf32> to vector<1x1x8x128xf32>
    tpu.vector_store %arg7[%c0_107, %247, %c0_108, %c0_109], %250 {strides = array<i32>} : memref<2x8x8x128xf32, #tpu.memory_space<vmem>>, vector<1x1x8x128xf32>,
    %c1_110 = arith.constant 1 : index
    %251 = arith.index_cast %c2_i32 : i32 to index
    %c0_111 = arith.constant 0 : index
    %c0_112 = arith.constant 0 : index
    %252 = vector.load %arg7[%c1_110, %251, %c0_111, %c0_112] : memref<2x8x8x128xf32, #tpu.memory_space<vmem>>, vector<1x1x8x128xf32>
    %253 = vector.shape_cast %252 : vector<1x1x8x128xf32> to vector<8x128xf32>
    %254 = vector.shape_cast %246 : vector<8x128xf32> to vector<1x1x8x128xf32>
    tpu.vector_store %arg7[%c1_110, %251, %c0_111, %c0_112], %254 {strides = array<i32>} : memref<2x8x8x128xf32, #tpu.memory_space<vmem>>, vector<1x1x8x128xf32>,
    %c3_i32 = arith.constant 3 : i32
    %c0_113 = arith.constant 0 : index
    %c0_114 = arith.constant 0 : index
    %c0_115 = arith.constant 0 : index
    %255 = vector.load %arg4[%c0_113, %c0_114, %c0_115] : memref<2x128x384xf32, #tpu.memory_space<vmem>>, vector<1x128x384xf32>
    %256 = vector.shape_cast %255 : vector<1x128x384xf32> to vector<128x384xf32>
    %cst_116 = arith.constant dense<0.000000e+00> : vector<8x384xf32>
    %257 = tpu.matmul %217, %256, %cst_116 {dimension_numbers = #tpu.dot_dimension_numbers<[1], [0], [0], [1], [0, 0, 1, 1], [], []>} : vector<8x128xf32>, vector<128x384xf32>, vector<8x384xf32> -> vector<8x384xf32>
    %c1_117 = arith.constant 1 : index
    %c0_118 = arith.constant 0 : index
    %c0_119 = arith.constant 0 : index
    %258 = vector.load %arg4[%c1_117, %c0_118, %c0_119] : memref<2x128x384xf32, #tpu.memory_space<vmem>>, vector<1x128x384xf32>
    %259 = vector.shape_cast %258 : vector<1x128x384xf32> to vector<128x384xf32>
    %cst_120 = arith.constant dense<0.000000e+00> : vector<8x384xf32>
    %260 = tpu.matmul %246, %259, %cst_120 {dimension_numbers = #tpu.dot_dimension_numbers<[1], [0], [0], [1], [0, 0, 1, 1], [], []>} : vector<8x128xf32>, vector<128x384xf32>, vector<8x384xf32> -> vector<8x384xf32>
    %c0_121 = arith.constant 0 : index
    %261 = arith.index_cast %c3_i32 : i32 to index
    %c0_122 = arith.constant 0 : index
    %c0_123 = arith.constant 0 : index
    %262 = vector.load %arg8[%c0_121, %261, %c0_122, %c0_123] : memref<2x8x8x384xf32, #tpu.memory_space<vmem>>, vector<1x1x8x384xf32>
    %263 = vector.shape_cast %262 : vector<1x1x8x384xf32> to vector<8x384xf32>
    %264 = vector.extract_strided_slice %263 {offsets = [0, 0], sizes = [8, 128], strides = [1, 1]} : vector<8x384xf32> to vector<8x128xf32>
    %265 = vector.extract_strided_slice %257 {offsets = [0, 0], sizes = [8, 128], strides = [1, 1]} : vector<8x384xf32> to vector<8x128xf32>
    %266 = arith.addf %264, %265 : vector<8x128xf32>
    %267 = arith.negf %266 : vector<8x128xf32>
    %268 = math.exp %267 : vector<8x128xf32>
    %cst_124 = arith.constant 1.000000e+00 : f32
    %269 = vector.broadcast %cst_124 : f32 to vector<8x128xf32>
    %270 = arith.addf %269, %268 : vector<8x128xf32>
    %271 = arith.divf %269, %270 : vector<8x128xf32>
    %272 = vector.extract_strided_slice %263 {offsets = [0, 128], sizes = [8, 128], strides = [1, 1]} : vector<8x384xf32> to vector<8x128xf32>
    %273 = vector.extract_strided_slice %257 {offsets = [0, 128], sizes = [8, 128], strides = [1, 1]} : vector<8x384xf32> to vector<8x128xf32>
    %274 = arith.addf %272, %273 : vector<8x128xf32>
    %275 = arith.negf %274 : vector<8x128xf32>
    %276 = math.exp %275 : vector<8x128xf32>
    %cst_125 = arith.constant 1.000000e+00 : f32
    %277 = vector.broadcast %cst_125 : f32 to vector<8x128xf32>
    %278 = arith.addf %277, %276 : vector<8x128xf32>
    %279 = arith.divf %277, %278 : vector<8x128xf32>
    %280 = vector.extract_strided_slice %263 {offsets = [0, 256], sizes = [8, 128], strides = [1, 1]} : vector<8x384xf32> to vector<8x128xf32>
    %281 = vector.extract_strided_slice %257 {offsets = [0, 256], sizes = [8, 128], strides = [1, 1]} : vector<8x384xf32> to vector<8x128xf32>
    %282 = vector.broadcast %32 : vector<1x128xf32> to vector<8x128xf32>
    %283 = arith.addf %281, %282 : vector<8x128xf32>
    %284 = arith.mulf %271, %283 : vector<8x128xf32>
    %285 = arith.addf %280, %284 : vector<8x128xf32>
    %286 = math.tanh %285 : vector<8x128xf32>
    %287 = arith.subf %217, %286 : vector<8x128xf32>
    %288 = arith.mulf %279, %287 : vector<8x128xf32>
    %289 = arith.addf %286, %288 : vector<8x128xf32>
    %c1_126 = arith.constant 1 : index
    %290 = arith.index_cast %c3_i32 : i32 to index
    %c0_127 = arith.constant 0 : index
    %c0_128 = arith.constant 0 : index
    %291 = vector.load %arg8[%c1_126, %290, %c0_127, %c0_128] : memref<2x8x8x384xf32, #tpu.memory_space<vmem>>, vector<1x1x8x384xf32>
    %292 = vector.shape_cast %291 : vector<1x1x8x384xf32> to vector<8x384xf32>
    %293 = vector.extract_strided_slice %292 {offsets = [0, 0], sizes = [8, 128], strides = [1, 1]} : vector<8x384xf32> to vector<8x128xf32>
    %294 = vector.extract_strided_slice %260 {offsets = [0, 0], sizes = [8, 128], strides = [1, 1]} : vector<8x384xf32> to vector<8x128xf32>
    %295 = arith.addf %293, %294 : vector<8x128xf32>
    %296 = arith.negf %295 : vector<8x128xf32>
    %297 = math.exp %296 : vector<8x128xf32>
    %cst_129 = arith.constant 1.000000e+00 : f32
    %298 = vector.broadcast %cst_129 : f32 to vector<8x128xf32>
    %299 = arith.addf %298, %297 : vector<8x128xf32>
    %300 = arith.divf %298, %299 : vector<8x128xf32>
    %301 = vector.extract_strided_slice %292 {offsets = [0, 128], sizes = [8, 128], strides = [1, 1]} : vector<8x384xf32> to vector<8x128xf32>
    %302 = vector.extract_strided_slice %260 {offsets = [0, 128], sizes = [8, 128], strides = [1, 1]} : vector<8x384xf32> to vector<8x128xf32>
    %303 = arith.addf %301, %302 : vector<8x128xf32>
    %304 = arith.negf %303 : vector<8x128xf32>
    %305 = math.exp %304 : vector<8x128xf32>
    %cst_130 = arith.constant 1.000000e+00 : f32
    %306 = vector.broadcast %cst_130 : f32 to vector<8x128xf32>
    %307 = arith.addf %306, %305 : vector<8x128xf32>
    %308 = arith.divf %306, %307 : vector<8x128xf32>
    %309 = vector.extract_strided_slice %292 {offsets = [0, 256], sizes = [8, 128], strides = [1, 1]} : vector<8x384xf32> to vector<8x128xf32>
    %310 = vector.extract_strided_slice %260 {offsets = [0, 256], sizes = [8, 128], strides = [1, 1]} : vector<8x384xf32> to vector<8x128xf32>
    %311 = vector.broadcast %34 : vector<1x128xf32> to vector<8x128xf32>
    %312 = arith.addf %310, %311 : vector<8x128xf32>
    %313 = arith.mulf %300, %312 : vector<8x128xf32>
    %314 = arith.addf %309, %313 : vector<8x128xf32>
    %315 = math.tanh %314 : vector<8x128xf32>
    %316 = arith.subf %246, %315 : vector<8x128xf32>
    %317 = arith.mulf %308, %316 : vector<8x128xf32>
    %318 = arith.addf %315, %317 : vector<8x128xf32>
    %c0_131 = arith.constant 0 : index
    %319 = arith.index_cast %c3_i32 : i32 to index
    %c0_132 = arith.constant 0 : index
    %c0_133 = arith.constant 0 : index
    %320 = vector.load %arg7[%c0_131, %319, %c0_132, %c0_133] : memref<2x8x8x128xf32, #tpu.memory_space<vmem>>, vector<1x1x8x128xf32>
    %321 = vector.shape_cast %320 : vector<1x1x8x128xf32> to vector<8x128xf32>
    %322 = vector.shape_cast %289 : vector<8x128xf32> to vector<1x1x8x128xf32>
    tpu.vector_store %arg7[%c0_131, %319, %c0_132, %c0_133], %322 {strides = array<i32>} : memref<2x8x8x128xf32, #tpu.memory_space<vmem>>, vector<1x1x8x128xf32>,
    %c1_134 = arith.constant 1 : index
    %323 = arith.index_cast %c3_i32 : i32 to index
    %c0_135 = arith.constant 0 : index
    %c0_136 = arith.constant 0 : index
    %324 = vector.load %arg7[%c1_134, %323, %c0_135, %c0_136] : memref<2x8x8x128xf32, #tpu.memory_space<vmem>>, vector<1x1x8x128xf32>
    %325 = vector.shape_cast %324 : vector<1x1x8x128xf32> to vector<8x128xf32>
    %326 = vector.shape_cast %318 : vector<8x128xf32> to vector<1x1x8x128xf32>
    tpu.vector_store %arg7[%c1_134, %323, %c0_135, %c0_136], %326 {strides = array<i32>} : memref<2x8x8x128xf32, #tpu.memory_space<vmem>>, vector<1x1x8x128xf32>,
    %c4_i32 = arith.constant 4 : i32
    %c0_137 = arith.constant 0 : index
    %c0_138 = arith.constant 0 : index
    %c0_139 = arith.constant 0 : index
    %327 = vector.load %arg4[%c0_137, %c0_138, %c0_139] : memref<2x128x384xf32, #tpu.memory_space<vmem>>, vector<1x128x384xf32>
    %328 = vector.shape_cast %327 : vector<1x128x384xf32> to vector<128x384xf32>
    %cst_140 = arith.constant dense<0.000000e+00> : vector<8x384xf32>
    %329 = tpu.matmul %289, %328, %cst_140 {dimension_numbers = #tpu.dot_dimension_numbers<[1], [0], [0], [1], [0, 0, 1, 1], [], []>} : vector<8x128xf32>, vector<128x384xf32>, vector<8x384xf32> -> vector<8x384xf32>
    %c1_141 = arith.constant 1 : index
    %c0_142 = arith.constant 0 : index
    %c0_143 = arith.constant 0 : index
    %330 = vector.load %arg4[%c1_141, %c0_142, %c0_143] : memref<2x128x384xf32, #tpu.memory_space<vmem>>, vector<1x128x384xf32>
    %331 = vector.shape_cast %330 : vector<1x128x384xf32> to vector<128x384xf32>
    %cst_144 = arith.constant dense<0.000000e+00> : vector<8x384xf32>
    %332 = tpu.matmul %318, %331, %cst_144 {dimension_numbers = #tpu.dot_dimension_numbers<[1], [0], [0], [1], [0, 0, 1, 1], [], []>} : vector<8x128xf32>, vector<128x384xf32>, vector<8x384xf32> -> vector<8x384xf32>
    %c0_145 = arith.constant 0 : index
    %333 = arith.index_cast %c4_i32 : i32 to index
    %c0_146 = arith.constant 0 : index
    %c0_147 = arith.constant 0 : index
    %334 = vector.load %arg8[%c0_145, %333, %c0_146, %c0_147] : memref<2x8x8x384xf32, #tpu.memory_space<vmem>>, vector<1x1x8x384xf32>
    %335 = vector.shape_cast %334 : vector<1x1x8x384xf32> to vector<8x384xf32>
    %336 = vector.extract_strided_slice %335 {offsets = [0, 0], sizes = [8, 128], strides = [1, 1]} : vector<8x384xf32> to vector<8x128xf32>
    %337 = vector.extract_strided_slice %329 {offsets = [0, 0], sizes = [8, 128], strides = [1, 1]} : vector<8x384xf32> to vector<8x128xf32>
    %338 = arith.addf %336, %337 : vector<8x128xf32>
    %339 = arith.negf %338 : vector<8x128xf32>
    %340 = math.exp %339 : vector<8x128xf32>
    %cst_148 = arith.constant 1.000000e+00 : f32
    %341 = vector.broadcast %cst_148 : f32 to vector<8x128xf32>
    %342 = arith.addf %341, %340 : vector<8x128xf32>
    %343 = arith.divf %341, %342 : vector<8x128xf32>
    %344 = vector.extract_strided_slice %335 {offsets = [0, 128], sizes = [8, 128], strides = [1, 1]} : vector<8x384xf32> to vector<8x128xf32>
    %345 = vector.extract_strided_slice %329 {offsets = [0, 128], sizes = [8, 128], strides = [1, 1]} : vector<8x384xf32> to vector<8x128xf32>
    %346 = arith.addf %344, %345 : vector<8x128xf32>
    %347 = arith.negf %346 : vector<8x128xf32>
    %348 = math.exp %347 : vector<8x128xf32>
    %cst_149 = arith.constant 1.000000e+00 : f32
    %349 = vector.broadcast %cst_149 : f32 to vector<8x128xf32>
    %350 = arith.addf %349, %348 : vector<8x128xf32>
    %351 = arith.divf %349, %350 : vector<8x128xf32>
    %352 = vector.extract_strided_slice %335 {offsets = [0, 256], sizes = [8, 128], strides = [1, 1]} : vector<8x384xf32> to vector<8x128xf32>
    %353 = vector.extract_strided_slice %329 {offsets = [0, 256], sizes = [8, 128], strides = [1, 1]} : vector<8x384xf32> to vector<8x128xf32>
    %354 = vector.broadcast %32 : vector<1x128xf32> to vector<8x128xf32>
    %355 = arith.addf %353, %354 : vector<8x128xf32>
    %356 = arith.mulf %343, %355 : vector<8x128xf32>
    %357 = arith.addf %352, %356 : vector<8x128xf32>
    %358 = math.tanh %357 : vector<8x128xf32>
    %359 = arith.subf %289, %358 : vector<8x128xf32>
    %360 = arith.mulf %351, %359 : vector<8x128xf32>
    %361 = arith.addf %358, %360 : vector<8x128xf32>
    %c1_150 = arith.constant 1 : index
    %362 = arith.index_cast %c4_i32 : i32 to index
    %c0_151 = arith.constant 0 : index
    %c0_152 = arith.constant 0 : index
    %363 = vector.load %arg8[%c1_150, %362, %c0_151, %c0_152] : memref<2x8x8x384xf32, #tpu.memory_space<vmem>>, vector<1x1x8x384xf32>
    %364 = vector.shape_cast %363 : vector<1x1x8x384xf32> to vector<8x384xf32>
    %365 = vector.extract_strided_slice %364 {offsets = [0, 0], sizes = [8, 128], strides = [1, 1]} : vector<8x384xf32> to vector<8x128xf32>
    %366 = vector.extract_strided_slice %332 {offsets = [0, 0], sizes = [8, 128], strides = [1, 1]} : vector<8x384xf32> to vector<8x128xf32>
    %367 = arith.addf %365, %366 : vector<8x128xf32>
    %368 = arith.negf %367 : vector<8x128xf32>
    %369 = math.exp %368 : vector<8x128xf32>
    %cst_153 = arith.constant 1.000000e+00 : f32
    %370 = vector.broadcast %cst_153 : f32 to vector<8x128xf32>
    %371 = arith.addf %370, %369 : vector<8x128xf32>
    %372 = arith.divf %370, %371 : vector<8x128xf32>
    %373 = vector.extract_strided_slice %364 {offsets = [0, 128], sizes = [8, 128], strides = [1, 1]} : vector<8x384xf32> to vector<8x128xf32>
    %374 = vector.extract_strided_slice %332 {offsets = [0, 128], sizes = [8, 128], strides = [1, 1]} : vector<8x384xf32> to vector<8x128xf32>
    %375 = arith.addf %373, %374 : vector<8x128xf32>
    %376 = arith.negf %375 : vector<8x128xf32>
    %377 = math.exp %376 : vector<8x128xf32>
    %cst_154 = arith.constant 1.000000e+00 : f32
    %378 = vector.broadcast %cst_154 : f32 to vector<8x128xf32>
    %379 = arith.addf %378, %377 : vector<8x128xf32>
    %380 = arith.divf %378, %379 : vector<8x128xf32>
    %381 = vector.extract_strided_slice %364 {offsets = [0, 256], sizes = [8, 128], strides = [1, 1]} : vector<8x384xf32> to vector<8x128xf32>
    %382 = vector.extract_strided_slice %332 {offsets = [0, 256], sizes = [8, 128], strides = [1, 1]} : vector<8x384xf32> to vector<8x128xf32>
    %383 = vector.broadcast %34 : vector<1x128xf32> to vector<8x128xf32>
    %384 = arith.addf %382, %383 : vector<8x128xf32>
    %385 = arith.mulf %372, %384 : vector<8x128xf32>
    %386 = arith.addf %381, %385 : vector<8x128xf32>
    %387 = math.tanh %386 : vector<8x128xf32>
    %388 = arith.subf %318, %387 : vector<8x128xf32>
    %389 = arith.mulf %380, %388 : vector<8x128xf32>
    %390 = arith.addf %387, %389 : vector<8x128xf32>
    %c0_155 = arith.constant 0 : index
    %391 = arith.index_cast %c4_i32 : i32 to index
    %c0_156 = arith.constant 0 : index
    %c0_157 = arith.constant 0 : index
    %392 = vector.load %arg7[%c0_155, %391, %c0_156, %c0_157] : memref<2x8x8x128xf32, #tpu.memory_space<vmem>>, vector<1x1x8x128xf32>
    %393 = vector.shape_cast %392 : vector<1x1x8x128xf32> to vector<8x128xf32>
    %394 = vector.shape_cast %361 : vector<8x128xf32> to vector<1x1x8x128xf32>
    tpu.vector_store %arg7[%c0_155, %391, %c0_156, %c0_157], %394 {strides = array<i32>} : memref<2x8x8x128xf32, #tpu.memory_space<vmem>>, vector<1x1x8x128xf32>,
    %c1_158 = arith.constant 1 : index
    %395 = arith.index_cast %c4_i32 : i32 to index
    %c0_159 = arith.constant 0 : index
    %c0_160 = arith.constant 0 : index
    %396 = vector.load %arg7[%c1_158, %395, %c0_159, %c0_160] : memref<2x8x8x128xf32, #tpu.memory_space<vmem>>, vector<1x1x8x128xf32>
    %397 = vector.shape_cast %396 : vector<1x1x8x128xf32> to vector<8x128xf32>
    %398 = vector.shape_cast %390 : vector<8x128xf32> to vector<1x1x8x128xf32>
    tpu.vector_store %arg7[%c1_158, %395, %c0_159, %c0_160], %398 {strides = array<i32>} : memref<2x8x8x128xf32, #tpu.memory_space<vmem>>, vector<1x1x8x128xf32>,
    %c5_i32 = arith.constant 5 : i32
    %c0_161 = arith.constant 0 : index
    %c0_162 = arith.constant 0 : index
    %c0_163 = arith.constant 0 : index
    %399 = vector.load %arg4[%c0_161, %c0_162, %c0_163] : memref<2x128x384xf32, #tpu.memory_space<vmem>>, vector<1x128x384xf32>
    %400 = vector.shape_cast %399 : vector<1x128x384xf32> to vector<128x384xf32>
    %cst_164 = arith.constant dense<0.000000e+00> : vector<8x384xf32>
    %401 = tpu.matmul %361, %400, %cst_164 {dimension_numbers = #tpu.dot_dimension_numbers<[1], [0], [0], [1], [0, 0, 1, 1], [], []>} : vector<8x128xf32>, vector<128x384xf32>, vector<8x384xf32> -> vector<8x384xf32>
    %c1_165 = arith.constant 1 : index
    %c0_166 = arith.constant 0 : index
    %c0_167 = arith.constant 0 : index
    %402 = vector.load %arg4[%c1_165, %c0_166, %c0_167] : memref<2x128x384xf32, #tpu.memory_space<vmem>>, vector<1x128x384xf32>
    %403 = vector.shape_cast %402 : vector<1x128x384xf32> to vector<128x384xf32>
    %cst_168 = arith.constant dense<0.000000e+00> : vector<8x384xf32>
    %404 = tpu.matmul %390, %403, %cst_168 {dimension_numbers = #tpu.dot_dimension_numbers<[1], [0], [0], [1], [0, 0, 1, 1], [], []>} : vector<8x128xf32>, vector<128x384xf32>, vector<8x384xf32> -> vector<8x384xf32>
    %c0_169 = arith.constant 0 : index
    %405 = arith.index_cast %c5_i32 : i32 to index
    %c0_170 = arith.constant 0 : index
    %c0_171 = arith.constant 0 : index
    %406 = vector.load %arg8[%c0_169, %405, %c0_170, %c0_171] : memref<2x8x8x384xf32, #tpu.memory_space<vmem>>, vector<1x1x8x384xf32>
    %407 = vector.shape_cast %406 : vector<1x1x8x384xf32> to vector<8x384xf32>
    %408 = vector.extract_strided_slice %407 {offsets = [0, 0], sizes = [8, 128], strides = [1, 1]} : vector<8x384xf32> to vector<8x128xf32>
    %409 = vector.extract_strided_slice %401 {offsets = [0, 0], sizes = [8, 128], strides = [1, 1]} : vector<8x384xf32> to vector<8x128xf32>
    %410 = arith.addf %408, %409 : vector<8x128xf32>
    %411 = arith.negf %410 : vector<8x128xf32>
    %412 = math.exp %411 : vector<8x128xf32>
    %cst_172 = arith.constant 1.000000e+00 : f32
    %413 = vector.broadcast %cst_172 : f32 to vector<8x128xf32>
    %414 = arith.addf %413, %412 : vector<8x128xf32>
    %415 = arith.divf %413, %414 : vector<8x128xf32>
    %416 = vector.extract_strided_slice %407 {offsets = [0, 128], sizes = [8, 128], strides = [1, 1]} : vector<8x384xf32> to vector<8x128xf32>
    %417 = vector.extract_strided_slice %401 {offsets = [0, 128], sizes = [8, 128], strides = [1, 1]} : vector<8x384xf32> to vector<8x128xf32>
    %418 = arith.addf %416, %417 : vector<8x128xf32>
    %419 = arith.negf %418 : vector<8x128xf32>
    %420 = math.exp %419 : vector<8x128xf32>
    %cst_173 = arith.constant 1.000000e+00 : f32
    %421 = vector.broadcast %cst_173 : f32 to vector<8x128xf32>
    %422 = arith.addf %421, %420 : vector<8x128xf32>
    %423 = arith.divf %421, %422 : vector<8x128xf32>
    %424 = vector.extract_strided_slice %407 {offsets = [0, 256], sizes = [8, 128], strides = [1, 1]} : vector<8x384xf32> to vector<8x128xf32>
    %425 = vector.extract_strided_slice %401 {offsets = [0, 256], sizes = [8, 128], strides = [1, 1]} : vector<8x384xf32> to vector<8x128xf32>
    %426 = vector.broadcast %32 : vector<1x128xf32> to vector<8x128xf32>
    %427 = arith.addf %425, %426 : vector<8x128xf32>
    %428 = arith.mulf %415, %427 : vector<8x128xf32>
    %429 = arith.addf %424, %428 : vector<8x128xf32>
    %430 = math.tanh %429 : vector<8x128xf32>
    %431 = arith.subf %361, %430 : vector<8x128xf32>
    %432 = arith.mulf %423, %431 : vector<8x128xf32>
    %433 = arith.addf %430, %432 : vector<8x128xf32>
    %c1_174 = arith.constant 1 : index
    %434 = arith.index_cast %c5_i32 : i32 to index
    %c0_175 = arith.constant 0 : index
    %c0_176 = arith.constant 0 : index
    %435 = vector.load %arg8[%c1_174, %434, %c0_175, %c0_176] : memref<2x8x8x384xf32, #tpu.memory_space<vmem>>, vector<1x1x8x384xf32>
    %436 = vector.shape_cast %435 : vector<1x1x8x384xf32> to vector<8x384xf32>
    %437 = vector.extract_strided_slice %436 {offsets = [0, 0], sizes = [8, 128], strides = [1, 1]} : vector<8x384xf32> to vector<8x128xf32>
    %438 = vector.extract_strided_slice %404 {offsets = [0, 0], sizes = [8, 128], strides = [1, 1]} : vector<8x384xf32> to vector<8x128xf32>
    %439 = arith.addf %437, %438 : vector<8x128xf32>
    %440 = arith.negf %439 : vector<8x128xf32>
    %441 = math.exp %440 : vector<8x128xf32>
    %cst_177 = arith.constant 1.000000e+00 : f32
    %442 = vector.broadcast %cst_177 : f32 to vector<8x128xf32>
    %443 = arith.addf %442, %441 : vector<8x128xf32>
    %444 = arith.divf %442, %443 : vector<8x128xf32>
    %445 = vector.extract_strided_slice %436 {offsets = [0, 128], sizes = [8, 128], strides = [1, 1]} : vector<8x384xf32> to vector<8x128xf32>
    %446 = vector.extract_strided_slice %404 {offsets = [0, 128], sizes = [8, 128], strides = [1, 1]} : vector<8x384xf32> to vector<8x128xf32>
    %447 = arith.addf %445, %446 : vector<8x128xf32>
    %448 = arith.negf %447 : vector<8x128xf32>
    %449 = math.exp %448 : vector<8x128xf32>
    %cst_178 = arith.constant 1.000000e+00 : f32
    %450 = vector.broadcast %cst_178 : f32 to vector<8x128xf32>
    %451 = arith.addf %450, %449 : vector<8x128xf32>
    %452 = arith.divf %450, %451 : vector<8x128xf32>
    %453 = vector.extract_strided_slice %436 {offsets = [0, 256], sizes = [8, 128], strides = [1, 1]} : vector<8x384xf32> to vector<8x128xf32>
    %454 = vector.extract_strided_slice %404 {offsets = [0, 256], sizes = [8, 128], strides = [1, 1]} : vector<8x384xf32> to vector<8x128xf32>
    %455 = vector.broadcast %34 : vector<1x128xf32> to vector<8x128xf32>
    %456 = arith.addf %454, %455 : vector<8x128xf32>
    %457 = arith.mulf %444, %456 : vector<8x128xf32>
    %458 = arith.addf %453, %457 : vector<8x128xf32>
    %459 = math.tanh %458 : vector<8x128xf32>
    %460 = arith.subf %390, %459 : vector<8x128xf32>
    %461 = arith.mulf %452, %460 : vector<8x128xf32>
    %462 = arith.addf %459, %461 : vector<8x128xf32>
    %c0_179 = arith.constant 0 : index
    %463 = arith.index_cast %c5_i32 : i32 to index
    %c0_180 = arith.constant 0 : index
    %c0_181 = arith.constant 0 : index
    %464 = vector.load %arg7[%c0_179, %463, %c0_180, %c0_181] : memref<2x8x8x128xf32, #tpu.memory_space<vmem>>, vector<1x1x8x128xf32>
    %465 = vector.shape_cast %464 : vector<1x1x8x128xf32> to vector<8x128xf32>
    %466 = vector.shape_cast %433 : vector<8x128xf32> to vector<1x1x8x128xf32>
    tpu.vector_store %arg7[%c0_179, %463, %c0_180, %c0_181], %466 {strides = array<i32>} : memref<2x8x8x128xf32, #tpu.memory_space<vmem>>, vector<1x1x8x128xf32>,
    %c1_182 = arith.constant 1 : index
    %467 = arith.index_cast %c5_i32 : i32 to index
    %c0_183 = arith.constant 0 : index
    %c0_184 = arith.constant 0 : index
    %468 = vector.load %arg7[%c1_182, %467, %c0_183, %c0_184] : memref<2x8x8x128xf32, #tpu.memory_space<vmem>>, vector<1x1x8x128xf32>
    %469 = vector.shape_cast %468 : vector<1x1x8x128xf32> to vector<8x128xf32>
    %470 = vector.shape_cast %462 : vector<8x128xf32> to vector<1x1x8x128xf32>
    tpu.vector_store %arg7[%c1_182, %467, %c0_183, %c0_184], %470 {strides = array<i32>} : memref<2x8x8x128xf32, #tpu.memory_space<vmem>>, vector<1x1x8x128xf32>,
    %c6_i32 = arith.constant 6 : i32
    %c0_185 = arith.constant 0 : index
    %c0_186 = arith.constant 0 : index
    %c0_187 = arith.constant 0 : index
    %471 = vector.load %arg4[%c0_185, %c0_186, %c0_187] : memref<2x128x384xf32, #tpu.memory_space<vmem>>, vector<1x128x384xf32>
    %472 = vector.shape_cast %471 : vector<1x128x384xf32> to vector<128x384xf32>
    %cst_188 = arith.constant dense<0.000000e+00> : vector<8x384xf32>
    %473 = tpu.matmul %433, %472, %cst_188 {dimension_numbers = #tpu.dot_dimension_numbers<[1], [0], [0], [1], [0, 0, 1, 1], [], []>} : vector<8x128xf32>, vector<128x384xf32>, vector<8x384xf32> -> vector<8x384xf32>
    %c1_189 = arith.constant 1 : index
    %c0_190 = arith.constant 0 : index
    %c0_191 = arith.constant 0 : index
    %474 = vector.load %arg4[%c1_189, %c0_190, %c0_191] : memref<2x128x384xf32, #tpu.memory_space<vmem>>, vector<1x128x384xf32>
    %475 = vector.shape_cast %474 : vector<1x128x384xf32> to vector<128x384xf32>
    %cst_192 = arith.constant dense<0.000000e+00> : vector<8x384xf32>
    %476 = tpu.matmul %462, %475, %cst_192 {dimension_numbers = #tpu.dot_dimension_numbers<[1], [0], [0], [1], [0, 0, 1, 1], [], []>} : vector<8x128xf32>, vector<128x384xf32>, vector<8x384xf32> -> vector<8x384xf32>
    %c0_193 = arith.constant 0 : index
    %477 = arith.index_cast %c6_i32 : i32 to index
    %c0_194 = arith.constant 0 : index
    %c0_195 = arith.constant 0 : index
    %478 = vector.load %arg8[%c0_193, %477, %c0_194, %c0_195] : memref<2x8x8x384xf32, #tpu.memory_space<vmem>>, vector<1x1x8x384xf32>
    %479 = vector.shape_cast %478 : vector<1x1x8x384xf32> to vector<8x384xf32>
    %480 = vector.extract_strided_slice %479 {offsets = [0, 0], sizes = [8, 128], strides = [1, 1]} : vector<8x384xf32> to vector<8x128xf32>
    %481 = vector.extract_strided_slice %473 {offsets = [0, 0], sizes = [8, 128], strides = [1, 1]} : vector<8x384xf32> to vector<8x128xf32>
    %482 = arith.addf %480, %481 : vector<8x128xf32>
    %483 = arith.negf %482 : vector<8x128xf32>
    %484 = math.exp %483 : vector<8x128xf32>
    %cst_196 = arith.constant 1.000000e+00 : f32
    %485 = vector.broadcast %cst_196 : f32 to vector<8x128xf32>
    %486 = arith.addf %485, %484 : vector<8x128xf32>
    %487 = arith.divf %485, %486 : vector<8x128xf32>
    %488 = vector.extract_strided_slice %479 {offsets = [0, 128], sizes = [8, 128], strides = [1, 1]} : vector<8x384xf32> to vector<8x128xf32>
    %489 = vector.extract_strided_slice %473 {offsets = [0, 128], sizes = [8, 128], strides = [1, 1]} : vector<8x384xf32> to vector<8x128xf32>
    %490 = arith.addf %488, %489 : vector<8x128xf32>
    %491 = arith.negf %490 : vector<8x128xf32>
    %492 = math.exp %491 : vector<8x128xf32>
    %cst_197 = arith.constant 1.000000e+00 : f32
    %493 = vector.broadcast %cst_197 : f32 to vector<8x128xf32>
    %494 = arith.addf %493, %492 : vector<8x128xf32>
    %495 = arith.divf %493, %494 : vector<8x128xf32>
    %496 = vector.extract_strided_slice %479 {offsets = [0, 256], sizes = [8, 128], strides = [1, 1]} : vector<8x384xf32> to vector<8x128xf32>
    %497 = vector.extract_strided_slice %473 {offsets = [0, 256], sizes = [8, 128], strides = [1, 1]} : vector<8x384xf32> to vector<8x128xf32>
    %498 = vector.broadcast %32 : vector<1x128xf32> to vector<8x128xf32>
    %499 = arith.addf %497, %498 : vector<8x128xf32>
    %500 = arith.mulf %487, %499 : vector<8x128xf32>
    %501 = arith.addf %496, %500 : vector<8x128xf32>
    %502 = math.tanh %501 : vector<8x128xf32>
    %503 = arith.subf %433, %502 : vector<8x128xf32>
    %504 = arith.mulf %495, %503 : vector<8x128xf32>
    %505 = arith.addf %502, %504 : vector<8x128xf32>
    %c1_198 = arith.constant 1 : index
    %506 = arith.index_cast %c6_i32 : i32 to index
    %c0_199 = arith.constant 0 : index
    %c0_200 = arith.constant 0 : index
    %507 = vector.load %arg8[%c1_198, %506, %c0_199, %c0_200] : memref<2x8x8x384xf32, #tpu.memory_space<vmem>>, vector<1x1x8x384xf32>
    %508 = vector.shape_cast %507 : vector<1x1x8x384xf32> to vector<8x384xf32>
    %509 = vector.extract_strided_slice %508 {offsets = [0, 0], sizes = [8, 128], strides = [1, 1]} : vector<8x384xf32> to vector<8x128xf32>
    %510 = vector.extract_strided_slice %476 {offsets = [0, 0], sizes = [8, 128], strides = [1, 1]} : vector<8x384xf32> to vector<8x128xf32>
    %511 = arith.addf %509, %510 : vector<8x128xf32>
    %512 = arith.negf %511 : vector<8x128xf32>
    %513 = math.exp %512 : vector<8x128xf32>
    %cst_201 = arith.constant 1.000000e+00 : f32
    %514 = vector.broadcast %cst_201 : f32 to vector<8x128xf32>
    %515 = arith.addf %514, %513 : vector<8x128xf32>
    %516 = arith.divf %514, %515 : vector<8x128xf32>
    %517 = vector.extract_strided_slice %508 {offsets = [0, 128], sizes = [8, 128], strides = [1, 1]} : vector<8x384xf32> to vector<8x128xf32>
    %518 = vector.extract_strided_slice %476 {offsets = [0, 128], sizes = [8, 128], strides = [1, 1]} : vector<8x384xf32> to vector<8x128xf32>
    %519 = arith.addf %517, %518 : vector<8x128xf32>
    %520 = arith.negf %519 : vector<8x128xf32>
    %521 = math.exp %520 : vector<8x128xf32>
    %cst_202 = arith.constant 1.000000e+00 : f32
    %522 = vector.broadcast %cst_202 : f32 to vector<8x128xf32>
    %523 = arith.addf %522, %521 : vector<8x128xf32>
    %524 = arith.divf %522, %523 : vector<8x128xf32>
    %525 = vector.extract_strided_slice %508 {offsets = [0, 256], sizes = [8, 128], strides = [1, 1]} : vector<8x384xf32> to vector<8x128xf32>
    %526 = vector.extract_strided_slice %476 {offsets = [0, 256], sizes = [8, 128], strides = [1, 1]} : vector<8x384xf32> to vector<8x128xf32>
    %527 = vector.broadcast %34 : vector<1x128xf32> to vector<8x128xf32>
    %528 = arith.addf %526, %527 : vector<8x128xf32>
    %529 = arith.mulf %516, %528 : vector<8x128xf32>
    %530 = arith.addf %525, %529 : vector<8x128xf32>
    %531 = math.tanh %530 : vector<8x128xf32>
    %532 = arith.subf %462, %531 : vector<8x128xf32>
    %533 = arith.mulf %524, %532 : vector<8x128xf32>
    %534 = arith.addf %531, %533 : vector<8x128xf32>
    %c0_203 = arith.constant 0 : index
    %535 = arith.index_cast %c6_i32 : i32 to index
    %c0_204 = arith.constant 0 : index
    %c0_205 = arith.constant 0 : index
    %536 = vector.load %arg7[%c0_203, %535, %c0_204, %c0_205] : memref<2x8x8x128xf32, #tpu.memory_space<vmem>>, vector<1x1x8x128xf32>
    %537 = vector.shape_cast %536 : vector<1x1x8x128xf32> to vector<8x128xf32>
    %538 = vector.shape_cast %505 : vector<8x128xf32> to vector<1x1x8x128xf32>
    tpu.vector_store %arg7[%c0_203, %535, %c0_204, %c0_205], %538 {strides = array<i32>} : memref<2x8x8x128xf32, #tpu.memory_space<vmem>>, vector<1x1x8x128xf32>,
    %c1_206 = arith.constant 1 : index
    %539 = arith.index_cast %c6_i32 : i32 to index
    %c0_207 = arith.constant 0 : index
    %c0_208 = arith.constant 0 : index
    %540 = vector.load %arg7[%c1_206, %539, %c0_207, %c0_208] : memref<2x8x8x128xf32, #tpu.memory_space<vmem>>, vector<1x1x8x128xf32>
    %541 = vector.shape_cast %540 : vector<1x1x8x128xf32> to vector<8x128xf32>
    %542 = vector.shape_cast %534 : vector<8x128xf32> to vector<1x1x8x128xf32>
    tpu.vector_store %arg7[%c1_206, %539, %c0_207, %c0_208], %542 {strides = array<i32>} : memref<2x8x8x128xf32, #tpu.memory_space<vmem>>, vector<1x1x8x128xf32>,
    %c7_i32 = arith.constant 7 : i32
    %c0_209 = arith.constant 0 : index
    %c0_210 = arith.constant 0 : index
    %c0_211 = arith.constant 0 : index
    %543 = vector.load %arg4[%c0_209, %c0_210, %c0_211] : memref<2x128x384xf32, #tpu.memory_space<vmem>>, vector<1x128x384xf32>
    %544 = vector.shape_cast %543 : vector<1x128x384xf32> to vector<128x384xf32>
    %cst_212 = arith.constant dense<0.000000e+00> : vector<8x384xf32>
    %545 = tpu.matmul %505, %544, %cst_212 {dimension_numbers = #tpu.dot_dimension_numbers<[1], [0], [0], [1], [0, 0, 1, 1], [], []>} : vector<8x128xf32>, vector<128x384xf32>, vector<8x384xf32> -> vector<8x384xf32>
    %c1_213 = arith.constant 1 : index
    %c0_214 = arith.constant 0 : index
    %c0_215 = arith.constant 0 : index
    %546 = vector.load %arg4[%c1_213, %c0_214, %c0_215] : memref<2x128x384xf32, #tpu.memory_space<vmem>>, vector<1x128x384xf32>
    %547 = vector.shape_cast %546 : vector<1x128x384xf32> to vector<128x384xf32>
    %cst_216 = arith.constant dense<0.000000e+00> : vector<8x384xf32>
    %548 = tpu.matmul %534, %547, %cst_216 {dimension_numbers = #tpu.dot_dimension_numbers<[1], [0], [0], [1], [0, 0, 1, 1], [], []>} : vector<8x128xf32>, vector<128x384xf32>, vector<8x384xf32> -> vector<8x384xf32>
    %c0_217 = arith.constant 0 : index
    %549 = arith.index_cast %c7_i32 : i32 to index
    %c0_218 = arith.constant 0 : index
    %c0_219 = arith.constant 0 : index
    %550 = vector.load %arg8[%c0_217, %549, %c0_218, %c0_219] : memref<2x8x8x384xf32, #tpu.memory_space<vmem>>, vector<1x1x8x384xf32>
    %551 = vector.shape_cast %550 : vector<1x1x8x384xf32> to vector<8x384xf32>
    %552 = vector.extract_strided_slice %551 {offsets = [0, 0], sizes = [8, 128], strides = [1, 1]} : vector<8x384xf32> to vector<8x128xf32>
    %553 = vector.extract_strided_slice %545 {offsets = [0, 0], sizes = [8, 128], strides = [1, 1]} : vector<8x384xf32> to vector<8x128xf32>
    %554 = arith.addf %552, %553 : vector<8x128xf32>
    %555 = arith.negf %554 : vector<8x128xf32>
    %556 = math.exp %555 : vector<8x128xf32>
    %cst_220 = arith.constant 1.000000e+00 : f32
    %557 = vector.broadcast %cst_220 : f32 to vector<8x128xf32>
    %558 = arith.addf %557, %556 : vector<8x128xf32>
    %559 = arith.divf %557, %558 : vector<8x128xf32>
    %560 = vector.extract_strided_slice %551 {offsets = [0, 128], sizes = [8, 128], strides = [1, 1]} : vector<8x384xf32> to vector<8x128xf32>
    %561 = vector.extract_strided_slice %545 {offsets = [0, 128], sizes = [8, 128], strides = [1, 1]} : vector<8x384xf32> to vector<8x128xf32>
    %562 = arith.addf %560, %561 : vector<8x128xf32>
    %563 = arith.negf %562 : vector<8x128xf32>
    %564 = math.exp %563 : vector<8x128xf32>
    %cst_221 = arith.constant 1.000000e+00 : f32
    %565 = vector.broadcast %cst_221 : f32 to vector<8x128xf32>
    %566 = arith.addf %565, %564 : vector<8x128xf32>
    %567 = arith.divf %565, %566 : vector<8x128xf32>
    %568 = vector.extract_strided_slice %551 {offsets = [0, 256], sizes = [8, 128], strides = [1, 1]} : vector<8x384xf32> to vector<8x128xf32>
    %569 = vector.extract_strided_slice %545 {offsets = [0, 256], sizes = [8, 128], strides = [1, 1]} : vector<8x384xf32> to vector<8x128xf32>
    %570 = vector.broadcast %32 : vector<1x128xf32> to vector<8x128xf32>
    %571 = arith.addf %569, %570 : vector<8x128xf32>
    %572 = arith.mulf %559, %571 : vector<8x128xf32>
    %573 = arith.addf %568, %572 : vector<8x128xf32>
    %574 = math.tanh %573 : vector<8x128xf32>
    %575 = arith.subf %505, %574 : vector<8x128xf32>
    %576 = arith.mulf %567, %575 : vector<8x128xf32>
    %577 = arith.addf %574, %576 : vector<8x128xf32>
    %c1_222 = arith.constant 1 : index
    %578 = arith.index_cast %c7_i32 : i32 to index
    %c0_223 = arith.constant 0 : index
    %c0_224 = arith.constant 0 : index
    %579 = vector.load %arg8[%c1_222, %578, %c0_223, %c0_224] : memref<2x8x8x384xf32, #tpu.memory_space<vmem>>, vector<1x1x8x384xf32>
    %580 = vector.shape_cast %579 : vector<1x1x8x384xf32> to vector<8x384xf32>
    %581 = vector.extract_strided_slice %580 {offsets = [0, 0], sizes = [8, 128], strides = [1, 1]} : vector<8x384xf32> to vector<8x128xf32>
    %582 = vector.extract_strided_slice %548 {offsets = [0, 0], sizes = [8, 128], strides = [1, 1]} : vector<8x384xf32> to vector<8x128xf32>
    %583 = arith.addf %581, %582 : vector<8x128xf32>
    %584 = arith.negf %583 : vector<8x128xf32>
    %585 = math.exp %584 : vector<8x128xf32>
    %cst_225 = arith.constant 1.000000e+00 : f32
    %586 = vector.broadcast %cst_225 : f32 to vector<8x128xf32>
    %587 = arith.addf %586, %585 : vector<8x128xf32>
    %588 = arith.divf %586, %587 : vector<8x128xf32>
    %589 = vector.extract_strided_slice %580 {offsets = [0, 128], sizes = [8, 128], strides = [1, 1]} : vector<8x384xf32> to vector<8x128xf32>
    %590 = vector.extract_strided_slice %548 {offsets = [0, 128], sizes = [8, 128], strides = [1, 1]} : vector<8x384xf32> to vector<8x128xf32>
    %591 = arith.addf %589, %590 : vector<8x128xf32>
    %592 = arith.negf %591 : vector<8x128xf32>
    %593 = math.exp %592 : vector<8x128xf32>
    %cst_226 = arith.constant 1.000000e+00 : f32
    %594 = vector.broadcast %cst_226 : f32 to vector<8x128xf32>
    %595 = arith.addf %594, %593 : vector<8x128xf32>
    %596 = arith.divf %594, %595 : vector<8x128xf32>
    %597 = vector.extract_strided_slice %580 {offsets = [0, 256], sizes = [8, 128], strides = [1, 1]} : vector<8x384xf32> to vector<8x128xf32>
    %598 = vector.extract_strided_slice %548 {offsets = [0, 256], sizes = [8, 128], strides = [1, 1]} : vector<8x384xf32> to vector<8x128xf32>
    %599 = vector.broadcast %34 : vector<1x128xf32> to vector<8x128xf32>
    %600 = arith.addf %598, %599 : vector<8x128xf32>
    %601 = arith.mulf %588, %600 : vector<8x128xf32>
    %602 = arith.addf %597, %601 : vector<8x128xf32>
    %603 = math.tanh %602 : vector<8x128xf32>
    %604 = arith.subf %534, %603 : vector<8x128xf32>
    %605 = arith.mulf %596, %604 : vector<8x128xf32>
    %606 = arith.addf %603, %605 : vector<8x128xf32>
    %c0_227 = arith.constant 0 : index
    %607 = arith.index_cast %c7_i32 : i32 to index
    %c0_228 = arith.constant 0 : index
    %c0_229 = arith.constant 0 : index
    %608 = vector.load %arg7[%c0_227, %607, %c0_228, %c0_229] : memref<2x8x8x128xf32, #tpu.memory_space<vmem>>, vector<1x1x8x128xf32>
    %609 = vector.shape_cast %608 : vector<1x1x8x128xf32> to vector<8x128xf32>
    %610 = vector.shape_cast %577 : vector<8x128xf32> to vector<1x1x8x128xf32>
    tpu.vector_store %arg7[%c0_227, %607, %c0_228, %c0_229], %610 {strides = array<i32>} : memref<2x8x8x128xf32, #tpu.memory_space<vmem>>, vector<1x1x8x128xf32>,
    %c1_230 = arith.constant 1 : index
    %611 = arith.index_cast %c7_i32 : i32 to index
    %c0_231 = arith.constant 0 : index
    %c0_232 = arith.constant 0 : index
    %612 = vector.load %arg7[%c1_230, %611, %c0_231, %c0_232] : memref<2x8x8x128xf32, #tpu.memory_space<vmem>>, vector<1x1x8x128xf32>
    %613 = vector.shape_cast %612 : vector<1x1x8x128xf32> to vector<8x128xf32>
    %614 = vector.shape_cast %606 : vector<8x128xf32> to vector<1x1x8x128xf32>
    tpu.vector_store %arg7[%c1_230, %611, %c0_231, %c0_232], %614 {strides = array<i32>} : memref<2x8x8x128xf32, #tpu.memory_space<vmem>>, vector<1x1x8x128xf32>,
    %c8_i32 = arith.constant 8 : i32
    %c0_233 = arith.constant 0 : index
    %c0_234 = arith.constant 0 : index
    %c0_235 = arith.constant 0 : index
    %615 = vector.load %arg9[%c0_233, %c0_234, %c0_235] : memref<2x8x128xf32, #tpu.memory_space<vmem>>, vector<1x8x128xf32>
    %616 = vector.shape_cast %615 : vector<1x8x128xf32> to vector<8x128xf32>
    %617 = vector.shape_cast %577 : vector<8x128xf32> to vector<1x8x128xf32>
    tpu.vector_store %arg9[%c0_233, %c0_234, %c0_235], %617 {strides = array<i32>} : memref<2x8x128xf32, #tpu.memory_space<vmem>>, vector<1x8x128xf32>,
    %c1_236 = arith.constant 1 : index
    %c0_237 = arith.constant 0 : index
    %c0_238 = arith.constant 0 : index
    %618 = vector.load %arg9[%c1_236, %c0_237, %c0_238] : memref<2x8x128xf32, #tpu.memory_space<vmem>>, vector<1x8x128xf32>
    %619 = vector.shape_cast %618 : vector<1x8x128xf32> to vector<8x128xf32>
    %620 = vector.shape_cast %606 : vector<8x128xf32> to vector<1x8x128xf32>
    tpu.vector_store %arg9[%c1_236, %c0_237, %c0_238], %620 {strides = array<i32>} : memref<2x8x128xf32, #tpu.memory_space<vmem>>, vector<1x8x128xf32>,
    return
  }
  func.func @transform_0(%arg0: i32, %arg1: i32) -> (i32, i32, i32, i32) {
    %c0_i32 = arith.constant 0 : i32
    %c0_i32_0 = arith.constant 0 : i32
    %c0_i32_1 = arith.constant 0 : i32
    return %c0_i32, %arg1, %arg0, %c0_i32_0 : i32, i32, i32, i32
  }
  func.func @transform_1(%arg0: i32, %arg1: i32) -> (i32, i32, i32) {
    %c0_i32 = arith.constant 0 : i32
    %c0_i32_0 = arith.constant 0 : i32
    %c0_i32_1 = arith.constant 0 : i32
    %c0_i32_2 = arith.constant 0 : i32
    return %c0_i32, %c0_i32_0, %c0_i32_1 : i32, i32, i32
  }
  func.func @transform_2(%arg0: i32, %arg1: i32) -> (i32, i32, i32) {
    %c0_i32 = arith.constant 0 : i32
    %c0_i32_0 = arith.constant 0 : i32
    %c0_i32_1 = arith.constant 0 : i32
    %c0_i32_2 = arith.constant 0 : i32
    return %c0_i32, %c0_i32_0, %c0_i32_1 : i32, i32, i32
  }
  func.func @transform_3(%arg0: i32, %arg1: i32) -> (i32, i32, i32) {
    %c0_i32 = arith.constant 0 : i32
    %c0_i32_0 = arith.constant 0 : i32
    %c0_i32_1 = arith.constant 0 : i32
    %c0_i32_2 = arith.constant 0 : i32
    return %c0_i32, %c0_i32_0, %c0_i32_1 : i32, i32, i32
  }
  func.func @transform_4(%arg0: i32, %arg1: i32) -> (i32, i32, i32) {
    %c0_i32 = arith.constant 0 : i32
    %c0_i32_0 = arith.constant 0 : i32
    %c0_i32_1 = arith.constant 0 : i32
    %c0_i32_2 = arith.constant 0 : i32
    return %c0_i32, %c0_i32_0, %c0_i32_1 : i32, i32, i32
  }
  func.func @transform_5(%arg0: i32, %arg1: i32) -> (i32, i32, i32, i32) {
    %c0_i32 = arith.constant 0 : i32
    %c0_i32_0 = arith.constant 0 : i32
    %c0_i32_1 = arith.constant 0 : i32
    return %c0_i32, %arg1, %arg0, %c0_i32_0 : i32, i32, i32, i32
  }
}

</mosaic_0001>

<bundles_post_ra>
// kernel: _lambda_.2
= control target key start
LH: loop header
LB: loop body
LE: loop exit
PB: predicated region body
PF: predicated region fallthrough
CT: control target
= control target key end

     0   :  { %10 = vsyncpa [#allocation5], 0  ;;  %s5565_s0 = inlined_call_operand.vmem [shape: f32[2,8,8,128], index: 0, kind: input, shape index: {}]   ;;  %s5566_s1 = inlined_call_operand.hbm [shape: f32[2,128,384], index: 1, kind: input, shape index: {}]   ;;  %s5567_s2 = inlined_call_operand.hbm [shape: f32[2,128,384], index: 2, kind: input, shape index: {}]   ;;  %s5568_s3 = inlined_call_operand.vmem [shape: f32[2,1,384], index: 3, kind: input, shape index: {}]   ;;  %s5569_s4 = inlined_call_operand.vmem [shape: f32[2,1,128], index: 4, kind: input, shape index: {}]   ;;  %s5570_s5 = inlined_call_operand.vmem [shape: f32[2,8,8,128], index: 5, kind: output, shape index: {}]  }
   0x1   :  { %s18_s20 = sshll.u32 %s5566_s1, 4  ;;  %s19_s20 = int_to_ptr.hbm [resolvable:$true] %s18_s20 }
   0x2   :  { %11 = vsyncpa [#allocation7], 0  ;;  %s3358_s21 = smov [#allocation4]   ;;  %s31_s25 = sshll.u32 %s5567_s2, 4  ;;  %s32_s25 = int_to_ptr.hbm [resolvable:$true] %s31_s25 }
   0x3   :  { %s20_s22 = sshll.u32 %s3358_s21, 4  ;;  %s3359_s26 = smov 384   ;;  %s21_s22 = int_to_ptr.vmem [resolvable:$true] %s20_s22 }
   0x4   :  { %s3360_s27 = smov 24   ;;  %s3361_s28 = smov [#allocation6]  }
   0x5   :  { %26 = dma.hbm_to_vmem [thread:$0]  %s19_s20, 12288, %s21_s22, [#allocation5], %s3359_s26, %s3359_s26, %s3360_s27  }
   0x6   :  { %s33_s29 = sshll.u32 %s3361_s28, 4  ;;  %s34_s29 = int_to_ptr.vmem [resolvable:$true] %s33_s29 }
   0x7   :  { %39 = dma.hbm_to_vmem [thread:$0]  %s32_s25, 12288, %s34_s29, [#allocation7], %s3359_s26, %s3359_s26, %s3360_s27  }
   0x8   :  { %3354 = dma.done.wait [#allocation5], 12288  }
   0x9   :  { %3355 = vsyncadd [#allocation5], 4294955008 }
   0xa   :  { %3356 = dma.done.wait [#allocation7], 12288  }
   0xb   :  { %3357 = vsyncadd [#allocation7], 4294955008  ;;  %v111_v0 = vld [vmem:[#allocation4 + $0x168] sm:$0xff]  ;;  %v112_v1 = vld [vmem:[#allocation4 + $0x170] sm:$0xff] }
   0xc   :  { %v113_v2 = vld [vmem:[#allocation4 + $0x178] sm:$0xff]  ;;  %122 = vmatpush.msra.mxu0 %v111_v0  ;;  %163 = vmatpush.msra.mxu1 %v112_v1  ;;  %v324_v3 = vld [vmem:[#allocation4 + $0x2e8] sm:$0xff]  ;;  %v108_v4 = vld [vmem:[#allocation4 + $0x150] sm:$0xff] }
   0xd   :  { %v109_v5 = vld [vmem:[#allocation4 + $0x158] sm:$0xff]  ;;  %204 = vmatpush.msra.mxu2 %v113_v2  ;;  %336 = vmatpush.msra.mxu3 %v324_v3  ;;  %v110_v6 = vld [vmem:[#allocation4 + $0x160] sm:$0xff]  ;;  %v321_v7 = vld [vmem:[#allocation4 + $0x2d0] sm:$0xff] }
   0xe   :  { %v105_v8 = vld [vmem:[#allocation4 + $0x138] sm:$0xff]  ;;  %123 = vmatpush.msra.mxu0 %v108_v4  ;;  %164 = vmatpush.msra.mxu1 %v109_v5  ;;  %v106_v9 = vld [vmem:[#allocation4 + $0x140] sm:$0xff]  ;;  %v107_v10 = vld [vmem:[#allocation4 + $0x148] sm:$0xff] }
   0xf   :  { %v318_v11 = vld [vmem:[#allocation4 + $0x2b8] sm:$0xff]  ;;  %205 = vmatpush.msra.mxu2 %v110_v6  ;;  %337 = vmatpush.msra.mxu3 %v321_v7  ;;  %v102_v12 = vld [vmem:[#allocation4 + $0x120] sm:$0xff]  ;;  %v103_v13 = vld [vmem:[#allocation4 + $0x128] sm:$0xff] }
  0x10   :  { %124 = vmatpush.msra.mxu0 %v105_v8  ;;  %165 = vmatpush.msra.mxu1 %v106_v9  ;;  %v104_v14 = vld [vmem:[#allocation4 + $0x130] sm:$0xff]  ;;  %v315_v15 = vld [vmem:[#allocation4 + $0x2a0] sm:$0xff]  ;;  %v99_v16 = vld [vmem:[#allocation4 + $0x108] sm:$0xff] }
  0x11   :  { %206 = vmatpush.msra.mxu2 %v107_v10  ;;  %338 = vmatpush.msra.mxu3 %v318_v11  ;;  %v100_v17 = vld [vmem:[#allocation4 + $0x110] sm:$0xff]  ;;  %v101_v18 = vld [vmem:[#allocation4 + $0x118] sm:$0xff]  ;;  %v312_v19 = vld [vmem:[#allocation4 + $0x288] sm:$0xff] }
  0x12   :  { %125 = vmatpush.msra.mxu0 %v102_v12  ;;  %166 = vmatpush.msra.mxu1 %v103_v13  ;;  %v96_v20 = vld [vmem:[#allocation4 + $0xf0] sm:$0xff]  ;;  %v97_v21 = vld [vmem:[#allocation4 + $0xf8] sm:$0xff]  ;;  %v98_v22 = vld [vmem:[#allocation4 + $0x100] sm:$0xff] }
  0x13   :  { %207 = vmatpush.msra.mxu2 %v104_v14  ;;  %339 = vmatpush.msra.mxu3 %v315_v15  ;;  %v309_v23 = vld [vmem:[#allocation4 + $0x270] sm:$0xff]  ;;  %v93_v24 = vld [vmem:[#allocation4 + $0xd8] sm:$0xff]  ;;  %v94_v25 = vld [vmem:[#allocation4 + $0xe0] sm:$0xff] }
  0x14   :  { %126 = vmatpush.msra.mxu0 %v99_v16  ;;  %167 = vmatpush.msra.mxu1 %v100_v17  ;;  %v95_v26 = vld [vmem:[#allocation4 + $0xe8] sm:$0xff]  ;;  %v306_v27 = vld [vmem:[#allocation4 + $0x258] sm:$0xff]  ;;  %v90_v28 = vld [vmem:[#allocation4 + $0xc0] sm:$0xff] }
  0x15   :  { %208 = vmatpush.msra.mxu2 %v101_v18  ;;  %340 = vmatpush.msra.mxu3 %v312_v19  ;;  %v91_v29 = vld [vmem:[#allocation4 + $0xc8] sm:$0xff]  ;;  %v92_v30 = vld [vmem:[#allocation4 + $0xd0] sm:$0xff]  ;;  %v303_v31 = vld [vmem:[#allocation4 + $0x240] sm:$0xff] }
  0x16   :  { %127 = vmatpush.msra.mxu0 %v96_v20  ;;  %168 = vmatpush.msra.mxu1 %v97_v21  ;;  %v87_v32 = vld [vmem:[#allocation4 + $0xa8] sm:$0xff]  ;;  %v88_v33 = vld [vmem:[#allocation4 + $0xb0] sm:$0xff]  ;;  %v89_v34 = vld [vmem:[#allocation4 + $0xb8] sm:$0xff] }
  0x17   :  { %209 = vmatpush.msra.mxu2 %v98_v22  ;;  %341 = vmatpush.msra.mxu3 %v309_v23  ;;  %v300_v35 = vld [vmem:[#allocation4 + $0x228] sm:$0xff]  ;;  %v84_v36 = vld [vmem:[#allocation4 + $0x90] sm:$0xff]  ;;  %v85_v37 = vld [vmem:[#allocation4 + $0x98] sm:$0xff] }
  0x18   :  { %128 = vmatpush.msra.mxu0 %v93_v24  ;;  %169 = vmatpush.msra.mxu1 %v94_v25  ;;  %v86_v38 = vld [vmem:[#allocation4 + $0xa0] sm:$0xff]  ;;  %v297_v39 = vld [vmem:[#allocation4 + $0x210] sm:$0xff]  ;;  %v81_v40 = vld [vmem:[#allocation4 + $0x78] sm:$0xff] }
  0x19   :  { %210 = vmatpush.msra.mxu2 %v95_v26  ;;  %342 = vmatpush.msra.mxu3 %v306_v27  ;;  %v82_v41 = vld [vmem:[#allocation4 + $0x80] sm:$0xff]  ;;  %v83_v42 = vld [vmem:[#allocation4 + $0x88] sm:$0xff]  ;;  %v294_v43 = vld [vmem:[#allocation4 + $0x1f8] sm:$0xff] }
  0x1a   :  { %129 = vmatpush.msra.mxu0 %v90_v28  ;;  %170 = vmatpush.msra.mxu1 %v91_v29  ;;  %v78_v44 = vld [vmem:[#allocation4 + $0x60] sm:$0xff]  ;;  %v79_v45 = vld [vmem:[#allocation4 + $0x68] sm:$0xff]  ;;  %v80_v46 = vld [vmem:[#allocation4 + $0x70] sm:$0xff] }
  0x1b   :  { %211 = vmatpush.msra.mxu2 %v92_v30  ;;  %343 = vmatpush.msra.mxu3 %v303_v31  ;;  %v291_v47 = vld [vmem:[#allocation4 + $0x1e0] sm:$0xff]  ;;  %v75_v48 = vld [vmem:[#allocation4 + $0x48] sm:$0xff]  ;;  %v76_v49 = vld [vmem:[#allocation4 + $0x50] sm:$0xff] }
  0x1c   :  { %130 = vmatpush.msra.mxu0 %v87_v32  ;;  %171 = vmatpush.msra.mxu1 %v88_v33  ;;  %v77_v50 = vld [vmem:[#allocation4 + $0x58] sm:$0xff]  ;;  %v288_v51 = vld [vmem:[#allocation4 + $0x1c8] sm:$0xff]  ;;  %v72_v52 = vld [vmem:[#allocation4 + $0x30] sm:$0xff] }
  0x1d   :  { %212 = vmatpush.msra.mxu2 %v89_v34  ;;  %344 = vmatpush.msra.mxu3 %v300_v35  ;;  %v73_v53 = vld [vmem:[#allocation4 + $0x38] sm:$0xff]  ;;  %v74_v54 = vld [vmem:[#allocation4 + $0x40] sm:$0xff]  ;;  %v285_v55 = vld [vmem:[#allocation4 + $0x1b0] sm:$0xff] }
  0x1e   :  { %131 = vmatpush.msra.mxu0 %v84_v36  ;;  %172 = vmatpush.msra.mxu1 %v85_v37  ;;  %v69_v56 = vld [vmem:[#allocation4 + $0x18] sm:$0xff]  ;;  %v70_v57 = vld [vmem:[#allocation4 + $0x20] sm:$0xff]  ;;  %v71_v58 = vld [vmem:[#allocation4 + $0x28] sm:$0xff] }
  0x1f   :  { %213 = vmatpush.msra.mxu2 %v86_v38  ;;  %345 = vmatpush.msra.mxu3 %v297_v39  ;;  %v282_v59 = vld [vmem:[#allocation4 + $0x198] sm:$0xff]  ;;  %v66_v60 = vld [vmem:[#allocation4] sm:$0xff]  ;;  %v67_v61 = vld [vmem:[#allocation4 + $0x8] sm:$0xff] }
  0x20   :  { %132 = vmatpush.msra.mxu0 %v81_v40  ;;  %173 = vmatpush.msra.mxu1 %v82_v41  ;;  %v68_v62 = vld [vmem:[#allocation4 + $0x10] sm:$0xff]  ;;  %v279_v63 = vld [vmem:[#allocation4 + $0x180] sm:$0xff]  ;;  %v326_v4 = vld [vmem:[#allocation4 + $0x2f8] sm:$0xff] }
  0x21   :  { %214 = vmatpush.msra.mxu2 %v83_v42  ;;  %346 = vmatpush.msra.mxu3 %v294_v43  ;;  %v58_v0 = vld [vmem:[%s5565_s0] sm:$0xff]  ;;  %v325_v2 = vld [vmem:[#allocation4 + $0x2f0] sm:$0xff]  ;;  %v3409_v5 = vld [vmem:[#allocation6 + $0x168] sm:$0xff] }
  0x22   :  { %133 = vmatpush.msra.mxu0 %v78_v44  ;;  %174 = vmatpush.msra.mxu1 %v79_v45  ;;  %v3405_v1 = vld [vmem:[%s5565_s0 + $0x40] sm:$0xff]  ;;  %v3407_v3 = vld [vmem:[#allocation6 + $0x170] sm:$0xff]  ;;  %v322_v6 = vld [vmem:[#allocation4 + $0x2d8] sm:$0xff] }
  0x23   :  { %215 = vmatpush.msra.mxu2 %v80_v46  ;;  %347 = vmatpush.msra.mxu3 %v291_v47  ;;  %v3412_v7 = vld [vmem:[#allocation6 + $0x158] sm:$0xff]  ;;  %v323_v8 = vld [vmem:[#allocation4 + $0x2e0] sm:$0xff]  ;;  %v3415_v9 = vld [vmem:[#allocation6 + $0x150] sm:$0xff] }
  0x24   :  { %134 = vmatpush.msra.mxu0 %v75_v48  ;;  %175 = vmatpush.msra.mxu1 %v76_v49  ;;  %v319_v10 = vld [vmem:[#allocation4 + $0x2c0] sm:$0xff]  ;;  %v320_v12 = vld [vmem:[#allocation4 + $0x2c8] sm:$0xff]  ;;  %v3421_v13 = vld [vmem:[#allocation6 + $0x138] sm:$0xff] }
  0x25   :  { %216 = vmatpush.msra.mxu2 %v77_v50  ;;  %348 = vmatpush.msra.mxu3 %v288_v51  ;;  %v3417_v11 = vld [vmem:[#allocation6 + $0x140] sm:$0xff]  ;;  %v59_v14 = vld [vmem:[%s5565_s0 + $0x8] sm:$0xff]  ;;  %v317_v18 = vld [vmem:[#allocation4 + $0x2b0] sm:$0xff] }
  0x26   :  { %135 = vmatpush.msra.mxu0 %v72_v52  ;;  %176 = vmatpush.msra.mxu1 %v73_v53  ;;  %v3430_v15 = vld [vmem:[%s5565_s0 + $0x48] sm:$0xff]  ;;  %v3436_v19 = vld [vmem:[#allocation6 + $0x120] sm:$0xff]  ;;  %v313_v20 = vld [vmem:[#allocation4 + $0x290] sm:$0xff] }
  0x27   :  { %217 = vmatpush.msra.mxu2 %v74_v54  ;;  %349 = vmatpush.msra.mxu3 %v285_v55  ;;  %v316_v16 = vld [vmem:[#allocation4 + $0x2a8] sm:$0xff]  ;;  %v3439_v21 = vld [vmem:[#allocation6 + $0x110] sm:$0xff]  ;;  %v314_v22 = vld [vmem:[#allocation4 + $0x298] sm:$0xff] }
  0x28   :  { %136 = vmatpush.msra.mxu0 %v69_v56  ;;  %177 = vmatpush.msra.mxu1 %v70_v57  ;;  %v3433_v17 = vld [vmem:[#allocation6 + $0x128] sm:$0xff]  ;;  %v310_v24 = vld [vmem:[#allocation4 + $0x278] sm:$0xff]  ;;  %v311_v26 = vld [vmem:[#allocation4 + $0x280] sm:$0xff] }
  0x29   :  { %218 = vmatpush.msra.mxu2 %v71_v58  ;;  %350 = vmatpush.msra.mxu3 %v282_v59  ;;  %v3442_v23 = vld [vmem:[#allocation6 + $0x108] sm:$0xff]  ;;  %v3444_v25 = vld [vmem:[#allocation6 + $0xf8] sm:$0xff]  ;;  %v3448_v27 = vld [vmem:[#allocation6 + $0xf0] sm:$0xff] }
  0x2a   :  { %137 = vmatpush.msra.mxu0 %v66_v60  ;;  %178 = vmatpush.msra.mxu1 %v67_v61  ;;  %v60_v28 = vld [vmem:[%s5565_s0 + $0x10] sm:$0xff]  ;;  %v3460_v30 = vld [vmem:[#allocation6 + $0xe0] sm:$0xff]  ;;  %v308_v32 = vld [vmem:[#allocation4 + $0x268] sm:$0xff] }
  0x2b   :  { %219 = vmatpush.msra.mxu2 %v68_v62  ;;  %351 = vmatpush.msra.mxu3 %v279_v63  ;;  %v3457_v29 = vld [vmem:[%s5565_s0 + $0x50] sm:$0xff]  ;;  %v307_v31 = vld [vmem:[#allocation4 + $0x260] sm:$0xff]  ;;  %v3463_v33 = vld [vmem:[#allocation6 + $0xd8] sm:$0xff] }
  0x2c   :  { %138 = vmatmul.f32.vlgmr.msra.gmra.mxu0 %v58_v0  ;;  %179 = vmatmul.f32.vlgmr.msra.gmra.mxu1 %v58_v0  ;;  %v3466_v34 = vld [vmem:[#allocation6 + $0xc8] sm:$0xff]  ;;  %v305_v36 = vld [vmem:[#allocation4 + $0x250] sm:$0xff]  ;;  %v3469_v37 = vld [vmem:[#allocation6 + $0xc0] sm:$0xff] }
  0x2d   :  { %220 = vmatmul.f32.vlgmr.msra.gmra.mxu2 %v58_v0  ;;  %352 = vmatmul.f32.vlgmr.msra.gmra.mxu3 %v3405_v1  ;;  %v304_v35 = vld [vmem:[#allocation4 + $0x248] sm:$0xff]  ;;  %v3471_v38 = vld [vmem:[#allocation6 + $0xb0] sm:$0xff]  ;;  %v302_v41 = vld [vmem:[#allocation4 + $0x238] sm:$0xff] }
  0x2e   :  { %377 = vmatpush.msrb.mxu0 %v325_v2  ;;  %558 = vmatpush.msrb.mxu3 %v3407_v3  ;;  %v301_v39 = vld [vmem:[#allocation4 + $0x230] sm:$0xff]  ;;  %v3475_v40 = vld [vmem:[#allocation6 + $0xa8] sm:$0xff]  ;;  %v61_v42 = vld [vmem:[%s5565_s0 + $0x18] sm:$0xff] }
  0x2f   :  { %418 = vmatpush.msrb.mxu1 %v326_v4  ;;  %538 = vmatpush.msrb.mxu2 %v3409_v5  ;;  %v3484_v43 = vld [vmem:[%s5565_s0 + $0x58] sm:$0xff]  ;;  %v3490_v46 = vld [vmem:[#allocation6 + $0x90] sm:$0xff]  ;;  %v299_v47 = vld [vmem:[#allocation4 + $0x220] sm:$0xff] }
  0x30   :  { %378 = vmatpush.msrb.mxu0 %v322_v6  ;;  %559 = vmatpush.msrb.mxu3 %v3412_v7  ;;  %v3487_v44 = vld [vmem:[#allocation6 + $0x98] sm:$0xff]  ;;  %v3493_v48 = vld [vmem:[#allocation6 + $0x80] sm:$0xff]  ;;  %v296_v51 = vld [vmem:[#allocation4 + $0x208] sm:$0xff] }
  0x31   :  { %419 = vmatpush.msrb.mxu1 %v323_v8  ;;  %539 = vmatpush.msrb.mxu2 %v3415_v9  ;;  %v298_v45 = vld [vmem:[#allocation4 + $0x218] sm:$0xff]  ;;  %v295_v49 = vld [vmem:[#allocation4 + $0x200] sm:$0xff]  ;;  %v3498_v52 = vld [vmem:[#allocation6 + $0x68] sm:$0xff] }
  0x32   :  { %379 = vmatpush.msrb.mxu0 %v319_v10  ;;  %560 = vmatpush.msrb.mxu3 %v3417_v11  ;;  %v3496_v50 = vld [vmem:[#allocation6 + $0x78] sm:$0xff]  ;;  %v292_v53 = vld [vmem:[#allocation4 + $0x1e8] sm:$0xff]  ;;  %v3502_v54 = vld [vmem:[#allocation6 + $0x60] sm:$0xff] }
  0x33   :  { %420 = vmatpush.msrb.mxu1 %v320_v12  ;;  %540 = vmatpush.msrb.mxu2 %v3421_v13  ;;  %v293_v55 = vld [vmem:[#allocation4 + $0x1f0] sm:$0xff]  ;;  %v62_v56 = vld [vmem:[%s5565_s0 + $0x20] sm:$0xff]  ;;  %v3517_v60 = vld [vmem:[#allocation6 + $0x48] sm:$0xff] }
  0x34   :  { %141 = vmatmul.f32.gmra.mxu0 %v59_v14  ;;  %182 = vmatmul.f32.gmra.mxu1 %v59_v14  ;;  %v3511_v57 = vld [vmem:[%s5565_s0 + $0x60] sm:$0xff]  ;;  %v3514_v58 = vld [vmem:[#allocation6 + $0x50] sm:$0xff]  ;;  %v290_v61 = vld [vmem:[#allocation4 + $0x1d8] sm:$0xff] }
  0x35   :  { %223 = vmatmul.f32.gmra.mxu2 %v59_v14  ;;  %355 = vmatmul.f32.gmra.mxu3 %v3430_v15  ;;  %v289_v59 = vld [vmem:[#allocation4 + $0x1d0] sm:$0xff]  ;;  %v3520_v62 = vld [vmem:[#allocation6 + $0x38] sm:$0xff]  ;;  %v287_v2 = vld [vmem:[#allocation4 + $0x1c0] sm:$0xff] }
  0x36   :  { %380 = vmatpush.msrb.mxu0 %v316_v16  ;;  %561 = vmatpush.msrb.mxu3 %v3433_v17  ;;  %v286_v63 = vld [vmem:[#allocation4 + $0x1b8] sm:$0xff]  ;;  %v3523_v0 = vld [vmem:[#allocation6 + $0x30] sm:$0xff]  ;;  %v3525_v4 = vld [vmem:[#allocation6 + $0x20] sm:$0xff] }
  0x37   :  { %421 = vmatpush.msrb.mxu1 %v317_v18  ;;  %541 = vmatpush.msrb.mxu2 %v3436_v19  ;;  %v283_v6 = vld [vmem:[#allocation4 + $0x1a0] sm:$0xff]  ;;  %v3529_v8 = vld [vmem:[#allocation6 + $0x18] sm:$0xff]  ;;  %v284_v10 = vld [vmem:[#allocation4 + $0x1a8] sm:$0xff] }
  0x38   :  { %381 = vmatpush.msrb.mxu0 %v313_v20  ;;  %562 = vmatpush.msrb.mxu3 %v3439_v21  ;;  %v63_v12 = vld [vmem:[%s5565_s0 + $0x28] sm:$0xff] }
  0x39   :  { %422 = vmatpush.msrb.mxu1 %v314_v22  ;;  %542 = vmatpush.msrb.mxu2 %v3442_v23  ;;  %v3539_v14 = vld [vmem:[%s5565_s0 + $0x68] sm:$0xff]  ;;  %v3546_v22 = vld [vmem:[#allocation6] sm:$0xff] }
  0x3a   :  { %382 = vmatpush.msrb.mxu0 %v310_v24  ;;  %563 = vmatpush.msrb.mxu3 %v3444_v25  ;;  %v3541_v16 = vld [vmem:[#allocation6 + $0x8] sm:$0xff]  ;;  %5687 = vst [vmem:[#allocation11_spill] sm:$0xff] %v3546_v22  ;;  %v3549_v24 = vld [vmem:[#allocation6 + $0x178] sm:$0xff] }
  0x3b   :  { %423 = vmatpush.msrb.mxu1 %v311_v26  ;;  %543 = vmatpush.msrb.mxu2 %v3448_v27  ;;  %5686 = vst [vmem:[#allocation10_spill] sm:$0xff] %v3541_v16  ;;  %v280_v18 = vld [vmem:[#allocation4 + $0x188] sm:$0xff]  ;;  %v281_v26 = vld [vmem:[#allocation4 + $0x190] sm:$0xff] }
  0x3c   :  { %144 = vmatmul.f32.gmra.mxu0 %v60_v28  ;;  %185 = vmatmul.f32.gmra.mxu1 %v60_v28  ;;  %v3544_v20 = vld [vmem:[#allocation6 + $0x2e8] sm:$0xff] }
  0x3d   :  { %226 = vmatmul.f32.gmra.mxu2 %v60_v28  ;;  %358 = vmatmul.f32.gmra.mxu3 %v3457_v29  ;;  %v3552_v28 = vld [vmem:[#allocation6 + $0x2d0] sm:$0xff] }
  0x3e   :  { %564 = vmatpush.msrb.mxu3 %v3460_v30  ;;  %383 = vmatpush.msrb.mxu0 %v307_v31  ;;  %v3554_v31 = vld [vmem:[#allocation6 + $0x2f0] sm:$0xff] }
  0x3f   :  { %424 = vmatpush.msrb.mxu1 %v308_v32  ;;  %544 = vmatpush.msrb.mxu2 %v3463_v33  ;;  %5688 = vst [vmem:[#allocation12_spill] sm:$0xff] %v3554_v31  ;;  %v3558_v32 = vld [vmem:[#allocation6 + $0x160] sm:$0xff] }
  0x40   :  { %565 = vmatpush.msrb.mxu3 %v3466_v34  ;;  %384 = vmatpush.msrb.mxu0 %v304_v35  ;;  %v3560_v35 = vld [vmem:[#allocation6 + $0x2b8] sm:$0xff] }
  0x41   :  { %425 = vmatpush.msrb.mxu1 %v305_v36  ;;  %545 = vmatpush.msrb.mxu2 %v3469_v37  ;;  %v3563_v36 = vld [vmem:[#allocation6 + $0x2d8] sm:$0xff] }
  0x42   :  { %566 = vmatpush.msrb.mxu3 %v3471_v38  ;;  %385 = vmatpush.msrb.mxu0 %v301_v39  ;;  %5689 = vst [vmem:[#allocation13_spill] sm:$0xff] %v3563_v36  ;;  %v3565_v39 = vld [vmem:[#allocation6 + $0x2f8] sm:$0xff] }
  0x43   :  { %546 = vmatpush.msrb.mxu2 %v3475_v40  ;;  %426 = vmatpush.msrb.mxu1 %v302_v41  ;;  %5690 = vst [vmem:[#allocation14_spill] sm:$0xff] %v3565_v39  ;;  %v64_v41 = vld [vmem:[%s5565_s0 + $0x30] sm:$0xff] }
  0x44   :  { %147 = vmatmul.f32.gmra.mxu0 %v61_v42  ;;  %188 = vmatmul.f32.gmra.mxu1 %v61_v42 }
  0x45   :  { %229 = vmatmul.f32.gmra.mxu2 %v61_v42  ;;  %361 = vmatmul.f32.gmra.mxu3 %v3484_v43  ;;  %v3572_v42 = vld [vmem:[#allocation6 + $0x2a0] sm:$0xff] }
  0x46   :  { %567 = vmatpush.msrb.mxu3 %v3487_v44  ;;  %386 = vmatpush.msrb.mxu0 %v298_v45  ;;  %v3580_v45 = vld [vmem:[%s5565_s0 + $0x70] sm:$0xff] }
  0x47   :  { %547 = vmatpush.msrb.mxu2 %v3490_v46  ;;  %427 = vmatpush.msrb.mxu1 %v299_v47  ;;  %v3582_v47 = vld [vmem:[#allocation6 + $0x148] sm:$0xff] }
  0x48   :  { %568 = vmatpush.msrb.mxu3 %v3493_v48  ;;  %387 = vmatpush.msrb.mxu0 %v295_v49  ;;  %v3585_v49 = vld [vmem:[#allocation6 + $0x288] sm:$0xff] }
  0x49   :  { %548 = vmatpush.msrb.mxu2 %v3496_v50  ;;  %428 = vmatpush.msrb.mxu1 %v296_v51  ;;  %v3587_v51 = vld [vmem:[#allocation6 + $0x2c0] sm:$0xff] }
  0x4a   :  { %569 = vmatpush.msrb.mxu3 %v3498_v52  ;;  %388 = vmatpush.msrb.mxu0 %v292_v53  ;;  %5691 = vst [vmem:[#allocation15_spill] sm:$0xff] %v3587_v51  ;;  %v3590_v53 = vld [vmem:[#allocation6 + $0x130] sm:$0xff] }
  0x4b   :  { %549 = vmatpush.msrb.mxu2 %v3502_v54  ;;  %429 = vmatpush.msrb.mxu1 %v293_v55  ;;  %v3592_v55 = vld [vmem:[#allocation6 + $0x2e0] sm:$0xff] }
  0x4c   :  { %150 = vmatmul.f32.gmra.mxu0 %v62_v56  ;;  %191 = vmatmul.f32.gmra.mxu1 %v62_v56  ;;  %5692 = vst [vmem:[#allocation16_spill] sm:$0xff] %v3592_v55 }
  0x4d   :  { %232 = vmatmul.f32.gmra.mxu2 %v62_v56  ;;  %364 = vmatmul.f32.gmra.mxu3 %v3511_v57  ;;  %v3595_v56 = vld [vmem:[#allocation6 + $0x270] sm:$0xff] }
  0x4e   :  { %570 = vmatpush.msrb.mxu3 %v3514_v58  ;;  %389 = vmatpush.msrb.mxu0 %v289_v59  ;;  %v3598_v59 = vld [vmem:[#allocation6 + $0x2a8] sm:$0xff] }
  0x4f   :  { %550 = vmatpush.msrb.mxu2 %v3517_v60  ;;  %430 = vmatpush.msrb.mxu1 %v290_v61  ;;  %5693 = vst [vmem:[#allocation17_spill] sm:$0xff] %v3598_v59  ;;  %v3601_v61 = vld [vmem:[#allocation6 + $0x118] sm:$0xff] }
  0x50   :  { %571 = vmatpush.msrb.mxu3 %v3520_v62  ;;  %390 = vmatpush.msrb.mxu0 %v286_v63  ;;  %v3604_v63 = vld [vmem:[#allocation6 + $0x2c8] sm:$0xff] }
  0x51   :  { %551 = vmatpush.msrb.mxu2 %v3523_v0  ;;  %431 = vmatpush.msrb.mxu1 %v287_v2  ;;  %5694 = vst [vmem:[#allocation18_spill] sm:$0xff] %v3604_v63  ;;  %v3606_v2 = vld [vmem:[#allocation6 + $0x258] sm:$0xff] }
  0x52   :  { %572 = vmatpush.msrb.mxu3 %v3525_v4  ;;  %391 = vmatpush.msrb.mxu0 %v283_v6  ;;  %v3609_v6 = vld [vmem:[#allocation6 + $0x290] sm:$0xff] }
  0x53   :  { %552 = vmatpush.msrb.mxu2 %v3529_v8  ;;  %432 = vmatpush.msrb.mxu1 %v284_v10  ;;  %5695 = vst [vmem:[#allocation19_spill] sm:$0xff] %v3609_v6  ;;  %v65_v10 = vld [vmem:[%s5565_s0 + $0x38] sm:$0xff] }
  0x54   :  { %153 = vmatmul.f32.gmra.mxu0 %v63_v12  ;;  %194 = vmatmul.f32.gmra.mxu1 %v63_v12 }
  0x55   :  { %235 = vmatmul.f32.gmra.mxu2 %v63_v12  ;;  %367 = vmatmul.f32.gmra.mxu3 %v3539_v14  ;;  %v3617_v12 = vld [vmem:[#allocation6 + $0x240] sm:$0xff] }
  0x56   :  { %573 = vmatpush.msrb.mxu3 %v3541_v16  ;;  %392 = vmatpush.msrb.mxu0 %v280_v18  ;;  %v3625_v18 = vld [vmem:[%s5565_s0 + $0x78] sm:$0xff] }
  0x57   :  { %553 = vmatpush.msrb.mxu2 %v3546_v22  ;;  %433 = vmatpush.msrb.mxu1 %v281_v26  ;;  %5696 = vst [vmem:[#allocation20_spill] sm:$0xff] %v3625_v18  ;;  %v3627_v26 = vld [vmem:[#allocation6 + $0x100] sm:$0xff]  ;;  %v3691_v16 = vld [vmem:[#allocation6 + $0x198] sm:$0xff]  ;;  %v5717_v22 = vmov 0.0  }
  0x58   :  { %647 = vmatpush.msra.mxu3 %v3544_v20  ;;  %667 = vmatpush.msra.mxu0 %v3554_v31  ;;  %v3659_v31 = vld [vmem:[#allocation6 + $0x1e0] sm:$0xff]  ;;  %5712 = vst [vmem:[#allocation36_spill] sm:$0xff] %v3691_v16 }
  0x59   :  { %578 = vmatpush.msra.mxu2 %v3549_v24  ;;  %687 = vmatpush.msra.mxu1 %v3565_v39  ;;  %v3649_v39 = vld [vmem:[#allocation6 + $0x298] sm:$0xff]  ;;  %5705 = vst [vmem:[#allocation29_spill] sm:$0xff] %v3659_v31 }
  0x5a   :  { %648 = vmatpush.msra.mxu3 %v3552_v28  ;;  %668 = vmatpush.msra.mxu0 %v3563_v36  ;;  %v3646_v36 = vld [vmem:[#allocation6 + $0xd0] sm:$0xff]  ;;  %5702 = vst [vmem:[#allocation26_spill] sm:$0xff] %v3649_v39 }
  0x5b   :  { %579 = vmatpush.msra.mxu2 %v3558_v32  ;;  %688 = vmatpush.msra.mxu1 %v3592_v55  ;;  %v3640_v55 = vld [vmem:[#allocation6 + $0x210] sm:$0xff] }
  0x5c   :  { %649 = vmatpush.msra.mxu3 %v3560_v35  ;;  %156 = vmatmul.f32.gmra.mxu0 %v64_v41  ;;  %5700 = vst [vmem:[#allocation24_spill] sm:$0xff] %v3640_v55 }
  0x5d   :  { %197 = vmatmul.f32.gmra.mxu1 %v64_v41  ;;  %238 = vmatmul.f32.gmra.mxu2 %v64_v41  ;;  %v3630_v41 = vld [vmem:[#allocation6 + $0x228] sm:$0xff] }
  0x5e   :  { %650 = vmatpush.msra.mxu3 %v3572_v42  ;;  %580 = vmatpush.msra.mxu2 %v3582_v47  ;;  %5697 = vst [vmem:[#allocation21_spill] sm:$0xff] %v3630_v41 }
  0x5f   :  { %370 = vmatmul.f32.gmra.mxu3 %v3580_v45  ;;  %669 = vmatpush.msra.mxu0 %v3587_v51  ;;  %v3637_v51 = vld [vmem:[#allocation6 + $0x2b0] sm:$0xff] }
  0x60   :  { %651 = vmatpush.msra.mxu3 %v3585_v49  ;;  %581 = vmatpush.msra.mxu2 %v3590_v53  ;;  %5699 = vst [vmem:[#allocation23_spill] sm:$0xff] %v3637_v51 }
  0x61   :  { %670 = vmatpush.msra.mxu0 %v3598_v59  ;;  %689 = vmatpush.msra.mxu1 %v3604_v63  ;;  %v3632_v59 = vld [vmem:[#allocation6 + $0x278] sm:$0xff]  ;;  %v3635_v63 = vld [vmem:[#allocation6 + $0xe8] sm:$0xff] }
  0x62   :  { %652 = vmatpush.msra.mxu3 %v3595_v56  ;;  %582 = vmatpush.msra.mxu2 %v3601_v61  ;;  %5698 = vst [vmem:[#allocation22_spill] sm:$0xff] %v3632_v59 }
  0x63   :  { %671 = vmatpush.msra.mxu0 %v3609_v6  ;;  %v3643_v6 = vld [vmem:[#allocation6 + $0x260] sm:$0xff]  ;;  %690 = vmatpush.msra.mxu1 %v3637_v51  ;;  %v3669_v51 = vld [vmem:[#allocation6 + $0x1c8] sm:$0xff] }
  0x64   :  { %653 = vmatpush.msra.mxu3 %v3606_v2  ;;  %159 = vmatmul.f32.gmra.mxu0 %v65_v10  ;;  %5701 = vst [vmem:[#allocation25_spill] sm:$0xff] %v3643_v6 }
  0x65   :  { %200 = vmatmul.f32.gmra.mxu1 %v65_v10  ;;  %241 = vmatmul.f32.gmra.mxu2 %v65_v10  ;;  %v3651_v10 = vld [vmem:[#allocation6 + $0x1f8] sm:$0xff]  ;;  %5706 = vst [vmem:[#allocation30_spill] sm:$0xff] %v3669_v51 }
  0x66   :  { %654 = vmatpush.msra.mxu3 %v3617_v12  ;;  %583 = vmatpush.msra.mxu2 %v3627_v26  ;;  %5703 = vst [vmem:[#allocation27_spill] sm:$0xff] %v3651_v10 }
  0x67   :  { %373 = vmatmul.f32.gmra.mxu3 %v3625_v18  ;;  %672 = vmatpush.msra.mxu0 %v3632_v59  ;;  %v3655_v18 = vld [vmem:[#allocation6 + $0x248] sm:$0xff]  ;;  %v3664_v59 = vld [vmem:[#allocation6 + $0xb8] sm:$0xff] }
  0x68   :  { %655 = vmatpush.msra.mxu3 %v3630_v41  ;;  %584 = vmatpush.msra.mxu2 %v3635_v63  ;;  %5704 = vst [vmem:[#allocation28_spill] sm:$0xff] %v3655_v18  ;;  %v3686_v41 = vld [vmem:[#allocation6 + $0x88] sm:$0xff] }
  0x69   :  { %673 = vmatpush.msra.mxu0 %v3643_v6  ;;  %691 = vmatpush.msra.mxu1 %v3649_v39  ;;  %v5591_v6 = vmov 0.0   ;;  %v3675_v39 = vld [vmem:[#allocation6 + $0xa0] sm:$0xff] }
  0x6a   :  { %656 = vmatpush.msra.mxu3 %v3640_v55  ;;  %585 = vmatpush.msra.mxu2 %v3646_v36  ;;  %v3671_v55 = vld [vmem:[#allocation6 + $0x230] sm:$0xff] }
  0x6b   :  { %674 = vmatpush.msra.mxu0 %v3655_v18  ;;  %5707 = vst [vmem:[#allocation31_spill] sm:$0xff] %v3671_v55  ;;  %v3680_v18 = vld [vmem:[#allocation6 + $0x1b0] sm:$0xff] }
  0x6c   :  { %657 = vmatpush.msra.mxu3 %v3651_v10  ;;  %393 = vmatmul.f32.vlgmr.msrb.gmra.mxu0 %v3405_v1  ;;  %v3677_v10 = vld [vmem:[#allocation6 + $0x280] sm:$0xff]  ;;  %5709 = vst [vmem:[#allocation33_spill] sm:$0xff] %v3680_v18 }
  0x6d   :  { %434 = vmatmul.f32.vlgmr.msrb.gmra.mxu1 %v3405_v1  ;;  %554 = vmatmul.f32.vlgmr.msrb.gmra.mxu2 %v5591_v6  ;;  %5708 = vst [vmem:[#allocation32_spill] sm:$0xff] %v3677_v10  ;;  %v3683_v1 = vld [vmem:[#allocation6 + $0x218] sm:$0xff] }
  0x6e   :  { %658 = vmatpush.msra.mxu3 %v3659_v31  ;;  %586 = vmatpush.msra.mxu2 %v3664_v59  ;;  %5710 = vst [vmem:[#allocation34_spill] sm:$0xff] %v3683_v1  ;;  %v3689_v31 = vld [vmem:[#allocation6 + $0x268] sm:$0xff] }
  0x6f   :  { %574 = vmatmul.f32.vlgmr.msrb.gmra.mxu3 %v5591_v6  ;;  %675 = vmatpush.msra.mxu0 %v3671_v55  ;;  %5711 = vst [vmem:[#allocation35_spill] sm:$0xff] %v3689_v31  ;;  %v3697_v6 = vld [vmem:[#allocation6 + $0x180] sm:$0xff]  ;;  %v3706_v55 = vld [vmem:[#allocation6 + $0x58] sm:$0xff] }
  0x70   :  { %659 = vmatpush.msra.mxu3 %v3669_v51  ;;  %587 = vmatpush.msra.mxu2 %v3675_v39  ;;  %5713 = vst [vmem:[#allocation37_spill] sm:$0xff] %v3697_v6  ;;  %v3700_v51 = vld [vmem:[#allocation6 + $0x70] sm:$0xff] }
  0x71   :  { %692 = vmatpush.msra.mxu1 %v3677_v10  ;;  %676 = vmatpush.msra.mxu0 %v3683_v1  ;;  %v3708_v10 = vld [vmem:[#allocation6 + $0x200] sm:$0xff]  ;;  %v3714_v1 = vld [vmem:[#allocation6 + $0x1e8] sm:$0xff] }
  0x72   :  { %660 = vmatpush.msra.mxu3 %v3680_v18  ;;  %588 = vmatpush.msra.mxu2 %v3686_v41  ;;  %5714 = vst [vmem:[#allocation38_spill] sm:$0xff] %v3708_v10  ;;  %v3710_v18 = vld [vmem:[#allocation6 + $0x250] sm:$0xff] }
  0x73   :  { %693 = vmatpush.msra.mxu1 %v3689_v31  ;;  %5715 = vst [vmem:[#allocation39_spill] sm:$0xff] %v3710_v18  ;;  %v3717_v31 = vld [vmem:[#allocation6 + $0x40] sm:$0xff]  ;;  %677 = vmatpush.msra.mxu0 %v3708_v10  ;;  %v3736_v10 = vld [vmem:[#allocation6 + $0x1d0] sm:$0xff] }
  0x74   :  { %661 = vmatpush.msra.mxu3 %v3691_v16  ;;  %396 = vmatmul.f32.gmra.mxu0 %v3430_v15  ;;  %5716 = vst [vmem:[#allocation40_spill] sm:$0xff] %v3714_v1  ;;  %v3720_v16 = vld [vmem:[#allocation6 + $0x238] sm:$0xff] }
  0x75   :  { %437 = vmatmul.f32.gmra.mxu1 %v3430_v15  ;;  %589 = vmatpush.msra.mxu2 %v3700_v51  ;;  %v3724_v15 = vld [vmem:[#allocation6 + $0x28] sm:$0xff] }
  0x76   :  { %662 = vmatpush.msra.mxu3 %v3697_v6  ;;  %694 = vmatpush.msra.mxu1 %v3710_v18  ;;  %v3730_v6 = vld [vmem:[#allocation6 + $0x10] sm:$0xff]  ;;  %v3738_v18 = vld [vmem:[#allocation6 + $0x220] sm:$0xff] }
  0x77   :  { %663 = vmatmul.f32.vlgmr.msra.gmra.mxu3 %v5717_v22  ;;  %590 = vmatpush.msra.mxu2 %v3706_v55 }
  0x78   :  { %678 = vmatpush.msra.mxu0 %v3714_v1  ;;  %884 = vmatpush.msrb.mxu3 %v3407_v3  ;;  %v3740_v1 = vld [vmem:[#allocation6 + $0x1b8] sm:$0xff]  ;;  %v3744_v3 = vld [vmem:[#allocation6 + $0x208] sm:$0xff] }
  0x79   :  { %591 = vmatpush.msra.mxu2 %v3717_v31  ;;  %695 = vmatpush.msra.mxu1 %v3720_v16  ;;  %5718 = vst [vmem:[#allocation41_spill] sm:$0xff] %v3740_v1 }
  0x7a   :  { %885 = vmatpush.msrb.mxu3 %v3412_v7  ;;  %679 = vmatpush.msra.mxu0 %v3736_v10  ;;  %v3749_v7 = vld [vmem:[#allocation6 + $0x1f0] sm:$0xff] }
  0x7b   :  { %592 = vmatpush.msra.mxu2 %v3724_v15  ;;  %696 = vmatpush.msra.mxu1 %v3738_v18 }
  0x7c   :  { %399 = vmatmul.f32.gmra.mxu0 %v3457_v29  ;;  %886 = vmatpush.msrb.mxu3 %v3417_v11  ;;  %v3777_v11 = vld [vmem:[#allocation6 + $0x1a8] sm:$0xff] }
  0x7d   :  { %440 = vmatmul.f32.gmra.mxu1 %v3457_v29  ;;  %593 = vmatpush.msra.mxu2 %v3730_v6  ;;  %v3760_v29 = vld [vmem:[#allocation6 + $0x1a0] sm:$0xff] }
  0x7e   :  { %594 = vmatmul.f32.vlgmr.msra.gmra.mxu2 %v5717_v22  ;;  %680 = vmatpush.msra.mxu0 %v3740_v1  ;;  %v3762_v1 = vld [vmem:[#allocation6 + $0x1d8] sm:$0xff] }
  0x7f   :  { %864 = vmatpush.msrb.mxu2 %v3409_v5  ;;  %697 = vmatpush.msra.mxu1 %v3744_v3  ;;  %v3764_v5 = vld [vmem:[#allocation6 + $0x1c0] sm:$0xff] }
  0x80   :  { %887 = vmatpush.msrb.mxu3 %v3433_v17  ;;  %681 = vmatpush.msra.mxu0 %v3760_v29  ;;  %v5719_v17 = vld [vmem:[#allocation11_spill] sm:$0xff] }
  0x81   :  { %865 = vmatpush.msrb.mxu2 %v3415_v9  ;;  %698 = vmatpush.msra.mxu1 %v3749_v7  ;;  %v3768_v9 = vld [vmem:[#allocation6 + $0x188] sm:$0xff] }
  0x82   :  { %888 = vmatpush.msrb.mxu3 %v3439_v21  ;;  %682 = vmatpush.msra.mxu0 %v3768_v9  ;;  %v5721_v21 = vld [vmem:[#allocation12_spill] sm:$0xff] }
  0x83   :  { %866 = vmatpush.msrb.mxu2 %v3421_v13  ;;  %699 = vmatpush.msra.mxu1 %v3762_v1  ;;  %v3779_v13 = vld [vmem:[#allocation6 + $0x190] sm:$0xff] }
  0x84   :  { %402 = vmatmul.f32.gmra.mxu0 %v3484_v43  ;;  %889 = vmatpush.msrb.mxu3 %v3444_v25  ;;  %v5723_v25 = vld [vmem:[#allocation20_spill] sm:$0xff] }
  0x85   :  { %443 = vmatmul.f32.gmra.mxu1 %v3484_v43  ;;  %867 = vmatpush.msrb.mxu2 %v3436_v19  ;;  %v5720_v19 = vld [vmem:[#allocation10_spill] sm:$0xff] }
  0x86   :  { %700 = vmatpush.msra.mxu1 %v3764_v5  ;;  %904 = vmatpush.msrb.mxu0 %v3549_v24  ;;  %v5742_v24 = vld [vmem:[#allocation33_spill] sm:$0xff] }
  0x87   :  { %868 = vmatpush.msrb.mxu2 %v3442_v23  ;;  %890 = vmatpush.msrb.mxu3 %v3460_v30  ;;  %v5722_v23 = vld [vmem:[#allocation14_spill] sm:$0xff]  ;;  %v5725_v30 = vld [vmem:[#allocation16_spill] sm:$0xff] }
  0x88   :  { %905 = vmatpush.msrb.mxu0 %v3558_v32  ;;  %701 = vmatpush.msra.mxu1 %v3777_v11  ;;  %v3875_v32 = vld [vmem:[%s5568_s3 + $0x3] sm:$0x7] }
  0x89   :  { %869 = vmatpush.msrb.mxu2 %v3448_v27  ;;  %891 = vmatpush.msrb.mxu3 %v3466_v34  ;;  %v5724_v27 = vld [vmem:[#allocation13_spill] sm:$0xff]  ;;  %v5727_v34 = vld [vmem:[#allocation15_spill] sm:$0xff] }
  0x8a   :  { %702 = vmatpush.msra.mxu1 %v3779_v13  ;;  %906 = vmatpush.msrb.mxu0 %v3582_v47  ;;  %v3887_v47 = vperm.slane %v3875_v32, 0 }
  0x8b   :  { %870 = vmatpush.msrb.mxu2 %v3463_v33  ;;  %892 = vmatpush.msrb.mxu3 %v3471_v38  ;;  %v5726_v33 = vld [vmem:[#allocation21_spill] sm:$0xff]  ;;  %v5729_v38 = vld [vmem:[#allocation24_spill] sm:$0xff] }
  0x8c   :  { %405 = vmatmul.f32.gmra.mxu0 %v3511_v57  ;;  %972 = vmatpush.msrb.mxu1 %v3544_v20  ;;  %v5740_v20 = vld [vmem:[#allocation35_spill] sm:$0xff] }
  0x8d   :  { %446 = vmatmul.f32.gmra.mxu1 %v3511_v57  ;;  %907 = vmatpush.msrb.mxu0 %v3590_v53  ;;  %v5736_v57 = vld [vmem:[#allocation29_spill] sm:$0xff] }
  0x8e   :  { %871 = vmatpush.msrb.mxu2 %v3469_v37  ;;  %973 = vmatpush.msrb.mxu1 %v3552_v28  ;;  %v5728_v37 = vld [vmem:[#allocation18_spill] sm:$0xff]  ;;  %v5743_v28 = vld [vmem:[#allocation39_spill] sm:$0xff] }
  0x8f   :  { %908 = vmatpush.msrb.mxu0 %v3601_v61  ;;  %893 = vmatpush.msrb.mxu3 %v3487_v44  ;;  %v5730_v44 = vld [vmem:[#allocation17_spill] sm:$0xff]  ;;  %v5751_v61 = vld [vmem:[#allocation40_spill] sm:$0xff] }
  0x90   :  { %872 = vmatpush.msrb.mxu2 %v3475_v40  ;;  %974 = vmatpush.msrb.mxu1 %v3560_v35  ;;  %v5745_v35 = vld [vmem:[#allocation36_spill] sm:$0xff] }
  0x91   :  { %909 = vmatpush.msrb.mxu0 %v3627_v26  ;;  %894 = vmatpush.msrb.mxu3 %v3493_v48  ;;  %v5732_v48 = vld [vmem:[#allocation27_spill] sm:$0xff] }
  0x92   :  { %873 = vmatpush.msrb.mxu2 %v3490_v46  ;;  %975 = vmatpush.msrb.mxu1 %v3572_v42  ;;  %v5731_v46 = vld [vmem:[#allocation23_spill] sm:$0xff]  ;;  %v5747_v42 = vld [vmem:[#allocation37_spill] sm:$0xff] }
  0x93   :  { %910 = vmatpush.msrb.mxu0 %v3635_v63  ;;  %895 = vmatpush.msrb.mxu3 %v3498_v52  ;;  %v5734_v52 = vld [vmem:[#allocation26_spill] sm:$0xff]  ;;  %v5752_v63 = vld [vmem:[#allocation41_spill] sm:$0xff] }
  0x94   :  { %408 = vmatmul.f32.gmra.mxu0 %v3539_v14  ;;  %874 = vmatpush.msrb.mxu2 %v3496_v50  ;;  %v5733_v50 = vld [vmem:[#allocation19_spill] sm:$0xff] }
  0x95   :  { %449 = vmatmul.f32.gmra.mxu1 %v3539_v14  ;;  %911 = vmatpush.msrb.mxu0 %v3646_v36  ;;  %v5746_v36 = vld [vmem:[#allocation34_spill] sm:$0xff] }
  0x96   :  { %976 = vmatpush.msrb.mxu1 %v3585_v49  ;;  %875 = vmatpush.msrb.mxu2 %v3502_v54  ;;  %v5735_v54 = vld [vmem:[#allocation22_spill] sm:$0xff] }
  0x97   :  { %912 = vmatpush.msrb.mxu0 %v3664_v59  ;;  %896 = vmatpush.msrb.mxu3 %v3514_v58  ;;  %v5737_v58 = vld [vmem:[#allocation32_spill] sm:$0xff]  ;;  %v5748_v49 = vld [vmem:[#allocation38_spill] sm:$0xff] }
  0x98   :  { %977 = vmatpush.msrb.mxu1 %v3595_v56  ;;  %876 = vmatpush.msrb.mxu2 %v3517_v60  ;;  %v5738_v60 = vld [vmem:[#allocation25_spill] sm:$0xff] }
  0x99   :  { %913 = vmatpush.msrb.mxu0 %v3675_v39  ;;  %897 = vmatpush.msrb.mxu3 %v3520_v62  ;;  %v114_v39 = vld [vmem:[%s5568_s3] sm:$0x7] }
  0x9a   :  { %877 = vmatpush.msrb.mxu2 %v3523_v0  ;;  %978 = vmatpush.msrb.mxu1 %v3606_v2  ;;  %v3909_v2 = vperm.slane %v114_v39, 0 }
  0x9b   :  { %914 = vmatpush.msrb.mxu0 %v3686_v41  ;;  %898 = vmatpush.msrb.mxu3 %v3525_v4  ;;  %v5739_v4 = vld [vmem:[#allocation30_spill] sm:$0xff] }
  0x9c   :  { %411 = vmatmul.f32.gmra.mxu0 %v3580_v45  ;;  %878 = vmatpush.msrb.mxu2 %v3529_v8  ;;  %5753 = vst [vmem:[#allocation12_spill] sm:$0xff] %v3909_v2 }
  0x9d   :  { %452 = vmatmul.f32.gmra.mxu1 %v3580_v45  ;;  %915 = vmatpush.msrb.mxu0 %v3700_v51  ;;  %v3884_v45 = vperm.slane %v114_v39, 2 }
  0x9e   :  { %979 = vmatpush.msrb.mxu1 %v3617_v12  ;;  %879 = vmatpush.msrb.mxu2 %v5719_v17 }
  0x9f   :  { %916 = vmatpush.msrb.mxu0 %v3706_v55  ;;  %899 = vmatpush.msrb.mxu3 %v5720_v19 }
  0xa0   :  { %992 = vmatpush.msra.mxu2 %v5721_v21  ;;  %980 = vmatpush.msrb.mxu1 %v5726_v33 }
  0xa1   :  { %917 = vmatpush.msrb.mxu0 %v3717_v31  ;;  %1012 = vmatpush.msra.mxu3 %v5722_v23  ;;  %v5744_v31 = vld [vmem:[#allocation31_spill] sm:$0xff] }
  0xa2   :  { %993 = vmatpush.msra.mxu2 %v5724_v27  ;;  %981 = vmatpush.msrb.mxu1 %v5729_v38 }
  0xa3   :  { %918 = vmatpush.msrb.mxu0 %v3724_v15  ;;  %1013 = vmatpush.msra.mxu3 %v5725_v30 }
  0xa4   :  { %414 = vmatmul.f32.gmra.mxu0 %v5723_v25  ;;  %994 = vmatpush.msra.mxu2 %v5727_v34 }
  0xa5   :  { %455 = vmatmul.f32.gmra.mxu1 %v5723_v25  ;;  %919 = vmatpush.msrb.mxu0 %v3730_v6  ;;  %v3911_v6 = vperm.slane %v114_v39, 1 }
  0xa6   :  { %1014 = vmatpush.msra.mxu3 %v5728_v37  ;;  %995 = vmatpush.msra.mxu2 %v5730_v44 }
  0xa7   :  { %982 = vmatpush.msrb.mxu1 %v5732_v48  ;;  %5754 = vst [vmem:[#allocation14_spill] sm:$0xff] %v3911_v6 }
  0xa8   :  { %1015 = vmatpush.msra.mxu3 %v5731_v46  ;;  %996 = vmatpush.msra.mxu2 %v5733_v50 }
  0xa9   :  { %v3843_v40 = vpop.f32.mrf.mxu0  ;;  %v3845_v43 = vpop.f32.mrf.mxu1  ;;  %983 = vmatpush.msrb.mxu1 %v5736_v57 }
  0xaa   :  { %1016 = vmatpush.msra.mxu3 %v5734_v52  ;;  %997 = vmatpush.msra.mxu2 %v5735_v54 }
  0xab   :  { %984 = vmatpush.msrb.mxu1 %v5739_v4 }
  0xac   :  { %683 = vmatmul.f32.vlgmr.msra.gmra.mxu0 %v5717_v22  ;;  %1017 = vmatpush.msra.mxu3 %v5737_v58 }
  0xad   :  { %703 = vmatmul.f32.vlgmr.msra.gmra.mxu1 %v5717_v22  ;;  %998 = vmatpush.msra.mxu2 %v5738_v60  ;;  %v5741_v22 = vld [vmem:[#allocation28_spill] sm:$0xff] }
  0xae   :  { %1018 = vmatpush.msra.mxu3 %v5740_v20  ;;  %985 = vmatpush.msrb.mxu1 %v5742_v24 }
  0xaf   :  { %999 = vmatpush.msra.mxu2 %v5741_v22 }
  0xb0   :  { %v3858_v62 = vpop.f32.mrf.mxu2  ;;  %v3860_v0 = vpop.f32.mrf.mxu3  ;;  %1019 = vmatpush.msra.mxu3 %v5743_v28  ;;  %986 = vmatpush.msrb.mxu1 %v5745_v35 }
  0xb1   :  { %v3863_v8 = vpop.f32.mrf.mxu0  ;;  %v3865_v14 = vpop.f32.mrf.mxu1  ;;  %1000 = vmatpush.msra.mxu2 %v5744_v31 }
  0xb2   :  { %1020 = vmatpush.msra.mxu3 %v3720_v16  ;;  %987 = vmatpush.msrb.mxu1 %v5747_v42 }
  0xb3   :  { %1001 = vmatpush.msra.mxu2 %v5746_v36 }
  0xb4   :  { %1021 = vmatpush.msra.mxu3 %v3738_v18 }
  0xb5   :  { %1002 = vmatpush.msra.mxu2 %v5748_v49 }
  0xb6   :  { %1022 = vmatpush.msra.mxu3 %v3744_v3 }
  0xb7   :  { %1003 = vmatpush.msra.mxu2 %v5751_v61  ;;  %v181_v61 = vadd.f32 %v3845_v43, %v3911_v6 }
  0xb8   :  { %v224_v51 = vpop.f32.mrf.mxu2  ;;  %v356_v53 = vpop.f32.mrf.mxu3  ;;  %1023 = vmatpush.msra.mxu3 %v3749_v7 }
  0xb9   :  { %v3892_v16 = vadd.f32 %v224_v51, %v3884_v45  ;;  %v3895_v55 = vadd.f32 %v356_v53, %v3887_v47  ;;  %v3897_v56 = vpop.f32.mrf.mxu0  ;;  %v3899_v59 = vpop.f32.mrf.mxu1  ;;  %1004 = vmatpush.msra.mxu2 %v3736_v10  ;;  %v140_v53 = vadd.f32 %v3843_v40, %v3909_v2 }
  0xba   :  { %5749 = vst [vmem:[#allocation11_spill] sm:$0xff] %v3897_v56  ;;  %1024 = vmatpush.msra.mxu3 %v3762_v1 }
  0xbb   :  { %5750 = vst [vmem:[#allocation10_spill] sm:$0xff] %v3899_v59  ;;  %1005 = vmatpush.msra.mxu2 %v5752_v63  ;;  %v3991_v63 = vperm.slane %v3875_v32, 1 }
  0xbc   :  { %1025 = vmatpush.msra.mxu3 %v3764_v5 }
  0xbd   :  { %1006 = vmatpush.msra.mxu2 %v3760_v29 }
  0xbe   :  { %1026 = vmatpush.msra.mxu3 %v3777_v11 }
  0xbf   :  { %1007 = vmatpush.msra.mxu2 %v3768_v9 }
  0xc0   :  { %v227_v12 = vpop.f32.mrf.mxu2  ;;  %v359_v18 = vpop.f32.mrf.mxu3  ;;  %1027 = vmatpush.msra.mxu3 %v3779_v13 }
  0xc1   :  { %v3914_v26 = vadd.f32 %v227_v12, %v3884_v45  ;;  %v3917_v41 = vadd.f32 %v359_v18, %v3887_v47  ;;  %v148_v10 = vpop.f32.mrf.mxu0  ;;  %v189_v1 = vpop.f32.mrf.mxu1  ;;  %v3994_v18 = vperm.slane %v3875_v32, 2 }
  0xc2   :  { %v3922_v15 = vadd.f32 %v148_v10, %v3909_v2  ;;  %v3925_v3 = vadd.f32 %v189_v1, %v3911_v6 }
  0xc3   :  { %5755 = vst [vmem:[#allocation20_spill] sm:$0xff] %v3914_v26 }
  0xc4   :  { %5756 = vst [vmem:[#allocation13_spill] sm:$0xff] %v3917_v41  ;;  %v4222_v41 = vld [vmem:[#allocation6 + $0x10] sm:$0xff] }
  0xc5   :  { %5757 = vst [vmem:[#allocation16_spill] sm:$0xff] %v3922_v15  ;;  %v4218_v15 = vld [vmem:[#allocation6] sm:$0xff] }
  0xc6   :  { %5758 = vst [vmem:[#allocation21_spill] sm:$0xff] %v3925_v3  ;;  %v4213_v3 = vld [vmem:[#allocation6 + $0x28] sm:$0xff] }
  0xc7   :  { %5794 = vst [vmem:[#allocation53_spill] sm:$0xff] %v4213_v3 }
  0xc8   :  { %v230_v7 = vpop.f32.mrf.mxu2  ;;  %v362_v29 = vpop.f32.mrf.mxu3  ;;  %5796 = vst [vmem:[#allocation55_spill] sm:$0xff] %v4222_v41 }
  0xc9   :  { %v3929_v5 = vadd.f32 %v230_v7, %v3884_v45  ;;  %v3932_v17 = vadd.f32 %v362_v29, %v3887_v47  ;;  %v151_v19 = vpop.f32.mrf.mxu0  ;;  %v192_v11 = vpop.f32.mrf.mxu1 }
  0xca   :  { %v3935_v9 = vadd.f32 %v151_v19, %v3909_v2  ;;  %v3938_v21 = vadd.f32 %v192_v11, %v3911_v6 }
  0xcb   :  { %5759 = vst [vmem:[#allocation15_spill] sm:$0xff] %v3929_v5  ;;  %v4211_v5 = vld [vmem:[#allocation6 + $0x20] sm:$0xff] }
  0xcc   :  { %5760 = vst [vmem:[#allocation18_spill] sm:$0xff] %v3932_v17  ;;  %v4203_v17 = vld [vmem:[#allocation6 + $0x40] sm:$0xff] }
  0xcd   :  { %5761 = vst [vmem:[#allocation24_spill] sm:$0xff] %v3935_v9  ;;  %v4192_v9 = vld [vmem:[#allocation6 + $0x58] sm:$0xff] }
  0xce   :  { %5762 = vst [vmem:[#allocation17_spill] sm:$0xff] %v3938_v21  ;;  %v4190_v21 = vld [vmem:[#allocation6 + $0x50] sm:$0xff] }
  0xcf   :  { %5789 = vst [vmem:[#allocation48_spill] sm:$0xff] %v4190_v21 }
  0xd0   :  { %v233_v23 = vpop.f32.mrf.mxu2  ;;  %v365_v25 = vpop.f32.mrf.mxu3  ;;  %5790 = vst [vmem:[#allocation49_spill] sm:$0xff] %v4192_v9 }
  0xd1   :  { %v3941_v13 = vadd.f32 %v233_v23, %v3884_v45  ;;  %v3944_v27 = vadd.f32 %v365_v25, %v3887_v47  ;;  %v154_v30 = vpop.f32.mrf.mxu0  ;;  %v195_v33 = vpop.f32.mrf.mxu1  ;;  %v354_v25 = vadd.f32 %v3860_v0, %v3887_v47  ;;  %5792 = vst [vmem:[#allocation51_spill] sm:$0xff] %v4203_v17 }
  0xd2   :  { %v3947_v34 = vadd.f32 %v154_v30, %v3909_v2  ;;  %v3950_v37 = vadd.f32 %v195_v33, %v3911_v6  ;;  %5793 = vst [vmem:[#allocation52_spill] sm:$0xff] %v4211_v5 }
  0xd3   :  { %5763 = vst [vmem:[#allocation23_spill] sm:$0xff] %v3941_v13  ;;  %v4188_v13 = vld [vmem:[#allocation6 + $0x48] sm:$0xff] }
  0xd4   :  { %5764 = vst [vmem:[#allocation27_spill] sm:$0xff] %v3944_v27 }
  0xd5   :  { %5765 = vst [vmem:[#allocation19_spill] sm:$0xff] %v3947_v34  ;;  %v4183_v34 = vld [vmem:[#allocation6 + $0x70] sm:$0xff] }
  0xd6   :  { %5766 = vst [vmem:[#allocation26_spill] sm:$0xff] %v3950_v37  ;;  %v4173_v37 = vld [vmem:[#allocation6 + $0x88] sm:$0xff] }
  0xd8   :  { %v236_v38 = vpop.f32.mrf.mxu2  ;;  %v368_v44 = vpop.f32.mrf.mxu3 }
  0xd9   :  { %v3953_v46 = vadd.f32 %v236_v38, %v3884_v45  ;;  %v3956_v48 = vadd.f32 %v368_v44, %v3887_v47  ;;  %v157_v50 = vpop.f32.mrf.mxu0 }
  0xda   :  { %v198_v52 = vpop.f32.mrf.mxu1  ;;  %v3959_v54 = vadd.f32 %v157_v50, %v3909_v2 }
  0xdb   :  { %5767 = vst [vmem:[#allocation22_spill] sm:$0xff] %v3953_v46  ;;  %v3962_v57 = vadd.f32 %v198_v52, %v3911_v6 }
  0xdc   :  { %5768 = vst [vmem:[#allocation29_spill] sm:$0xff] %v3956_v48 }
  0xdd   :  { %5769 = vst [vmem:[#allocation32_spill] sm:$0xff] %v3959_v54  ;;  %v4146_v54 = vld [vmem:[#allocation6 + $0xd0] sm:$0xff] }
  0xde   :  { %5770 = vst [vmem:[#allocation25_spill] sm:$0xff] %v3962_v57 }
  0xe0   :  { %v239_v58 = vpop.f32.mrf.mxu2 }
  0xe1   :  { %v3965_v60 = vadd.f32 %v239_v58, %v3884_v45  ;;  %v160_v20 = vpop.f32.mrf.mxu0 }
  0xe2   :  { %v371_v4 = vpop.f32.mrf.mxu3  ;;  %v3971_v24 = vadd.f32 %v160_v20, %v3909_v2  ;;  %v201_v28 = vpop.f32.mrf.mxu1 }
  0xe3   :  { %5771 = vst [vmem:[#allocation30_spill] sm:$0xff] %v3965_v60  ;;  %v3968_v22 = vadd.f32 %v371_v4, %v3887_v47  ;;  %v3974_v31 = vadd.f32 %v201_v28, %v3911_v6  ;;  %v4140_v60 = vld [vmem:[#allocation6 + $0xc0] sm:$0xff] }
  0xe4   :  { %5773 = vst [vmem:[#allocation28_spill] sm:$0xff] %v3971_v24  ;;  %v4135_v24 = vld [vmem:[#allocation6 + $0xe0] sm:$0xff] }
  0xe5   :  { %5772 = vst [vmem:[#allocation35_spill] sm:$0xff] %v3968_v22 }
  0xe6   :  { %5774 = vst [vmem:[#allocation33_spill] sm:$0xff] %v3974_v31 }
  0xe8   :  { %v242_v35 = vpop.f32.mrf.mxu2 }
  0xe9   :  { %v3977_v36 = vadd.f32 %v242_v35, %v3884_v45  ;;  %v3979_v42 = vpop.f32.mrf.mxu0 }
  0xea   :  { %v374_v39 = vpop.f32.mrf.mxu3  ;;  %v3984_v51 = vpop.f32.mrf.mxu1 }
  0xeb   :  { %5775 = vst [vmem:[#allocation39_spill] sm:$0xff] %v3977_v36  ;;  %v3982_v49 = vadd.f32 %v374_v39, %v3887_v47 }
  0xed   :  { %5776 = vst [vmem:[#allocation31_spill] sm:$0xff] %v3982_v49  ;;  %v222_v49 = vadd.f32 %v3858_v62, %v3884_v45 }
  0xf0   :  { %v555_v12 = vpop.f32.mrf.mxu2 }
  0xf1   :  { %v710_v10 = vadd.f32 %v555_v12, %v140_v53  ;;  %v397_v7 = vpop.f32.mrf.mxu0 }
  0xf2   :  { %v575_v1 = vpop.f32.mrf.mxu3  ;;  %v3997_v19 = vadd.f32 %v397_v7, %v3991_v63  ;;  %v438_v11 = vpop.f32.mrf.mxu1 }
  0xf3   :  { %v730_v29 = vadd.f32 %v575_v1, %v181_v61  ;;  %v3088_v23 = vmul.f32 -1.442695, %v710_v10  ;;  %v4000_v40 = vadd.f32 %v438_v11, %v3994_v18  ;;  %v4019_v1 = vld [vmem:[%s5569_s4] ss:$0 sm:$0xff] }
  0xf5   :  { %v3089_v43 = vmul.f32 -1.442695, %v730_v29  ;;  %3142 = vpow2.f32 %v3088_v23 }
  0xf7   :  { %3144 = vpow2.f32 %v3089_v43 }
  0xf9   :  { %v400_v30 = vpop.f32.mrf.mxu0 }
  0xfa   :  { %v664_v32 = vpop.f32.mrf.mxu3  ;;  %v4005_v33 = vadd.f32 %v400_v30, %v3991_v63  ;;  %v441_v38 = vpop.f32.mrf.mxu1 }
  0xfb   :  { %v3143_v44 = vpop.eup %3142  ;;  %v763_v50 = vadd.f32 %v664_v32, %v354_v25  ;;  %v4008_v52 = vadd.f32 %v441_v38, %v3994_v18 }
  0xfc   :  { %5777 = vst [vmem:[#allocation36_spill] sm:$0xff] %v4005_v33  ;;  %v714_v4 = vadd.f32 1.0, %v3143_v44 }
  0xfd   :  { %5778 = vst [vmem:[#allocation34_spill] sm:$0xff] %v4008_v52  ;;  %v3145_v58 = vpop.eup %3144  ;;  %v3090_v28 = vmul.f32 -1.442695, %v763_v50  ;;  %v4220_v52 = vld [vmem:[#allocation6 + $0x8] sm:$0xff] }
  0xfe   :  { %v734_v20 = vadd.f32 1.0, %v3145_v58  ;;  %3146 = vrcp.f32 %v714_v4  ;;  %v726_v11 = vand.u32 2147483648, %v714_v4  ;;  %v724_v32 = vand.u32 2147483647, %v714_v4  ;;  %5795 = vst [vmem:[#allocation54_spill] sm:$0xff] %v4220_v52 }
  0xff   :  { %vm720_vm1 = vweird.f32 %v714_v4 }
 0x100   :  { %3148 = vrcp.f32 %v734_v20  ;;  %vm725_vm3 = vcmp.eq.f32.partialorder %v724_v32, 8.507059e+37  ;;  %vm740_vm5 = vweird.f32 %v734_v20 }
 0x101   :  { %v403_v35 = vpop.f32.mrf.mxu0  ;;  %3150 = vpow2.f32 %v3090_v28  ;;  %v595_v29 = vpop.f32.mrf.mxu2 }
 0x102   :  { %v4011_v0 = vadd.f32 %v403_v35, %v3991_v63  ;;  %v444_v47 = vpop.f32.mrf.mxu1  ;;  %v753_v58 = vadd.f32 %v4019_v1, %v595_v29 }
 0x103   :  { %v4014_v39 = vadd.f32 %v444_v47, %v3994_v18  ;;  %v727_v47 = vor.u32 1.1754944e-38, %v726_v11 }
 0x104   :  { %5779 = vst [vmem:[#allocation37_spill] sm:$0xff] %v4011_v0  ;;  %v3147_v53 = vpop.eup %3146  ;;  %v4199_v0 = vld [vmem:[#allocation6 + $0x30] sm:$0xff] }
 0x105   :  { %5780 = vst [vmem:[#allocation38_spill] sm:$0xff] %v4014_v39  ;;  %v716_v12 = vmul.f32 %v3147_v53, %v714_v4  ;;  %vm721_vm0 = vweird.f32 %v3147_v53 }
 0x106   :  { %v3149_v61 = vpop.eup %3148  ;;  %vm722_vm2 = vmor %vm720_vm1, %vm721_vm0 }
 0x107   :  { %v717_v10 = vsub.f32 1.0, %v716_v12  ;;  %v736_v7 = vmul.f32 %v3149_v61, %v734_v20  ;;  %v3151_v23 = vpop.eup %3150  ;;  %vm741_vm4 = vweird.f32 %v3149_v61 }
 0x108   :  { %v767_v35 = vadd.f32 1.0, %v3151_v23  ;;  %v744_v23 = vand.u32 2147483647, %v734_v20  ;;  %vm742_vm6 = vmor %vm740_vm5, %vm741_vm4 }
 0x109   :  { %v406_v43 = vpop.f32.mrf.mxu0  ;;  %v718_v25 = vmul.f32 %v3147_v53, %v717_v10  ;;  %v737_v28 = vsub.f32 1.0, %v736_v7 }
 0x10a   :  { %v4022_v30 = vadd.f32 %v406_v43, %v3991_v63  ;;  %v447_v38 = vpop.f32.mrf.mxu1  ;;  %3152 = vrcp.f32 %v767_v35  ;;  %vm745_vm7 = vcmp.eq.f32.partialorder %v744_v23, 8.507059e+37  ;;  %v779_v23 = vand.u32 2147483648, %v767_v35 }
 0x10b   :  { %v4025_v44 = vadd.f32 %v447_v38, %v3994_v18  ;;  %v719_v50 = vadd.f32 %v3147_v53, %v718_v25  ;;  %v738_v36 = vmul.f32 %v3149_v61, %v737_v28  ;;  %vm773_vm9 = vweird.f32 %v767_v35 }
 0x10c   :  { %5781 = vst [vmem:[#allocation40_spill] sm:$0xff] %v4022_v30 }
 0x10d   :  { %5782 = vst [vmem:[#allocation41_spill] sm:$0xff] %v4025_v44  ;;  %v723_v12 = vsel %vm722_vm2, %v3147_v53, %v719_v50  ;;  %v739_v29 = vadd.f32 %v3149_v61, %v738_v36  ;;  %v746_v53 = vand.u32 2147483648, %v734_v20 }
 0x10e   :  { %v728_v10 = vsel %vm725_vm3, %v727_v47, %v723_v12 }
 0x10f   :  { %v754_v43 = vmul.f32 %v753_v58, %v728_v10  ;;  %v743_v62 = vsel %vm742_vm6, %v3149_v61, %v739_v29  ;;  %v747_v32 = vor.u32 1.1754944e-38, %v746_v53 }
 0x110   :  { %v3153_v11 = vpop.eup %3152 }
 0x111   :  { %v755_v31 = vadd.f32 %v754_v43, %v222_v49  ;;  %v409_v38 = vpop.f32.mrf.mxu0  ;;  %v769_v50 = vmul.f32 %v3153_v11, %v767_v35  ;;  %v748_v36 = vsel %vm745_vm7, %v747_v32, %v743_v62  ;;  %vm774_vm8 = vweird.f32 %v3153_v11 }
 0x112   :  { %v4031_v25 = vadd.f32 %v409_v38, %v3991_v63  ;;  %v450_v4 = vpop.f32.mrf.mxu1  ;;  %v777_v62 = vand.u32 2147483647, %v767_v35  ;;  %v395_v32 = vadd.f32 %v3979_v42, %v3991_v63  ;;  %vm775_vm10 = vmor %vm773_vm9, %vm774_vm8  ;;  %v436_v35 = vadd.f32 %v3984_v51, %v3994_v18 }
 0x113   :  { %3154 = vtanh.f32 %v755_v31  ;;  %v4034_v7 = vadd.f32 %v450_v4, %v3994_v18  ;;  %v770_v10 = vsub.f32 1.0, %v769_v50 }
 0x114   :  { %5783 = vst [vmem:[#allocation42_spill] sm:$0xff] %v4031_v25  ;;  %vm778_vm11 = vcmp.eq.f32.partialorder %v777_v62, 8.507059e+37  ;;  %v4151_v25 = vld [vmem:[#allocation6 + $0xb0] sm:$0xff] }
 0x115   :  { %5784 = vst [vmem:[#allocation43_spill] sm:$0xff] %v4034_v7  ;;  %v771_v61 = vmul.f32 %v3153_v11, %v770_v10  ;;  %v4149_v7 = vld [vmem:[#allocation6 + $0xa8] sm:$0xff] }
 0x117   :  { %v772_v53 = vadd.f32 %v3153_v11, %v771_v61 }
 0x119   :  { %v3155_v45 = vpop.eup %3154  ;;  %v412_v49 = vpop.f32.mrf.mxu0  ;;  %v776_v50 = vsel %vm775_vm10, %v3153_v11, %v772_v53 }
 0x11a   :  { %v757_v58 = vsub.f32 0.0, %v3155_v45  ;;  %v4037_v28 = vadd.f32 %v412_v49, %v3991_v63  ;;  %v453_v31 = vpop.f32.mrf.mxu1 }
 0x11b   :  { %v4040_v47 = vadd.f32 %v453_v31, %v3994_v18 }
 0x11c   :  { %5785 = vst [vmem:[#allocation44_spill] sm:$0xff] %v4037_v28  ;;  %v758_v12 = vmul.f32 %v757_v58, %v748_v36  ;;  %v780_v36 = vor.u32 1.1754944e-38, %v779_v23 }
 0x11d   :  { %5786 = vst [vmem:[#allocation45_spill] sm:$0xff] %v4040_v47  ;;  %v4137_v47 = vld [vmem:[#allocation6 + $0xe8] sm:$0xff] }
 0x11e   :  { %v4042_v43 = vadd.f32 %v3155_v45, %v758_v12  ;;  %v4060_v45 = vld [vmem:[%s5569_s4 + $0x1] ss:$0 sm:$0xff] }
 0x120   :  { %813 = vst [vmem:[%s5570_s5] sm:$0xff] %v4042_v43  ;;  %880 = vmatmul.f32.vlgmr.msrb.gmra.mxu2 %v4042_v43  ;;  %900 = vmatmul.f32.vlgmr.msrb.gmra.mxu3 %v4042_v43 }
 0x121   :  { %920 = vmatmul.f32.vlgmr.msrb.gmra.mxu0 %v4042_v43  ;;  %v415_v20 = vpop.f32.mrf.mxu0 }
 0x122   :  { %v4052_v38 = vadd.f32 %v415_v20, %v3991_v63  ;;  %v456_v4 = vpop.f32.mrf.mxu1  ;;  %v781_v20 = vsel %vm778_vm11, %v780_v36, %v776_v50  ;;  %v4078_v36 = vld [vmem:[#allocation6 + $0x170] sm:$0xff] }
 0x123   :  { %v4055_v29 = vadd.f32 %v456_v4, %v3994_v18  ;;  %1206 = vmatpush.msra.mxu1 %v4078_v36 }
 0x124   :  { %5787 = vst [vmem:[#allocation46_spill] sm:$0xff] %v4052_v38 }
 0x125   :  { %5788 = vst [vmem:[#allocation47_spill] sm:$0xff] %v4055_v29 }
 0x129   :  { %v684_v49 = vpop.f32.mrf.mxu0 }
 0x12a   :  { %v783_v58 = vadd.f32 %v684_v49, %v395_v32  ;;  %v704_v31 = vpop.f32.mrf.mxu1 }
 0x12b   :  { %v806_v12 = vadd.f32 %v4060_v45, %v704_v31 }
 0x12c   :  { %v3091_v10 = vmul.f32 -1.442695, %v783_v58 }
 0x12d   :  { %v807_v61 = vmul.f32 %v806_v12, %v781_v20  ;;  %v4080_v12 = vld [vmem:[#allocation6 + $0x178] sm:$0xff] }
 0x12e   :  { %3156 = vpow2.f32 %v3091_v10  ;;  %1226 = vmatpush.msrb.mxu2 %v4080_v12  ;;  %v4085_v10 = vld [vmem:[#allocation6 + $0x150] sm:$0xff]  ;;  %v4087_v20 = vld [vmem:[#allocation6 + $0x158] sm:$0xff] }
 0x12f   :  { %v808_v4 = vadd.f32 %v807_v61, %v436_v35  ;;  %v4089_v35 = vld [vmem:[#allocation6 + $0x160] sm:$0xff]  ;;  %1207 = vmatpush.msra.mxu1 %v4087_v20  ;;  %v4094_v61 = vld [vmem:[#allocation6 + $0x138] sm:$0xff] }
 0x130   :  { %1227 = vmatpush.msrb.mxu2 %v4089_v35 }
 0x134   :  { %v3157_v29 = vpop.eup %3156 }
 0x135   :  { %v787_v38 = vadd.f32 1.0, %v3157_v29 }
 0x137   :  { %3158 = vrcp.f32 %v787_v38  ;;  %v799_v53 = vand.u32 2147483648, %v787_v38  ;;  %v797_v62 = vand.u32 2147483647, %v787_v38  ;;  %vm793_vm13 = vweird.f32 %v787_v38 }
 0x138   :  { %3160 = vtanh.f32 %v808_v4  ;;  %v4096_v4 = vld [vmem:[#allocation6 + $0x140] sm:$0xff] }
 0x139   :  { %v800_v50 = vor.u32 1.1754944e-38, %v799_v53  ;;  %vm798_vm15 = vcmp.eq.f32.partialorder %v797_v62, 8.507059e+37  ;;  %1208 = vmatpush.msra.mxu1 %v4096_v4  ;;  %v4107_v53 = vld [vmem:[#allocation6 + $0x130] sm:$0xff] }
 0x13a   :  { %v4114_v62 = vld [vmem:[#allocation6 + $0x110] sm:$0xff] }
 0x13d   :  { %v3159_v42 = vpop.eup %3158 }
 0x13e   :  { %v789_v63 = vmul.f32 %v3159_v42, %v787_v38  ;;  %vm794_vm12 = vweird.f32 %v3159_v42  ;;  %v3161_v32 = vpop.eup %3160  ;;  %v4076_v38 = vld [vmem:[#allocation6 + $0x168] sm:$0xff] }
 0x13f   :  { %vm795_vm14 = vmor %vm793_vm13, %vm794_vm12  ;;  %v810_v51 = vsub.f32 0.0, %v3161_v32  ;;  %1186 = vmatpush.msra.mxu0 %v4076_v38 }
 0x140   :  { %v790_v11 = vsub.f32 1.0, %v789_v63  ;;  %v4103_v63 = vld [vmem:[#allocation6 + $0x120] sm:$0xff] }
 0x141   :  { %1187 = vmatpush.msra.mxu0 %v4085_v10 }
 0x142   :  { %v791_v23 = vmul.f32 %v3159_v42, %v790_v11  ;;  %v4105_v11 = vld [vmem:[#allocation6 + $0x128] sm:$0xff] }
 0x143   :  { %1188 = vmatpush.msra.mxu0 %v4094_v61  ;;  %1209 = vmatpush.msra.mxu1 %v4105_v11 }
 0x144   :  { %v792_v49 = vadd.f32 %v3159_v42, %v791_v23  ;;  %v4112_v23 = vld [vmem:[#allocation6 + $0x108] sm:$0xff] }
 0x145   :  { %1189 = vmatpush.msra.mxu0 %v4103_v63  ;;  %1210 = vmatpush.msra.mxu1 %v4114_v62 }
 0x146   :  { %v796_v18 = vsel %vm795_vm14, %v3159_v42, %v792_v49  ;;  %v4098_v42 = vld [vmem:[#allocation6 + $0x148] sm:$0xff]  ;;  %v4121_v49 = vld [vmem:[#allocation6 + $0xf0] sm:$0xff] }
 0x147   :  { %v801_v58 = vsel %vm798_vm15, %v800_v50, %v796_v18  ;;  %1228 = vmatpush.msrb.mxu2 %v4098_v42  ;;  %1190 = vmatpush.msra.mxu0 %v4112_v23  ;;  %v4123_v50 = vld [vmem:[#allocation6 + $0xf8] sm:$0xff]  ;;  %v143_v18 = vadd.f32 %v3863_v8, %v3909_v2  ;;  %v4142_v8 = vld [vmem:[#allocation6 + $0xc8] sm:$0xff] }
 0x148   :  { %v811_v31 = vmul.f32 %v810_v51, %v801_v58  ;;  %v4125_v51 = vld [vmem:[#allocation6 + $0x100] sm:$0xff]  ;;  %v184_v58 = vadd.f32 %v3865_v14, %v3911_v6  ;;  %1211 = vmatpush.msra.mxu1 %v4123_v50 }
 0x149   :  { %1229 = vmatpush.msrb.mxu2 %v4107_v53  ;;  %1191 = vmatpush.msra.mxu0 %v4121_v49 }
 0x14a   :  { %v4067_v29 = vadd.f32 %v3161_v32, %v811_v31  ;;  %v4116_v32 = vld [vmem:[#allocation6 + $0x118] sm:$0xff]  ;;  %1212 = vmatpush.msra.mxu1 %v4135_v24 }
 0x14b   :  { %1230 = vmatpush.msrb.mxu2 %v4116_v32  ;;  %v4133_v31 = vld [vmem:[#allocation6 + $0xd8] sm:$0xff] }
 0x14c   :  { %3092 = vst [vmem:[%s5570_s5 + $0x40] sm:$0xff] %v4067_v29  ;;  %988 = vmatmul.f32.vlgmr.msrb.gmra.mxu1 %v4067_v29  ;;  %1008 = vmatmul.f32.vlgmr.msra.gmra.mxu2 %v4067_v29 }
 0x14d   :  { %1028 = vmatmul.f32.vlgmr.msra.gmra.mxu3 %v4067_v29  ;;  %1231 = vmatpush.msrb.mxu2 %v4125_v51 }
 0x14e   :  { %1192 = vmatpush.msra.mxu0 %v4133_v31  ;;  %1213 = vmatpush.msra.mxu1 %v4142_v8 }
 0x14f   :  { %1232 = vmatpush.msrb.mxu2 %v4137_v47 }
 0x150   :  { %1193 = vmatpush.msra.mxu0 %v4140_v60  ;;  %1214 = vmatpush.msra.mxu1 %v4151_v25 }
 0x151   :  { %1233 = vmatpush.msrb.mxu2 %v4146_v54 }
 0x152   :  { %1194 = vmatpush.msra.mxu0 %v4149_v7 }
 0x1a3   :  { %v881_v22 = vpop.f32.mrf.mxu2  ;;  %v901_v28 = vpop.f32.mrf.mxu3 }
 0x1a4   :  { %v1036_v57 = vadd.f32 %v881_v22, %v143_v18  ;;  %v1056_v14 = vadd.f32 %v901_v28, %v184_v58  ;;  %v4155_v22 = vld [vmem:[#allocation6 + $0xb8] sm:$0xff]  ;;  %v4158_v28 = vld [vmem:[#allocation6 + $0x90] sm:$0xff]  ;;  %v4164_v58 = vld [vmem:[#allocation6 + $0xa0] sm:$0xff] }
 0x1a5   :  { %v4160_v18 = vld [vmem:[#allocation6 + $0x98] sm:$0xff]  ;;  %1234 = vmatpush.msrb.mxu2 %v4155_v22  ;;  %1195 = vmatpush.msra.mxu0 %v4158_v28 }
 0x1a6   :  { %v3093_v48 = vmul.f32 -1.442695, %v1036_v57  ;;  %v3094_v46 = vmul.f32 -1.442695, %v1056_v14  ;;  %v4167_v57 = vld [vmem:[#allocation6 + $0x78] sm:$0xff]  ;;  %v4169_v14 = vld [vmem:[#allocation6 + $0x80] sm:$0xff]  ;;  %1215 = vmatpush.msra.mxu1 %v4160_v18 }
 0x1a7   :  { %1235 = vmatpush.msrb.mxu2 %v4164_v58  ;;  %1196 = vmatpush.msra.mxu0 %v4167_v57 }
 0x1a8   :  { %3162 = vpow2.f32 %v3093_v48  ;;  %1216 = vmatpush.msra.mxu1 %v4169_v14  ;;  %v4181_v48 = vld [vmem:[#allocation6 + $0x68] sm:$0xff] }
 0x1a9   :  { %3164 = vpow2.f32 %v3094_v46  ;;  %1236 = vmatpush.msrb.mxu2 %v4173_v37  ;;  %v4179_v46 = vld [vmem:[#allocation6 + $0x60] sm:$0xff] }
 0x1aa   :  { %1197 = vmatpush.msra.mxu0 %v4179_v46  ;;  %1217 = vmatpush.msra.mxu1 %v4181_v48 }
 0x1ab   :  { %1237 = vmatpush.msrb.mxu2 %v4183_v34 }
 0x1ac   :  { %1198 = vmatpush.msra.mxu0 %v4188_v13  ;;  %1218 = vmatpush.msra.mxu1 %v4190_v21  ;;  %v4326_v21 = vld [vmem:[#allocation6 + $0x250] sm:$0xff] }
 0x1ad   :  { %1238 = vmatpush.msrb.mxu2 %v4192_v9  ;;  %v4249_v9 = vld [vmem:[#allocation6 + $0x2e0] sm:$0xff]  ;;  %5806 = vst [vmem:[#allocation63_spill] sm:$0xff] %v4326_v21 }
 0x1ae   :  { %v3163_v44 = vpop.eup %3162  ;;  %1199 = vmatpush.msra.mxu0 %v4199_v0  ;;  %5798 = vst [vmem:[#allocation57_spill] sm:$0xff] %v4249_v9 }
 0x1af   :  { %v3165_v27 = vpop.eup %3164  ;;  %v1040_v30 = vadd.f32 1.0, %v3163_v44  ;;  %v4201_v44 = vld [vmem:[#allocation6 + $0x38] sm:$0xff]  ;;  %1239 = vmatpush.msrb.mxu2 %v4203_v17 }
 0x1b0   :  { %v4194_v39 = vadd.f32 1.0, %v3165_v27  ;;  %5791 = vst [vmem:[#allocation50_spill] sm:$0xff] %v4201_v44  ;;  %1219 = vmatpush.msra.mxu1 %v4201_v44  ;;  %v4209_v27 = vld [vmem:[#allocation6 + $0x18] sm:$0xff]  ;;  %v4236_v44 = vld [vmem:[#allocation6 + $0x2f0] sm:$0xff] }
 0x1b1   :  { %3166 = vrcp.f32 %v1040_v30  ;;  %1200 = vmatpush.msra.mxu0 %v4209_v27  ;;  %1240 = vmatpush.msrb.mxu2 %v4213_v3  ;;  %v1052_v56 = vand.u32 2147483648, %v1040_v30  ;;  %vm1046_vm1 = vweird.f32 %v1040_v30 }
 0x1b2   :  { %3168 = vrcp.f32 %v4194_v39  ;;  %1220 = vmatpush.msra.mxu1 %v4211_v5  ;;  %v1050_v5 = vand.u32 2147483647, %v1040_v30  ;;  %vm1066_vm5 = vweird.f32 %v4194_v39 }
 0x1b3   :  { %1201 = vmatpush.msra.mxu0 %v4218_v15  ;;  %1241 = vmatpush.msrb.mxu2 %v4222_v41  ;;  %v4234_v41 = vld [vmem:[#allocation6 + $0x2e8] sm:$0xff] }
 0x1b4   :  { %1221 = vmatpush.msra.mxu1 %v4220_v52  ;;  %v921_v52 = vpop.f32.mrf.mxu0  ;;  %1294 = vmatpush.msrb.mxu3 %v4234_v41  ;;  %vm1051_vm3 = vcmp.eq.f32.partialorder %v1050_v5, 8.507059e+37  ;;  %v4257_v5 = vld [vmem:[#allocation6 + $0x2c0] sm:$0xff] }
 0x1b5   :  { %1508 = vmatpush.msra.mxu2 %v4076_v38  ;;  %v4238_v38 = vld [vmem:[#allocation6 + $0x2f8] sm:$0xff]  ;;  %1314 = vmatpush.msrb.mxu0 %v4236_v44 }
 0x1b6   :  { %5797 = vst [vmem:[#allocation56_spill] sm:$0xff] %v4238_v38  ;;  %1334 = vmatpush.msrb.mxu1 %v4238_v38  ;;  %v4324_v38 = vld [vmem:[#allocation6 + $0x248] sm:$0xff] }
 0x1b7   :  { %v3167_v33 = vpop.eup %3166  ;;  %1509 = vmatpush.msra.mxu2 %v4085_v10 }
 0x1b8   :  { %v4227_v26 = vpop.eup %3168  ;;  %v1042_v59 = vmul.f32 %v3167_v33, %v1040_v30  ;;  %vm1047_vm0 = vweird.f32 %v3167_v33  ;;  %v4247_v30 = vld [vmem:[#allocation6 + $0x2d8] sm:$0xff]  ;;  %1335 = vmatpush.msrb.mxu1 %v4249_v9 }
 0x1b9   :  { %v1062_v2 = vmul.f32 %v4227_v26, %v4194_v39  ;;  %1510 = vmatpush.msra.mxu2 %v4094_v61  ;;  %vm1048_vm2 = vmor %vm1046_vm1, %vm1047_vm0  ;;  %1315 = vmatpush.msrb.mxu0 %v4247_v30  ;;  %vm1067_vm4 = vweird.f32 %v4227_v26 }
 0x1ba   :  { %v1043_v6 = vsub.f32 1.0, %v1042_v59  ;;  %v1053_v59 = vor.u32 1.1754944e-38, %v1052_v56  ;;  %vm4300_vm6 = vmor %vm1066_vm5, %vm1067_vm4 }
 0x1bb   :  { %1511 = vmatpush.msra.mxu2 %v4103_v63  ;;  %v1063_v10 = vsub.f32 1.0, %v1062_v2  ;;  %1316 = vmatpush.msrb.mxu0 %v4257_v5  ;;  %v4267_v63 = vld [vmem:[#allocation6 + $0x2a0] sm:$0xff] }
 0x1bc   :  { %v1044_v3 = vmul.f32 %v3167_v33, %v1043_v6  ;;  %v1076_v6 = vadd.f32 %v4019_v1, %v921_v52 }
 0x1bd   :  { %1512 = vmatpush.msra.mxu2 %v4112_v23  ;;  %v1064_v52 = vmul.f32 %v4227_v26, %v1063_v10  ;;  %v4269_v23 = vld [vmem:[#allocation6 + $0x2a8] sm:$0xff]  ;;  %v4282_v10 = vld [vmem:[#allocation6 + $0x298] sm:$0xff] }
 0x1be   :  { %v1045_v17 = vadd.f32 %v3167_v33, %v1044_v3  ;;  %v4245_v3 = vld [vmem:[#allocation6 + $0x2d0] sm:$0xff]  ;;  %1317 = vmatpush.msrb.mxu0 %v4269_v23  ;;  %5801 = vst [vmem:[#allocation60_spill] sm:$0xff] %v4282_v10 }
 0x1bf   :  { %1295 = vmatpush.msrb.mxu3 %v4245_v3  ;;  %1513 = vmatpush.msra.mxu2 %v4121_v49  ;;  %v4280_v49 = vld [vmem:[#allocation6 + $0x290] sm:$0xff] }
 0x1c0   :  { %v1049_v61 = vsel %vm1048_vm2, %v3167_v33, %v1045_v17  ;;  %v4255_v17 = vld [vmem:[#allocation6 + $0x2b8] sm:$0xff]  ;;  %v4259_v33 = vld [vmem:[#allocation6 + $0x2c8] sm:$0xff]  ;;  %1318 = vmatpush.msrb.mxu0 %v4280_v49 }
 0x1c1   :  { %v1054_v56 = vsel %vm1051_vm3, %v1053_v59, %v1049_v61  ;;  %5799 = vst [vmem:[#allocation58_spill] sm:$0xff] %v4259_v33  ;;  %1296 = vmatpush.msrb.mxu3 %v4255_v17  ;;  %1336 = vmatpush.msrb.mxu1 %v4259_v33  ;;  %v4271_v59 = vld [vmem:[#allocation6 + $0x2b0] sm:$0xff]  ;;  %v4313_v33 = vld [vmem:[#allocation6 + $0x268] sm:$0xff] }
 0x1c2   :  { %v1077_v2 = vmul.f32 %v1076_v6, %v1054_v56  ;;  %5800 = vst [vmem:[#allocation59_spill] sm:$0xff] %v4271_v59  ;;  %1514 = vmatpush.msra.mxu2 %v4133_v31  ;;  %v1065_v6 = vadd.f32 %v4227_v26, %v1064_v52  ;;  %v1072_v31 = vand.u32 2147483648, %v4194_v39  ;;  %v4291_v61 = vld [vmem:[#allocation6 + $0x270] sm:$0xff]  ;;  %v4293_v56 = vld [vmem:[#allocation6 + $0x278] sm:$0xff]  ;;  %v1070_v52 = vand.u32 2147483647, %v4194_v39 }
 0x1c3   :  { %1297 = vmatpush.msrb.mxu3 %v4267_v63  ;;  %1337 = vmatpush.msrb.mxu1 %v4271_v59  ;;  %v4309_v59 = vld [vmem:[#allocation6 + $0x258] sm:$0xff]  ;;  %5805 = vst [vmem:[#allocation62_spill] sm:$0xff] %v4313_v33 }
 0x1c4   :  { %v1078_v1 = vadd.f32 %v1077_v2, %v3892_v16  ;;  %v4278_v16 = vld [vmem:[#allocation6 + $0x288] sm:$0xff]  ;;  %1515 = vmatpush.msra.mxu2 %v4140_v60  ;;  %v4295_v2 = vld [vmem:[#allocation6 + $0x280] sm:$0xff]  ;;  %1319 = vmatpush.msrb.mxu0 %v4293_v56  ;;  %v1069_v39 = vsel %vm4300_vm6, %v4227_v26, %v1065_v6  ;;  %vm1071_vm7 = vcmp.eq.f32.partialorder %v1070_v52, 8.507059e+37  ;;  %v4335_v6 = vld [vmem:[#allocation6 + $0x230] sm:$0xff] }
 0x1c5   :  { %1298 = vmatpush.msrb.mxu3 %v4278_v16  ;;  %1338 = vmatpush.msrb.mxu1 %v4282_v10  ;;  %5802 = vst [vmem:[#allocation61_spill] sm:$0xff] %v4295_v2  ;;  %v4344_v52 = vld [vmem:[#allocation6 + $0x210] sm:$0xff] }
 0x1c6   :  { %3170 = vtanh.f32 %v1078_v1  ;;  %1516 = vmatpush.msra.mxu2 %v4149_v7  ;;  %v4311_v7 = vld [vmem:[#allocation6 + $0x260] sm:$0xff] }
 0x1c7   :  { %1299 = vmatpush.msrb.mxu3 %v4291_v61  ;;  %1339 = vmatpush.msrb.mxu1 %v4295_v2  ;;  %v4322_v2 = vld [vmem:[#allocation6 + $0x240] sm:$0xff] }
 0x1c8   :  { %1517 = vmatpush.msra.mxu2 %v4158_v28  ;;  %1320 = vmatpush.msrb.mxu0 %v4311_v7 }
 0x1c9   :  { %v989_v1 = vpop.f32.mrf.mxu1  ;;  %1300 = vmatpush.msrb.mxu3 %v4309_v59  ;;  %1340 = vmatpush.msrb.mxu1 %v4313_v33 }
 0x1ca   :  { %v1087_v10 = vadd.f32 %v989_v1, %v3895_v55  ;;  %v1073_v55 = vor.u32 1.1754944e-38, %v1072_v31  ;;  %1518 = vmatpush.msra.mxu2 %v4167_v57  ;;  %1321 = vmatpush.msrb.mxu0 %v4324_v38  ;;  %v4337_v31 = vld [vmem:[#allocation6 + $0x238] sm:$0xff] }
 0x1cb   :  { %1301 = vmatpush.msrb.mxu3 %v4322_v2  ;;  %1341 = vmatpush.msrb.mxu1 %v4326_v21  ;;  %5807 = vst [vmem:[#allocation64_spill] sm:$0xff] %v4337_v31  ;;  %v4407_v21 = vld [vmem:[#allocation6 + $0x1a8] sm:$0xff] }
 0x1cc   :  { %v3171_v9 = vpop.eup %3170  ;;  %v3095_v1 = vmul.f32 -1.442695, %v1087_v10  ;;  %v1074_v28 = vsel %vm1071_vm7, %v1073_v55, %v1069_v39  ;;  %v4333_v10 = vld [vmem:[#allocation6 + $0x228] sm:$0xff]  ;;  %1519 = vmatpush.msra.mxu2 %v4179_v46  ;;  %1322 = vmatpush.msrb.mxu0 %v4335_v6  ;;  %v4346_v39 = vld [vmem:[#allocation6 + $0x218] sm:$0xff]  ;;  %v4348_v55 = vld [vmem:[#allocation6 + $0x220] sm:$0xff]  ;;  %5816 = vst [vmem:[#allocation73_spill] sm:$0xff] %v4407_v21 }
 0x1cd   :  { %v1080_v26 = vsub.f32 %v4042_v43, %v3171_v9  ;;  %1302 = vmatpush.msrb.mxu3 %v4333_v10  ;;  %1342 = vmatpush.msrb.mxu1 %v4337_v31  ;;  %5808 = vst [vmem:[#allocation65_spill] sm:$0xff] %v4348_v55 }
 0x1ce   :  { %3172 = vpow2.f32 %v3095_v1  ;;  %1520 = vmatpush.msra.mxu2 %v4188_v13  ;;  %1323 = vmatpush.msrb.mxu0 %v4346_v39 }
 0x1cf   :  { %v1009_v57 = vpop.f32.mrf.mxu2  ;;  %v1081_v60 = vmul.f32 %v1080_v26, %v1074_v28  ;;  %1303 = vmatpush.msrb.mxu3 %v4344_v52  ;;  %1343 = vmatpush.msrb.mxu1 %v4348_v55  ;;  %v4358_v26 = vld [vmem:[#allocation6 + $0x200] sm:$0xff]  ;;  %v4360_v28 = vld [vmem:[#allocation6 + $0x208] sm:$0xff]  ;;  %v4384_v55 = vld [vmem:[#allocation6 + $0x1d0] sm:$0xff] }
 0x1d0   :  { %v1107_v43 = vadd.f32 %v1009_v57, %v3997_v19  ;;  %v4356_v19 = vld [vmem:[#allocation6 + $0x1f8] sm:$0xff]  ;;  %5810 = vst [vmem:[#allocation67_spill] sm:$0xff] %v4360_v28  ;;  %1521 = vmatpush.msra.mxu2 %v4199_v0  ;;  %v4373_v57 = vld [vmem:[#allocation6 + $0x1e8] sm:$0xff]  ;;  %v4375_v0 = vld [vmem:[#allocation6 + $0x1f0] sm:$0xff]  ;;  %1324 = vmatpush.msrb.mxu0 %v4358_v26 }
 0x1d1   :  { %v4351_v1 = vadd.f32 %v3171_v9, %v1081_v60  ;;  %v4369_v9 = vld [vmem:[#allocation6 + $0x1e0] sm:$0xff]  ;;  %1304 = vmatpush.msrb.mxu3 %v4356_v19  ;;  %5811 = vst [vmem:[#allocation68_spill] sm:$0xff] %v4375_v0  ;;  %1344 = vmatpush.msrb.mxu1 %v4360_v28 }
 0x1d2   :  { %v3096_v46 = vmul.f32 -1.442695, %v1107_v43  ;;  %v4381_v43 = vld [vmem:[#allocation6 + $0x1c8] sm:$0xff]  ;;  %1522 = vmatpush.msra.mxu2 %v4209_v27  ;;  %1325 = vmatpush.msrb.mxu0 %v4373_v57  ;;  %v4397_v28 = vld [vmem:[#allocation6 + $0x1c0] sm:$0xff]  ;;  %v4402_v27 = vld [vmem:[#allocation6 + $0x198] sm:$0xff] }
 0x1d3   :  { %5809 = vst [vmem:[#allocation66_spill] sm:$0xff] %v4351_v1  ;;  %1202 = vmatmul.f32.vlgmr.msra.gmra.mxu0 %v4351_v1  ;;  %1222 = vmatmul.f32.vlgmr.msra.gmra.mxu1 %v4351_v1 }
 0x1d4   :  { %3097 = vst [vmem:[%s5570_s5 + $0x8] sm:$0xff] %v4351_v1  ;;  %v3173_v13 = vpop.eup %3172  ;;  %3174 = vpow2.f32 %v3096_v46  ;;  %1242 = vmatmul.f32.vlgmr.msrb.gmra.mxu2 %v4351_v1  ;;  %1305 = vmatpush.msrb.mxu3 %v4369_v9  ;;  %v4386_v46 = vld [vmem:[#allocation6 + $0x1d8] sm:$0xff] }
 0x1d5   :  { %v4377_v60 = vadd.f32 1.0, %v3173_v13  ;;  %5812 = vst [vmem:[#allocation69_spill] sm:$0xff] %v4381_v43  ;;  %1345 = vmatpush.msrb.mxu1 %v4375_v0  ;;  %v4392_v13 = vld [vmem:[#allocation6 + $0x1b0] sm:$0xff]  ;;  %v4395_v1 = vld [vmem:[#allocation6 + $0x1b8] sm:$0xff]  ;;  %1523 = vmatpush.msra.mxu2 %v4218_v15  ;;  %v4405_v0 = vld [vmem:[#allocation6 + $0x1a0] sm:$0xff] }
 0x1d6   :  { %5813 = vst [vmem:[#allocation70_spill] sm:$0xff] %v4386_v46  ;;  %1306 = vmatpush.msrb.mxu3 %v4381_v43  ;;  %1326 = vmatpush.msrb.mxu0 %v4384_v55  ;;  %v4414_v15 = vld [vmem:[#allocation6 + $0x180] sm:$0xff]  ;;  %v4419_v43 = vld [vmem:[#allocation6 + $0x190] sm:$0xff] }
 0x1d7   :  { %3176 = vrcp.f32 %v4377_v60  ;;  %5814 = vst [vmem:[#allocation71_spill] sm:$0xff] %v4392_v13  ;;  %1346 = vmatpush.msrb.mxu1 %v4386_v46  ;;  %1636 = vmatpush.msrb.mxu2 %v4236_v44  ;;  %v4417_v46 = vld [vmem:[#allocation6 + $0x188] sm:$0xff]  ;;  %vm1097_vm9 = vweird.f32 %v4377_v60 }
 0x1d8   :  { %5815 = vst [vmem:[#allocation72_spill] sm:$0xff] %v4397_v28  ;;  %1307 = vmatpush.msrb.mxu3 %v4392_v13  ;;  %1327 = vmatpush.msrb.mxu0 %v4395_v1 }
 0x1d9   :  { %1347 = vmatpush.msrb.mxu1 %v4397_v28  ;;  %1637 = vmatpush.msrb.mxu2 %v4247_v30  ;;  %v1103_v30 = vand.u32 2147483648, %v4377_v60  ;;  %v1101_v28 = vand.u32 2147483647, %v4377_v60 }
 0x1da   :  { %v3175_v31 = vpop.eup %3174  ;;  %1308 = vmatpush.msrb.mxu3 %v4402_v27  ;;  %1328 = vmatpush.msrb.mxu0 %v4405_v0 }
 0x1db   :  { %v4410_v33 = vadd.f32 1.0, %v3175_v31  ;;  %1348 = vmatpush.msrb.mxu1 %v4407_v21  ;;  %1638 = vmatpush.msrb.mxu2 %v4257_v5  ;;  %vm1102_vm11 = vcmp.eq.f32.partialorder %v1101_v28, 8.507059e+37 }
 0x1dc   :  { %1309 = vmatpush.msrb.mxu3 %v4414_v15  ;;  %1329 = vmatpush.msrb.mxu0 %v4417_v46 }
 0x1dd   :  { %v3177_v13 = vpop.eup %3176  ;;  %3178 = vrcp.f32 %v4410_v33  ;;  %1349 = vmatpush.msrb.mxu1 %v4419_v43  ;;  %1639 = vmatpush.msrb.mxu2 %v4269_v23  ;;  %vm1117_vm13 = vweird.f32 %v4410_v33  ;;  %v5831_v23 = vld [vmem:[#allocation60_spill] sm:$0xff] }
 0x1de   :  { %v1093_v44 = vmul.f32 %v3177_v13, %v4377_v60  ;;  %1528 = vmatpush.msra.mxu3 %v4078_v36  ;;  %1548 = vmatpush.msra.mxu0 %v4080_v12  ;;  %vm1098_vm8 = vweird.f32 %v3177_v13  ;;  %v1104_v12 = vor.u32 1.1754944e-38, %v1103_v30 }
 0x1df   :  { %1616 = vmatpush.msra.mxu1 %v4234_v41  ;;  %1640 = vmatpush.msrb.mxu2 %v4280_v49  ;;  %vm1099_vm10 = vmor %vm1097_vm9, %vm1098_vm8  ;;  %v5834_v49 = vld [vmem:[#allocation63_spill] sm:$0xff] }
 0x1e0   :  { %v1094_v31 = vsub.f32 1.0, %v1093_v44  ;;  %1529 = vmatpush.msra.mxu3 %v4087_v20  ;;  %1549 = vmatpush.msra.mxu0 %v4089_v35  ;;  %v1029_v44 = vpop.f32.mrf.mxu3 }
 0x1e1   :  { %1617 = vmatpush.msra.mxu1 %v4245_v3  ;;  %1641 = vmatpush.msrb.mxu2 %v4293_v56  ;;  %v1127_v3 = vadd.f32 %v4060_v45, %v1029_v44  ;;  %v5836_v56 = vld [vmem:[#allocation65_spill] sm:$0xff] }
 0x1e2   :  { %v1095_v21 = vmul.f32 %v3177_v13, %v1094_v31  ;;  %1530 = vmatpush.msra.mxu3 %v4096_v4  ;;  %1550 = vmatpush.msra.mxu0 %v4098_v42 }
 0x1e3   :  { %v4438_v5 = vpop.eup %3178  ;;  %1618 = vmatpush.msra.mxu1 %v4255_v17  ;;  %1642 = vmatpush.msrb.mxu2 %v4311_v7  ;;  %v5828_v17 = vld [vmem:[#allocation57_spill] sm:$0xff]  ;;  %v5838_v7 = vld [vmem:[#allocation68_spill] sm:$0xff] }
 0x1e4   :  { %v1113_v41 = vmul.f32 %v4438_v5, %v4410_v33  ;;  %v1096_v36 = vadd.f32 %v3177_v13, %v1095_v21  ;;  %1531 = vmatpush.msra.mxu3 %v4105_v11  ;;  %1551 = vmatpush.msra.mxu0 %v4107_v53  ;;  %vm1118_vm12 = vweird.f32 %v4438_v5 }
 0x1e5   :  { %1619 = vmatpush.msra.mxu1 %v4267_v63  ;;  %1643 = vmatpush.msrb.mxu2 %v4324_v38  ;;  %vm1119_vm14 = vmor %vm1117_vm13, %vm1118_vm12  ;;  %v5827_v38 = vld [vmem:[#allocation56_spill] sm:$0xff]  ;;  %v5830_v63 = vld [vmem:[#allocation59_spill] sm:$0xff] }
 0x1e6   :  { %v1114_v20 = vsub.f32 1.0, %v1113_v41  ;;  %v1100_v35 = vsel %vm1099_vm10, %v3177_v13, %v1096_v36  ;;  %1532 = vmatpush.msra.mxu3 %v4114_v62  ;;  %1552 = vmatpush.msra.mxu0 %v4116_v32 }
 0x1e7   :  { %v1105_v21 = vsel %vm1102_vm11, %v1104_v12, %v1100_v35  ;;  %1620 = vmatpush.msra.mxu1 %v4278_v16  ;;  %1644 = vmatpush.msrb.mxu2 %v4335_v6  ;;  %v5833_v16 = vld [vmem:[#allocation62_spill] sm:$0xff]  ;;  %v5840_v6 = vld [vmem:[#allocation72_spill] sm:$0xff] }
 0x1e8   :  { %v1128_v4 = vmul.f32 %v1127_v3, %v1105_v21  ;;  %v1115_v42 = vmul.f32 %v4438_v5, %v1114_v20  ;;  %1533 = vmatpush.msra.mxu3 %v4123_v50  ;;  %1553 = vmatpush.msra.mxu0 %v4125_v51  ;;  %v5818_v51 = vld [vmem:[#allocation49_spill] sm:$0xff] }
 0x1e9   :  { %1621 = vmatpush.msra.mxu1 %v4291_v61  ;;  %1645 = vmatpush.msrb.mxu2 %v4346_v39  ;;  %v5835_v61 = vld [vmem:[#allocation64_spill] sm:$0xff] }
 0x1ea   :  { %v1129_v45 = vadd.f32 %v1128_v4, %v4000_v40  ;;  %1534 = vmatpush.msra.mxu3 %v4135_v24  ;;  %1554 = vmatpush.msra.mxu0 %v4137_v47  ;;  %v1116_v11 = vadd.f32 %v4438_v5, %v1115_v42  ;;  %v1123_v40 = vand.u32 2147483648, %v4410_v33  ;;  %v1121_v24 = vand.u32 2147483647, %v4410_v33  ;;  %v5829_v33 = vld [vmem:[#allocation58_spill] sm:$0xff]  ;;  %v5842_v39 = vld [vmem:[#allocation12_spill] sm:$0xff] }
 0x1eb   :  { %1622 = vmatpush.msra.mxu1 %v4309_v59  ;;  %1646 = vmatpush.msrb.mxu2 %v4358_v26  ;;  %v5832_v59 = vld [vmem:[#allocation61_spill] sm:$0xff]  ;;  %v5845_v26 = vld [vmem:[#allocation10_spill] sm:$0xff] }
 0x1ec   :  { %3180 = vtanh.f32 %v1129_v45  ;;  %1535 = vmatpush.msra.mxu3 %v4142_v8  ;;  %1555 = vmatpush.msra.mxu0 %v4146_v54  ;;  %v1120_v47 = vsel %vm1119_vm14, %v4438_v5, %v1116_v11  ;;  %v1124_v53 = vor.u32 1.1754944e-38, %v1123_v40  ;;  %vm1122_vm15 = vcmp.eq.f32.partialorder %v1121_v24, 8.507059e+37  ;;  %v5821_v8 = vld [vmem:[#allocation69_spill] sm:$0xff]  ;;  %v4540_v11 = vld [vmem:[%s5569_s4] ss:$0 sm:$0xff] }
 0x1ed   :  { %1623 = vmatpush.msra.mxu1 %v4322_v2  ;;  %1647 = vmatpush.msrb.mxu2 %v4373_v57  ;;  %v5837_v2 = vld [vmem:[#allocation67_spill] sm:$0xff] }
 0x1ee   :  { %1536 = vmatpush.msra.mxu3 %v4151_v25  ;;  %1556 = vmatpush.msra.mxu0 %v4155_v22  ;;  %v1125_v25 = vsel %vm1122_vm15, %v1124_v53, %v1120_v47  ;;  %v5822_v22 = vld [vmem:[#allocation52_spill] sm:$0xff] }
 0x1ef   :  { %1624 = vmatpush.msra.mxu1 %v4333_v10  ;;  %1648 = vmatpush.msrb.mxu2 %v4384_v55  ;;  %v5839_v10 = vld [vmem:[#allocation70_spill] sm:$0xff]  ;;  %v5843_v55 = vld [vmem:[#allocation11_spill] sm:$0xff]  ;;  %v5847_v53 = vld [vmem:[#allocation20_spill] sm:$0xff] }
 0x1f0   :  { %1537 = vmatpush.msra.mxu3 %v4160_v18  ;;  %1557 = vmatpush.msra.mxu0 %v4164_v58  ;;  %v5823_v18 = vld [vmem:[#allocation53_spill] sm:$0xff]  ;;  %v5824_v58 = vld [vmem:[#allocation71_spill] sm:$0xff] }
 0x1f1   :  { %1625 = vmatpush.msra.mxu1 %v4344_v52  ;;  %1649 = vmatpush.msrb.mxu2 %v4395_v1  ;;  %v5841_v52 = vld [vmem:[#allocation73_spill] sm:$0xff]  ;;  %v146_v1 = vadd.f32 %v5843_v55, %v5842_v39 }
 0x1f2   :  { %v3181_v54 = vpop.eup %3180  ;;  %1538 = vmatpush.msra.mxu3 %v4169_v14  ;;  %1558 = vmatpush.msra.mxu0 %v4173_v37  ;;  %v5820_v37 = vld [vmem:[#allocation51_spill] sm:$0xff]  ;;  %v5825_v14 = vld [vmem:[#allocation54_spill] sm:$0xff] }
 0x1f3   :  { %v1131_v62 = vsub.f32 %v4067_v29, %v3181_v54  ;;  %1626 = vmatpush.msra.mxu1 %v4356_v19  ;;  %1650 = vmatpush.msrb.mxu2 %v4405_v0  ;;  %v5817_v29 = vld [vmem:[#allocation48_spill] sm:$0xff]  ;;  %v5844_v19 = vld [vmem:[#allocation14_spill] sm:$0xff] }
 0x1f4   :  { %1539 = vmatpush.msra.mxu3 %v4181_v48  ;;  %1559 = vmatpush.msra.mxu0 %v4183_v34  ;;  %v5819_v34 = vld [vmem:[#allocation50_spill] sm:$0xff]  ;;  %v5826_v48 = vld [vmem:[#allocation55_spill] sm:$0xff]  ;;  %v187_v28 = vadd.f32 %v5845_v26, %v5844_v19  ;;  %5846 = vst [vmem:[#allocation48_spill] sm:$0xff] %v4540_v11 }
 0x1f5   :  { %v1132_v32 = vmul.f32 %v1131_v62, %v1125_v25  ;;  %1627 = vmatpush.msra.mxu1 %v4369_v9  ;;  %1651 = vmatpush.msrb.mxu2 %v4417_v46 }
 0x1f6   :  { %1540 = vmatpush.msra.mxu3 %v5817_v29  ;;  %1560 = vmatpush.msra.mxu0 %v5818_v51 }
 0x1f7   :  { %v4493_v50 = vadd.f32 %v3181_v54, %v1132_v32  ;;  %1628 = vmatpush.msra.mxu1 %v5821_v8 }
 0x1f8   :  { %1541 = vmatpush.msra.mxu3 %v5819_v34  ;;  %1561 = vmatpush.msra.mxu0 %v5820_v37  ;;  %v5848_v34 = vld [vmem:[#allocation36_spill] sm:$0xff] }
 0x1f9   :  { %3098 = vst [vmem:[%s5570_s5 + $0x48] sm:$0xff] %v4493_v50  ;;  %1310 = vmatmul.f32.vlgmr.msrb.gmra.mxu3 %v4493_v50  ;;  %1330 = vmatmul.f32.vlgmr.msrb.gmra.mxu0 %v4493_v50 }
 0x1fa   :  { %1350 = vmatmul.f32.vlgmr.msrb.gmra.mxu1 %v4493_v50  ;;  %1542 = vmatpush.msra.mxu3 %v5822_v22 }
 0x1fb   :  { %1562 = vmatpush.msra.mxu0 %v5823_v18  ;;  %1629 = vmatpush.msra.mxu1 %v5824_v58  ;;  %v5849_v58 = vld [vmem:[#allocation66_spill] sm:$0xff] }
 0x1fc   :  { %1543 = vmatpush.msra.mxu3 %v5825_v14 }
 0x1fd   :  { %1563 = vmatpush.msra.mxu0 %v5826_v48  ;;  %1630 = vmatpush.msra.mxu1 %v4402_v27 }
 0x1fe   :  { %1656 = vmatpush.msrb.mxu3 %v5827_v38 }
 0x1ff   :  { %1631 = vmatpush.msra.mxu1 %v4414_v15 }
 0x200   :  { %1657 = vmatpush.msrb.mxu3 %v5828_v17 }
 0x202   :  { %1658 = vmatpush.msrb.mxu3 %v5829_v33 }
 0x204   :  { %1659 = vmatpush.msrb.mxu3 %v5830_v63  ;;  %v5850_v63 = vld [vmem:[#allocation13_spill] sm:$0xff] }
 0x206   :  { %1660 = vmatpush.msrb.mxu3 %v5831_v23 }
 0x208   :  { %1661 = vmatpush.msrb.mxu3 %v5832_v59 }
 0x20a   :  { %1662 = vmatpush.msrb.mxu3 %v5833_v16 }
 0x20c   :  { %1663 = vmatpush.msrb.mxu3 %v5834_v49 }
 0x20e   :  { %1664 = vmatpush.msrb.mxu3 %v5835_v61 }
 0x210   :  { %1665 = vmatpush.msrb.mxu3 %v5836_v56 }
 0x212   :  { %1666 = vmatpush.msrb.mxu3 %v5837_v2 }
 0x214   :  { %1667 = vmatpush.msrb.mxu3 %v5838_v7 }
 0x216   :  { %1668 = vmatpush.msrb.mxu3 %v5839_v10 }
 0x218   :  { %1669 = vmatpush.msrb.mxu3 %v5840_v6 }
 0x21a   :  { %1670 = vmatpush.msrb.mxu3 %v5841_v52 }
 0x21c   :  { %1671 = vmatpush.msrb.mxu3 %v4419_v43 }
 0x250   :  { %v1203_v9 = vpop.f32.mrf.mxu0  ;;  %v1223_v57 = vpop.f32.mrf.mxu1 }
 0x251   :  { %v1358_v0 = vadd.f32 %v1203_v9, %v146_v1  ;;  %v1378_v60 = vadd.f32 %v1223_v57, %v187_v28 }
 0x253   :  { %v3099_v46 = vmul.f32 -1.442695, %v1358_v0  ;;  %v3100_v13 = vmul.f32 -1.442695, %v1378_v60  ;;  %v4559_v0 = vld [vmem:[%s5569_s4 + $0x1] ss:$0 sm:$0xff] }
 0x255   :  { %3182 = vpow2.f32 %v3099_v46 }
 0x256   :  { %3184 = vpow2.f32 %v3100_v13 }
 0x257   :  { %v1243_v3 = vpop.f32.mrf.mxu2 }
 0x258   :  { %v1398_v40 = vadd.f32 %v4540_v11, %v1243_v3 }
 0x25b   :  { %v3183_v27 = vpop.eup %3182 }
 0x25c   :  { %v3185_v15 = vpop.eup %3184  ;;  %v1362_v31 = vadd.f32 1.0, %v3183_v27 }
 0x25d   :  { %v1382_v30 = vadd.f32 1.0, %v3185_v15 }
 0x25e   :  { %3186 = vrcp.f32 %v1362_v31  ;;  %v1374_v12 = vand.u32 2147483648, %v1362_v31  ;;  %v1372_v35 = vand.u32 2147483647, %v1362_v31  ;;  %vm1368_vm1 = vweird.f32 %v1362_v31 }
 0x25f   :  { %3188 = vrcp.f32 %v1382_v30  ;;  %v1394_v32 = vand.u32 2147483648, %v1382_v30  ;;  %vm1388_vm5 = vweird.f32 %v1382_v30  ;;  %v1392_v29 = vand.u32 2147483647, %v1382_v30 }
 0x260   :  { %v1375_v42 = vor.u32 1.1754944e-38, %v1374_v12  ;;  %vm1373_vm3 = vcmp.eq.f32.partialorder %v1372_v35, 8.507059e+37 }
 0x261   :  { %v1395_v18 = vor.u32 1.1754944e-38, %v1394_v32  ;;  %vm1393_vm7 = vcmp.eq.f32.partialorder %v1392_v29, 8.507059e+37  ;;  %v4604_v32 = vld [vmem:[#allocation6 + $0x130] sm:$0xff]  ;;  %v4609_v29 = vld [vmem:[#allocation6 + $0x108] sm:$0xff] }
 0x264   :  { %v3187_v43 = vpop.eup %3186 }
 0x265   :  { %v3189_v5 = vpop.eup %3188  ;;  %v1364_v44 = vmul.f32 %v3187_v43, %v1362_v31  ;;  %vm1369_vm0 = vweird.f32 %v3187_v43  ;;  %v5851_v31 = vld [vmem:[#allocation34_spill] sm:$0xff] }
 0x266   :  { %v1384_v36 = vmul.f32 %v3189_v5, %v1382_v30  ;;  %vm1370_vm2 = vmor %vm1368_vm1, %vm1369_vm0  ;;  %vm1389_vm4 = vweird.f32 %v3189_v5 }
 0x267   :  { %v1365_v41 = vsub.f32 1.0, %v1364_v44  ;;  %vm1390_vm6 = vmor %vm1388_vm5, %vm1389_vm4 }
 0x268   :  { %v1385_v4 = vsub.f32 1.0, %v1384_v36 }
 0x269   :  { %v1366_v20 = vmul.f32 %v3187_v43, %v1365_v41 }
 0x26a   :  { %v1386_v54 = vmul.f32 %v3189_v5, %v1385_v4  ;;  %v4573_v4 = vld [vmem:[#allocation6 + $0x168] sm:$0xff] }
 0x26b   :  { %v1367_v21 = vadd.f32 %v3187_v43, %v1366_v20  ;;  %1830 = vmatpush.msrb.mxu0 %v4573_v4 }
 0x26c   :  { %v1387_v25 = vadd.f32 %v3189_v5, %v1386_v54  ;;  %v4593_v54 = vld [vmem:[#allocation6 + $0x140] sm:$0xff] }
 0x26d   :  { %v1371_v45 = vsel %vm1370_vm2, %v3187_v43, %v1367_v21 }
 0x26e   :  { %v1376_v24 = vsel %vm1373_vm3, %v1375_v42, %v1371_v45  ;;  %v1391_v8 = vsel %vm1390_vm6, %v3189_v5, %v1387_v25  ;;  %v4575_v42 = vld [vmem:[#allocation6 + $0x170] sm:$0xff]  ;;  %v4602_v25 = vld [vmem:[#allocation6 + $0x128] sm:$0xff] }
 0x26f   :  { %v1399_v47 = vmul.f32 %v1398_v40, %v1376_v24  ;;  %v1396_v38 = vsel %vm1393_vm7, %v1395_v18, %v1391_v8  ;;  %1850 = vmatpush.msrb.mxu1 %v4575_v42  ;;  %v4582_v45 = vld [vmem:[#allocation6 + $0x150] sm:$0xff]  ;;  %v4584_v40 = vld [vmem:[#allocation6 + $0x158] sm:$0xff]  ;;  %v4586_v24 = vld [vmem:[#allocation6 + $0x160] sm:$0xff] }
 0x270   :  { %1831 = vmatpush.msrb.mxu0 %v4582_v45  ;;  %v4620_v8 = vld [vmem:[#allocation6 + $0xf8] sm:$0xff] }
 0x271   :  { %v1400_v62 = vadd.f32 %v1399_v47, %v5847_v53  ;;  %1851 = vmatpush.msrb.mxu1 %v4584_v40  ;;  %v4591_v47 = vld [vmem:[#allocation6 + $0x138] sm:$0xff]  ;;  %v4595_v53 = vld [vmem:[#allocation6 + $0x148] sm:$0xff] }
 0x272   :  { %1832 = vmatpush.msrb.mxu0 %v4591_v47  ;;  %v4626_v18 = vld [vmem:[#allocation6 + $0xd8] sm:$0xff] }
 0x273   :  { %3190 = vtanh.f32 %v1400_v62  ;;  %1852 = vmatpush.msrb.mxu1 %v4593_v54  ;;  %v4600_v62 = vld [vmem:[#allocation6 + $0x120] sm:$0xff] }
 0x274   :  { %1833 = vmatpush.msrb.mxu0 %v4600_v62 }
 0x275   :  { %1853 = vmatpush.msrb.mxu1 %v4602_v25 }
 0x276   :  { %v1331_v51 = vpop.f32.mrf.mxu0  ;;  %1834 = vmatpush.msrb.mxu0 %v4609_v29 }
 0x277   :  { %v1429_v37 = vadd.f32 %v1331_v51, %v5848_v34  ;;  %v1351_v26 = vpop.f32.mrf.mxu1  ;;  %v4611_v51 = vld [vmem:[#allocation6 + $0x110] sm:$0xff]  ;;  %v4613_v34 = vld [vmem:[#allocation6 + $0x118] sm:$0xff] }
 0x278   :  { %v1449_v60 = vadd.f32 %v4559_v0, %v1351_v26  ;;  %1854 = vmatpush.msrb.mxu1 %v4611_v51  ;;  %v4668_v26 = vld [vmem:[#allocation6 + $0x88] sm:$0xff] }
 0x279   :  { %v3191_v22 = vpop.eup %3190  ;;  %v3102_v48 = vmul.f32 -1.442695, %v1429_v37  ;;  %v4618_v37 = vld [vmem:[#allocation6 + $0xf0] sm:$0xff] }
 0x27a   :  { %v1402_v14 = vsub.f32 %v5849_v58, %v3191_v22  ;;  %1835 = vmatpush.msrb.mxu0 %v4618_v37  ;;  %1855 = vmatpush.msrb.mxu1 %v4620_v8  ;;  %v4628_v58 = vld [vmem:[#allocation6 + $0xe0] sm:$0xff] }
 0x27b   :  { %3192 = vpow2.f32 %v3102_v48 }
 0x27c   :  { %v1311_v17 = vpop.f32.mrf.mxu3  ;;  %v1403_v33 = vmul.f32 %v1402_v14, %v1396_v38  ;;  %v4630_v14 = vld [vmem:[#allocation6 + $0xe8] sm:$0xff]  ;;  %1836 = vmatpush.msrb.mxu0 %v4626_v18  ;;  %1856 = vmatpush.msrb.mxu1 %v4628_v58 }
 0x27d   :  { %v1409_v23 = vadd.f32 %v1311_v17, %v5850_v63  ;;  %v4633_v17 = vld [vmem:[#allocation6 + $0xc0] sm:$0xff]  ;;  %v5852_v63 = vld [vmem:[#allocation16_spill] sm:$0xff] }
 0x27e   :  { %v4547_v59 = vadd.f32 %v3191_v22, %v1403_v33  ;;  %v4622_v22 = vld [vmem:[#allocation6 + $0x100] sm:$0xff]  ;;  %v4635_v33 = vld [vmem:[#allocation6 + $0xc8] sm:$0xff]  ;;  %1837 = vmatpush.msrb.mxu0 %v4633_v17 }
 0x27f   :  { %v3101_v16 = vmul.f32 -1.442695, %v1409_v23  ;;  %1857 = vmatpush.msrb.mxu1 %v4635_v33 }
 0x280   :  { %3103 = vst [vmem:[%s5570_s5 + $0x10] sm:$0xff] %v4547_v59  ;;  %1524 = vmatmul.f32.vlgmr.msra.gmra.mxu2 %v4547_v59  ;;  %1544 = vmatmul.f32.vlgmr.msra.gmra.mxu3 %v4547_v59 }
 0x281   :  { %3194 = vpow2.f32 %v3101_v16  ;;  %1564 = vmatmul.f32.vlgmr.msra.gmra.mxu0 %v4547_v59  ;;  %v3193_v49 = vpop.eup %3192  ;;  %v5853_v16 = vld [vmem:[#allocation21_spill] sm:$0xff] }
 0x282   :  { %v1433_v56 = vadd.f32 1.0, %v3193_v49 }
 0x284   :  { %v1445_v5 = vand.u32 2147483648, %v1433_v56  ;;  %vm1439_vm13 = vweird.f32 %v1433_v56  ;;  %v1443_v44 = vand.u32 2147483647, %v1433_v56 }
 0x286   :  { %v1446_v12 = vor.u32 1.1754944e-38, %v1445_v5  ;;  %vm1444_vm15 = vcmp.eq.f32.partialorder %v1443_v44, 8.507059e+37  ;;  %v4696_v5 = vld [vmem:[#allocation6 + $0x38] sm:$0xff]  ;;  %v4698_v44 = vld [vmem:[#allocation6 + $0x40] sm:$0xff] }
 0x287   :  { %v3195_v61 = vpop.eup %3194  ;;  %5855 = vst [vmem:[#allocation50_spill] sm:$0xff] %v4696_v5 }
 0x288   :  { %v1413_v2 = vadd.f32 1.0, %v3195_v61  ;;  %v4641_v61 = vld [vmem:[#allocation6 + $0xd0] sm:$0xff]  ;;  %5856 = vst [vmem:[#allocation51_spill] sm:$0xff] %v4698_v44 }
 0x28a   :  { %3196 = vrcp.f32 %v1413_v2  ;;  %v1425_v55 = vand.u32 2147483648, %v1413_v2  ;;  %v1423_v19 = vand.u32 2147483647, %v1413_v2  ;;  %vm1419_vm9 = vweird.f32 %v1413_v2 }
 0x28b   :  { %3198 = vrcp.f32 %v1433_v56 }
 0x28c   :  { %v1426_v57 = vor.u32 1.1754944e-38, %v1425_v55  ;;  %vm1424_vm11 = vcmp.eq.f32.partialorder %v1423_v19, 8.507059e+37  ;;  %v4659_v55 = vld [vmem:[#allocation6 + $0xa0] sm:$0xff] }
 0x28d   :  { %v4664_v19 = vld [vmem:[#allocation6 + $0x80] sm:$0xff] }
 0x290   :  { %v3197_v7 = vpop.eup %3196 }
 0x291   :  { %v3199_v10 = vpop.eup %3198  ;;  %v1415_v6 = vmul.f32 %v3197_v7, %v1413_v2  ;;  %vm1420_vm8 = vweird.f32 %v3197_v7  ;;  %v4646_v2 = vld [vmem:[#allocation6 + $0xb0] sm:$0xff] }
 0x292   :  { %v1435_v39 = vmul.f32 %v3199_v10, %v1433_v56  ;;  %vm1421_vm10 = vmor %vm1419_vm9, %vm1420_vm8  ;;  %vm1440_vm12 = vweird.f32 %v3199_v10  ;;  %v4644_v56 = vld [vmem:[#allocation6 + $0xa8] sm:$0xff]  ;;  %1858 = vmatpush.msrb.mxu1 %v4646_v2 }
 0x293   :  { %v1416_v52 = vsub.f32 1.0, %v1415_v6  ;;  %vm1441_vm14 = vmor %vm1439_vm13, %vm1440_vm12  ;;  %v4650_v6 = vld [vmem:[#allocation6 + $0xb8] sm:$0xff]  ;;  %1838 = vmatpush.msrb.mxu0 %v4644_v56 }
 0x294   :  { %v1436_v9 = vsub.f32 1.0, %v1435_v39  ;;  %v4655_v39 = vld [vmem:[#allocation6 + $0x98] sm:$0xff] }
 0x295   :  { %v1417_v1 = vmul.f32 %v3197_v7, %v1416_v52  ;;  %v4653_v52 = vld [vmem:[#allocation6 + $0x90] sm:$0xff]  ;;  %1859 = vmatpush.msrb.mxu1 %v4655_v39 }
 0x296   :  { %v1437_v15 = vmul.f32 %v3199_v10, %v1436_v9  ;;  %1839 = vmatpush.msrb.mxu0 %v4653_v52  ;;  %v4676_v9 = vld [vmem:[#allocation6 + $0x68] sm:$0xff] }
 0x297   :  { %v1418_v28 = vadd.f32 %v3197_v7, %v1417_v1  ;;  %v4662_v1 = vld [vmem:[#allocation6 + $0x78] sm:$0xff]  ;;  %1860 = vmatpush.msrb.mxu1 %v4664_v19 }
 0x298   :  { %v1438_v43 = vadd.f32 %v3199_v10, %v1437_v15  ;;  %1840 = vmatpush.msrb.mxu0 %v4662_v1  ;;  %v4685_v15 = vld [vmem:[#allocation6 + $0x50] sm:$0xff] }
 0x299   :  { %v1422_v46 = vsel %vm1421_vm10, %v3197_v7, %v1418_v28  ;;  %v4674_v28 = vld [vmem:[#allocation6 + $0x60] sm:$0xff]  ;;  %1861 = vmatpush.msrb.mxu1 %v4676_v9 }
 0x29a   :  { %v1427_v13 = vsel %vm1424_vm11, %v1426_v57, %v1422_v46  ;;  %v1442_v41 = vsel %vm1441_vm14, %v3199_v10, %v1438_v43  ;;  %v4678_v57 = vld [vmem:[#allocation6 + $0x70] sm:$0xff]  ;;  %1841 = vmatpush.msrb.mxu0 %v4674_v28 }
 0x29b   :  { %v1450_v27 = vmul.f32 %v1449_v60, %v1427_v13  ;;  %v1447_v35 = vsel %vm1444_vm15, %v1446_v12, %v1442_v41  ;;  %1862 = vmatpush.msrb.mxu1 %v4685_v15  ;;  %v4694_v43 = vld [vmem:[#allocation6 + $0x30] sm:$0xff]  ;;  %v4704_v41 = vld [vmem:[#allocation6 + $0x18] sm:$0xff]  ;;  %v4708_v12 = vld [vmem:[#allocation6 + $0x28] sm:$0xff] }
 0x29c   :  { %5858 = vst [vmem:[#allocation52_spill] sm:$0xff] %v4708_v12 }
 0x29d   :  { %v1451_v30 = vadd.f32 %v1450_v27, %v5851_v31  ;;  %v4683_v27 = vld [vmem:[#allocation6 + $0x48] sm:$0xff]  ;;  %v4687_v31 = vld [vmem:[#allocation6 + $0x58] sm:$0xff]  ;;  %1863 = vmatpush.msrb.mxu1 %v4696_v5  ;;  %v4821_v5 = vld [vmem:[#allocation6 + $0x250] sm:$0xff] }
 0x29e   :  { %5854 = vst [vmem:[#allocation49_spill] sm:$0xff] %v4687_v31  ;;  %1842 = vmatpush.msrb.mxu0 %v4683_v27 }
 0x29f   :  { %3200 = vtanh.f32 %v1451_v30  ;;  %5872 = vst [vmem:[#allocation61_spill] sm:$0xff] %v4821_v5 }
 0x2a0   :  { %1843 = vmatpush.msrb.mxu0 %v4694_v43 }
 0x2a2   :  { %1844 = vmatpush.msrb.mxu0 %v4704_v41 }
 0x2a5   :  { %v3201_v36 = vpop.eup %3200 }
 0x2a6   :  { %v1453_v20 = vsub.f32 %v4493_v50, %v3201_v36  ;;  %v4577_v50 = vld [vmem:[#allocation6 + $0x178] sm:$0xff] }
 0x2a7   :  { %1870 = vmatpush.msra.mxu2 %v4577_v50 }
 0x2a8   :  { %v1454_v3 = vmul.f32 %v1453_v20, %v1447_v35  ;;  %v4713_v20 = vld [vmem:[#allocation6] sm:$0xff]  ;;  %v4715_v35 = vld [vmem:[#allocation6 + $0x8] sm:$0xff] }
 0x2a9   :  { %1871 = vmatpush.msra.mxu2 %v4586_v24  ;;  %5859 = vst [vmem:[#allocation53_spill] sm:$0xff] %v4715_v35  ;;  %1845 = vmatpush.msrb.mxu0 %v4713_v20 }
 0x2aa   :  { %v4564_v21 = vadd.f32 %v3201_v36, %v1454_v3  ;;  %v4706_v36 = vld [vmem:[#allocation6 + $0x20] sm:$0xff]  ;;  %v4717_v3 = vld [vmem:[#allocation6 + $0x10] sm:$0xff] }
 0x2ab   :  { %1872 = vmatpush.msra.mxu2 %v4595_v53  ;;  %5857 = vst [vmem:[#allocation69_spill] sm:$0xff] %v4706_v36  ;;  %1864 = vmatpush.msrb.mxu1 %v4706_v36 }
 0x2ac   :  { %3104 = vst [vmem:[%s5570_s5 + $0x50] sm:$0xff] %v4564_v21  ;;  %1632 = vmatmul.f32.vlgmr.msra.gmra.mxu1 %v4564_v21  ;;  %1652 = vmatmul.f32.vlgmr.msrb.gmra.mxu2 %v4564_v21 }
 0x2ad   :  { %1672 = vmatmul.f32.vlgmr.msrb.gmra.mxu3 %v4564_v21  ;;  %1873 = vmatpush.msra.mxu2 %v4604_v32  ;;  %5860 = vst [vmem:[#allocation71_spill] sm:$0xff] %v4717_v3 }
 0x2ae   :  { %1865 = vmatpush.msrb.mxu1 %v4715_v35  ;;  %v4731_v35 = vld [vmem:[#allocation6 + $0x2f0] sm:$0xff] }
 0x2af   :  { %1874 = vmatpush.msra.mxu2 %v4613_v34  ;;  %1958 = vmatpush.msra.mxu0 %v4731_v35 }
 0x2b1   :  { %1875 = vmatpush.msra.mxu2 %v4622_v22 }
 0x2b3   :  { %1876 = vmatpush.msra.mxu2 %v4630_v14 }
 0x2b5   :  { %1877 = vmatpush.msra.mxu2 %v4641_v61 }
 0x2b7   :  { %1878 = vmatpush.msra.mxu2 %v4650_v6 }
 0x2b9   :  { %1879 = vmatpush.msra.mxu2 %v4659_v55 }
 0x2bb   :  { %1880 = vmatpush.msra.mxu2 %v4668_v26 }
 0x2bd   :  { %1881 = vmatpush.msra.mxu2 %v4678_v57 }
 0x2bf   :  { %1882 = vmatpush.msra.mxu2 %v4687_v31  ;;  %v4914_v31 = vld [vmem:[#allocation6 + $0x190] sm:$0xff] }
 0x2c1   :  { %1883 = vmatpush.msra.mxu2 %v4698_v44  ;;  %v4819_v44 = vld [vmem:[#allocation6 + $0x248] sm:$0xff] }
 0x2c3   :  { %1884 = vmatpush.msra.mxu2 %v4708_v12  ;;  %v4744_v12 = vld [vmem:[#allocation6 + $0x2e0] sm:$0xff] }
 0x2c4   :  { %5862 = vst [vmem:[#allocation55_spill] sm:$0xff] %v4744_v12 }
 0x2c5   :  { %1885 = vmatpush.msra.mxu2 %v4717_v3  ;;  %v4729_v3 = vld [vmem:[#allocation6 + $0x2e8] sm:$0xff] }
 0x2c6   :  { %1938 = vmatpush.msra.mxu3 %v4729_v3 }
 0x2c7   :  { %2152 = vmatpush.msrb.mxu2 %v4573_v4  ;;  %v4733_v4 = vld [vmem:[#allocation6 + $0x2f8] sm:$0xff] }
 0x2c8   :  { %5861 = vst [vmem:[#allocation54_spill] sm:$0xff] %v4733_v4  ;;  %1978 = vmatpush.msra.mxu1 %v4733_v4  ;;  %v4808_v4 = vld [vmem:[#allocation6 + $0x268] sm:$0xff] }
 0x2c9   :  { %2153 = vmatpush.msrb.mxu2 %v4582_v45  ;;  %5871 = vst [vmem:[#allocation60_spill] sm:$0xff] %v4808_v4 }
 0x2ca   :  { %1979 = vmatpush.msra.mxu1 %v4744_v12  ;;  %v4804_v12 = vld [vmem:[#allocation6 + $0x258] sm:$0xff] }
 0x2cb   :  { %2154 = vmatpush.msrb.mxu2 %v4591_v47 }
 0x2cd   :  { %2155 = vmatpush.msrb.mxu2 %v4600_v62 }
 0x2cf   :  { %2156 = vmatpush.msrb.mxu2 %v4609_v29  ;;  %v5864_v29 = vld [vmem:[#allocation15_spill] sm:$0xff] }
 0x2d1   :  { %2157 = vmatpush.msrb.mxu2 %v4618_v37  ;;  %v4773_v37 = vld [vmem:[#allocation6 + $0x288] sm:$0xff] }
 0x2d3   :  { %2158 = vmatpush.msrb.mxu2 %v4626_v18 }
 0x2d5   :  { %2159 = vmatpush.msrb.mxu2 %v4633_v17 }
 0x2d7   :  { %2160 = vmatpush.msrb.mxu2 %v4644_v56  ;;  %v4806_v56 = vld [vmem:[#allocation6 + $0x260] sm:$0xff] }
 0x2d9   :  { %2161 = vmatpush.msrb.mxu2 %v4653_v52 }
 0x2db   :  { %2162 = vmatpush.msrb.mxu2 %v4662_v1 }
 0x2dd   :  { %2163 = vmatpush.msrb.mxu2 %v4674_v28 }
 0x2df   :  { %2164 = vmatpush.msrb.mxu2 %v4683_v27  ;;  %v4864_v27 = vld [vmem:[#allocation6 + $0x1e0] sm:$0xff] }
 0x2e1   :  { %2165 = vmatpush.msrb.mxu2 %v4694_v43  ;;  %v4870_v43 = vld [vmem:[#allocation6 + $0x1f0] sm:$0xff] }
 0x2e2   :  { %5878 = vst [vmem:[#allocation67_spill] sm:$0xff] %v4870_v43 }
 0x2e3   :  { %2166 = vmatpush.msrb.mxu2 %v4704_v41  ;;  %v4897_v41 = vld [vmem:[#allocation6 + $0x198] sm:$0xff] }
 0x2e5   :  { %2167 = vmatpush.msrb.mxu2 %v4713_v20  ;;  %v4909_v20 = vld [vmem:[#allocation6 + $0x180] sm:$0xff] }
 0x303   :  { %v1525_v48 = vpop.f32.mrf.mxu2  ;;  %v1545_v38 = vpop.f32.mrf.mxu3 }
 0x304   :  { %v1680_v23 = vadd.f32 %v1525_v48, %v5852_v63  ;;  %v1700_v49 = vadd.f32 %v1545_v38, %v5853_v16 }
 0x306   :  { %v3105_v7 = vmul.f32 -1.442695, %v1680_v23  ;;  %v3106_v10 = vmul.f32 -1.442695, %v1700_v49 }
 0x308   :  { %3202 = vpow2.f32 %v3105_v7 }
 0x309   :  { %3204 = vpow2.f32 %v3106_v10 }
 0x30e   :  { %v3203_v60 = vpop.eup %3202 }
 0x30f   :  { %v3205_v46 = vpop.eup %3204  ;;  %v1684_v13 = vadd.f32 1.0, %v3203_v60  ;;  %v1565_v60 = vpop.f32.mrf.mxu0 }
 0x310   :  { %v4689_v30 = vadd.f32 1.0, %v3205_v46  ;;  %v1720_v47 = vadd.f32 %v4540_v11, %v1565_v60  ;;  %v4790_v11 = vld [vmem:[#allocation6 + $0x280] sm:$0xff] }
 0x311   :  { %3206 = vrcp.f32 %v1684_v13  ;;  %v1696_v16 = vand.u32 2147483648, %v1684_v13  ;;  %v1694_v10 = vand.u32 2147483647, %v1684_v13  ;;  %vm1690_vm1 = vweird.f32 %v1684_v13  ;;  %5867 = vst [vmem:[#allocation59_spill] sm:$0xff] %v4790_v11 }
 0x312   :  { %3208 = vrcp.f32 %v4689_v30  ;;  %vm1710_vm5 = vweird.f32 %v4689_v30  ;;  %v1716_v18 = vand.u32 2147483648, %v4689_v30 }
 0x313   :  { %v1697_v45 = vor.u32 1.1754944e-38, %v1696_v16  ;;  %vm1695_vm3 = vcmp.eq.f32.partialorder %v1694_v10, 8.507059e+37  ;;  %v4754_v10 = vld [vmem:[#allocation6 + $0x2c8] sm:$0xff] }
 0x314   :  { %5863 = vst [vmem:[#allocation56_spill] sm:$0xff] %v4754_v10  ;;  %1980 = vmatpush.msra.mxu1 %v4754_v10 }
 0x317   :  { %v3207_v48 = vpop.eup %3206 }
 0x318   :  { %v4722_v38 = vpop.eup %3208  ;;  %v1686_v63 = vmul.f32 %v3207_v48, %v1684_v13  ;;  %vm1691_vm0 = vweird.f32 %v3207_v48  ;;  %v4740_v13 = vld [vmem:[#allocation6 + $0x2d0] sm:$0xff] }
 0x319   :  { %v1706_v49 = vmul.f32 %v4722_v38, %v4689_v30  ;;  %vm1692_vm2 = vmor %vm1690_vm1, %vm1691_vm0  ;;  %1939 = vmatpush.msra.mxu3 %v4740_v13  ;;  %vm1711_vm4 = vweird.f32 %v4722_v38 }
 0x31a   :  { %v1687_v23 = vsub.f32 1.0, %v1686_v63  ;;  %vm4795_vm6 = vmor %vm1710_vm5, %vm1711_vm4 }
 0x31b   :  { %v1707_v63 = vsub.f32 1.0, %v1706_v49  ;;  %v4752_v49 = vld [vmem:[#allocation6 + $0x2c0] sm:$0xff] }
 0x31c   :  { %v1688_v7 = vmul.f32 %v3207_v48, %v1687_v23 }
 0x31d   :  { %v1708_v60 = vmul.f32 %v4722_v38, %v1707_v63  ;;  %v4775_v63 = vld [vmem:[#allocation6 + $0x290] sm:$0xff] }
 0x31e   :  { %v1689_v46 = vadd.f32 %v3207_v48, %v1688_v7  ;;  %v4742_v7 = vld [vmem:[#allocation6 + $0x2d8] sm:$0xff] }
 0x31f   :  { %1959 = vmatpush.msra.mxu0 %v4742_v7 }
 0x320   :  { %v1693_v23 = vsel %vm1692_vm2, %v3207_v48, %v1689_v46  ;;  %v4750_v48 = vld [vmem:[#allocation6 + $0x2b8] sm:$0xff] }
 0x321   :  { %v1698_v62 = vsel %vm1695_vm3, %v1697_v45, %v1693_v23  ;;  %1940 = vmatpush.msra.mxu3 %v4750_v48  ;;  %1960 = vmatpush.msra.mxu0 %v4752_v49  ;;  %v4762_v45 = vld [vmem:[#allocation6 + $0x2a0] sm:$0xff]  ;;  %v4766_v23 = vld [vmem:[#allocation6 + $0x2b0] sm:$0xff] }
 0x322   :  { %v1721_v16 = vmul.f32 %v1720_v47, %v1698_v62  ;;  %v4764_v47 = vld [vmem:[#allocation6 + $0x2a8] sm:$0xff]  ;;  %5865 = vst [vmem:[#allocation57_spill] sm:$0xff] %v4766_v23  ;;  %1981 = vmatpush.msra.mxu1 %v4766_v23  ;;  %v4777_v62 = vld [vmem:[#allocation6 + $0x298] sm:$0xff] }
 0x323   :  { %1941 = vmatpush.msra.mxu3 %v4762_v45  ;;  %1961 = vmatpush.msra.mxu0 %v4764_v47  ;;  %5866 = vst [vmem:[#allocation58_spill] sm:$0xff] %v4777_v62 }
 0x324   :  { %v1722_v46 = vadd.f32 %v1721_v16, %v5864_v29  ;;  %v1709_v16 = vadd.f32 %v4722_v38, %v1708_v60  ;;  %1982 = vmatpush.msra.mxu1 %v4777_v62  ;;  %v4786_v29 = vld [vmem:[#allocation6 + $0x270] sm:$0xff]  ;;  %v1714_v60 = vand.u32 2147483647, %v4689_v30  ;;  %v5870_v62 = vld [vmem:[#allocation18_spill] sm:$0xff] }
 0x325   :  { %1942 = vmatpush.msra.mxu3 %v4773_v37  ;;  %1962 = vmatpush.msra.mxu0 %v4775_v63 }
 0x326   :  { %3210 = vtanh.f32 %v1722_v46  ;;  %v4788_v46 = vld [vmem:[#allocation6 + $0x278] sm:$0xff]  ;;  %1983 = vmatpush.msra.mxu1 %v4790_v11  ;;  %v1713_v30 = vsel %vm4795_vm6, %v4722_v38, %v1709_v16  ;;  %v4817_v11 = vld [vmem:[#allocation6 + $0x240] sm:$0xff]  ;;  %vm1715_vm7 = vcmp.eq.f32.partialorder %v1714_v60, 8.507059e+37  ;;  %v4830_v16 = vld [vmem:[#allocation6 + $0x230] sm:$0xff] }
 0x327   :  { %1943 = vmatpush.msra.mxu3 %v4786_v29  ;;  %1963 = vmatpush.msra.mxu0 %v4788_v46 }
 0x328   :  { %1984 = vmatpush.msra.mxu1 %v4808_v4  ;;  %v4902_v4 = vld [vmem:[#allocation6 + $0x1a8] sm:$0xff] }
 0x329   :  { %v1633_v23 = vpop.f32.mrf.mxu1  ;;  %1944 = vmatpush.msra.mxu3 %v4804_v12  ;;  %1964 = vmatpush.msra.mxu0 %v4806_v56  ;;  %5883 = vst [vmem:[#allocation12_spill] sm:$0xff] %v4902_v4 }
 0x32a   :  { %v1731_v10 = vadd.f32 %v1633_v23, %v5870_v62  ;;  %v1717_v23 = vor.u32 1.1754944e-38, %v1716_v18  ;;  %1985 = vmatpush.msra.mxu1 %v4821_v5  ;;  %v4832_v18 = vld [vmem:[#allocation6 + $0x238] sm:$0xff] }
 0x32b   :  { %1945 = vmatpush.msra.mxu3 %v4817_v11  ;;  %1965 = vmatpush.msra.mxu0 %v4819_v44  ;;  %5873 = vst [vmem:[#allocation62_spill] sm:$0xff] %v4832_v18 }
 0x32c   :  { %v3211_v36 = vpop.eup %3210  ;;  %v3107_v62 = vmul.f32 -1.442695, %v1731_v10  ;;  %v1718_v38 = vsel %vm1715_vm7, %v1717_v23, %v1713_v30  ;;  %v4828_v10 = vld [vmem:[#allocation6 + $0x228] sm:$0xff]  ;;  %1986 = vmatpush.msra.mxu1 %v4832_v18  ;;  %v4839_v30 = vld [vmem:[#allocation6 + $0x210] sm:$0xff]  ;;  %v4841_v23 = vld [vmem:[#allocation6 + $0x218] sm:$0xff] }
 0x32d   :  { %v1724_v52 = vsub.f32 %v4547_v59, %v3211_v36  ;;  %1946 = vmatpush.msra.mxu3 %v4828_v10  ;;  %1966 = vmatpush.msra.mxu0 %v4830_v16  ;;  %v5874_v59 = vld [vmem:[#allocation37_spill] sm:$0xff] }
 0x32e   :  { %3212 = vpow2.f32 %v3107_v62  ;;  %v4843_v62 = vld [vmem:[#allocation6 + $0x220] sm:$0xff] }
 0x32f   :  { %v1653_v1 = vpop.f32.mrf.mxu2  ;;  %v1725_v17 = vmul.f32 %v1724_v52, %v1718_v38  ;;  %5875 = vst [vmem:[#allocation63_spill] sm:$0xff] %v4843_v62  ;;  %1947 = vmatpush.msra.mxu3 %v4839_v30  ;;  %1967 = vmatpush.msra.mxu0 %v4841_v23  ;;  %v4851_v52 = vld [vmem:[#allocation6 + $0x1f8] sm:$0xff]  ;;  %v4853_v38 = vld [vmem:[#allocation6 + $0x200] sm:$0xff] }
 0x330   :  { %v1751_v60 = vadd.f32 %v1653_v1, %v5874_v59  ;;  %1987 = vmatpush.msra.mxu1 %v4843_v62  ;;  %v4855_v1 = vld [vmem:[#allocation6 + $0x208] sm:$0xff]  ;;  %v4879_v62 = vld [vmem:[#allocation6 + $0x1d0] sm:$0xff] }
 0x331   :  { %v4846_v5 = vadd.f32 %v3211_v36, %v1725_v17  ;;  %5877 = vst [vmem:[#allocation65_spill] sm:$0xff] %v4855_v1  ;;  %1948 = vmatpush.msra.mxu3 %v4851_v52  ;;  %v4868_v17 = vld [vmem:[#allocation6 + $0x1e8] sm:$0xff]  ;;  %1968 = vmatpush.msra.mxu0 %v4853_v38 }
 0x332   :  { %v3108_v28 = vmul.f32 -1.442695, %v1751_v60  ;;  %1988 = vmatpush.msra.mxu1 %v4855_v1  ;;  %v4876_v60 = vld [vmem:[#allocation6 + $0x1c8] sm:$0xff]  ;;  %v4892_v1 = vld [vmem:[#allocation6 + $0x1c0] sm:$0xff] }
 0x333   :  { %5876 = vst [vmem:[#allocation64_spill] sm:$0xff] %v4846_v5  ;;  %1846 = vmatmul.f32.vlgmr.msrb.gmra.mxu0 %v4846_v5  ;;  %1866 = vmatmul.f32.vlgmr.msrb.gmra.mxu1 %v4846_v5 }
 0x334   :  { %3109 = vst [vmem:[%s5570_s5 + $0x18] sm:$0xff] %v4846_v5  ;;  %v3213_v36 = vpop.eup %3212  ;;  %3214 = vpow2.f32 %v3108_v28  ;;  %1886 = vmatmul.f32.vlgmr.msra.gmra.mxu2 %v4846_v5  ;;  %1949 = vmatpush.msra.mxu3 %v4864_v27  ;;  %v4881_v28 = vld [vmem:[#allocation6 + $0x1d8] sm:$0xff] }
 0x335   :  { %v4872_v59 = vadd.f32 1.0, %v3213_v36  ;;  %5879 = vst [vmem:[#allocation68_spill] sm:$0xff] %v4876_v60  ;;  %1969 = vmatpush.msra.mxu0 %v4868_v17  ;;  %1989 = vmatpush.msra.mxu1 %v4870_v43  ;;  %v4887_v36 = vld [vmem:[#allocation6 + $0x1b0] sm:$0xff]  ;;  %v4890_v5 = vld [vmem:[#allocation6 + $0x1b8] sm:$0xff]  ;;  %v4900_v43 = vld [vmem:[#allocation6 + $0x1a0] sm:$0xff] }
 0x336   :  { %5880 = vst [vmem:[#allocation70_spill] sm:$0xff] %v4881_v28  ;;  %1950 = vmatpush.msra.mxu3 %v4876_v60  ;;  %2280 = vmatpush.msra.mxu2 %v4731_v35 }
 0x337   :  { %3216 = vrcp.f32 %v4872_v59  ;;  %5881 = vst [vmem:[#allocation72_spill] sm:$0xff] %v4887_v36  ;;  %1970 = vmatpush.msra.mxu0 %v4879_v62  ;;  %1990 = vmatpush.msra.mxu1 %v4881_v28  ;;  %v4912_v28 = vld [vmem:[#allocation6 + $0x188] sm:$0xff]  ;;  %vm1741_vm9 = vweird.f32 %v4872_v59 }
 0x338   :  { %5882 = vst [vmem:[#allocation73_spill] sm:$0xff] %v4892_v1  ;;  %1951 = vmatpush.msra.mxu3 %v4887_v36  ;;  %2281 = vmatpush.msra.mxu2 %v4742_v7  ;;  %v1747_v7 = vand.u32 2147483648, %v4872_v59 }
 0x339   :  { %1971 = vmatpush.msra.mxu0 %v4890_v5  ;;  %1991 = vmatpush.msra.mxu1 %v4892_v1  ;;  %v1745_v1 = vand.u32 2147483647, %v4872_v59 }
 0x33a   :  { %v3215_v18 = vpop.eup %3214  ;;  %1952 = vmatpush.msra.mxu3 %v4897_v41  ;;  %2282 = vmatpush.msra.mxu2 %v4752_v49 }
 0x33b   :  { %v4905_v60 = vadd.f32 1.0, %v3215_v18  ;;  %1972 = vmatpush.msra.mxu0 %v4900_v43  ;;  %1992 = vmatpush.msra.mxu1 %v4902_v4  ;;  %vm1746_vm11 = vcmp.eq.f32.partialorder %v1745_v1, 8.507059e+37 }
 0x33c   :  { %1953 = vmatpush.msra.mxu3 %v4909_v20  ;;  %2283 = vmatpush.msra.mxu2 %v4764_v47  ;;  %v5899_v47 = vld [vmem:[#allocation59_spill] sm:$0xff] }
 0x33d   :  { %v3217_v36 = vpop.eup %3216  ;;  %3218 = vrcp.f32 %v4905_v60  ;;  %1973 = vmatpush.msra.mxu0 %v4912_v28  ;;  %1993 = vmatpush.msra.mxu1 %v4914_v31  ;;  %vm1761_vm13 = vweird.f32 %v4905_v60 }
 0x33e   :  { %v1737_v35 = vmul.f32 %v3217_v36, %v4872_v59  ;;  %2172 = vmatpush.msrb.mxu3 %v4575_v42  ;;  %vm1742_vm8 = vweird.f32 %v3217_v36  ;;  %2284 = vmatpush.msra.mxu2 %v4775_v63  ;;  %v5901_v63 = vld [vmem:[#allocation61_spill] sm:$0xff] }
 0x33f   :  { %2192 = vmatpush.msrb.mxu0 %v4577_v50  ;;  %2260 = vmatpush.msrb.mxu1 %v4729_v3  ;;  %vm1743_vm10 = vmor %vm1741_vm9, %vm1742_vm8 }
 0x340   :  { %v1738_v18 = vsub.f32 1.0, %v1737_v35  ;;  %2173 = vmatpush.msrb.mxu3 %v4584_v40  ;;  %v1673_v35 = vpop.f32.mrf.mxu3  ;;  %v1748_v40 = vor.u32 1.1754944e-38, %v1747_v7  ;;  %2285 = vmatpush.msra.mxu2 %v4788_v46  ;;  %v5903_v46 = vld [vmem:[#allocation63_spill] sm:$0xff] }
 0x341   :  { %2193 = vmatpush.msrb.mxu0 %v4586_v24  ;;  %2261 = vmatpush.msrb.mxu1 %v4740_v13  ;;  %v1771_v13 = vadd.f32 %v4559_v0, %v1673_v35 }
 0x342   :  { %v1739_v4 = vmul.f32 %v3217_v36, %v1738_v18  ;;  %2174 = vmatpush.msrb.mxu3 %v4593_v54  ;;  %2286 = vmatpush.msra.mxu2 %v4806_v56  ;;  %v5904_v56 = vld [vmem:[#allocation65_spill] sm:$0xff] }
 0x343   :  { %v4933_v49 = vpop.eup %3218  ;;  %2194 = vmatpush.msrb.mxu0 %v4595_v53  ;;  %2262 = vmatpush.msrb.mxu1 %v4750_v48  ;;  %v5884_v48 = vld [vmem:[#allocation38_spill] sm:$0xff] }
 0x344   :  { %v1757_v42 = vmul.f32 %v4933_v49, %v4905_v60  ;;  %v1740_v50 = vadd.f32 %v3217_v36, %v1739_v4  ;;  %2175 = vmatpush.msrb.mxu3 %v4602_v25  ;;  %2287 = vmatpush.msra.mxu2 %v4819_v44  ;;  %vm1762_vm12 = vweird.f32 %v4933_v49  ;;  %v5896_v44 = vld [vmem:[#allocation56_spill] sm:$0xff] }
 0x345   :  { %2195 = vmatpush.msrb.mxu0 %v4604_v32  ;;  %2263 = vmatpush.msrb.mxu1 %v4762_v45  ;;  %vm1763_vm14 = vmor %vm1761_vm13, %vm1762_vm12  ;;  %v5898_v45 = vld [vmem:[#allocation58_spill] sm:$0xff] }
 0x346   :  { %v1758_v24 = vsub.f32 1.0, %v1757_v42  ;;  %v1744_v3 = vsel %vm1743_vm10, %v3217_v36, %v1740_v50  ;;  %2176 = vmatpush.msrb.mxu3 %v4611_v51  ;;  %2288 = vmatpush.msra.mxu2 %v4830_v16  ;;  %v1767_v51 = vand.u32 2147483648, %v4905_v60  ;;  %v5906_v16 = vld [vmem:[#allocation70_spill] sm:$0xff] }
 0x347   :  { %v1749_v4 = vsel %vm1746_vm11, %v1748_v40, %v1744_v3  ;;  %2196 = vmatpush.msrb.mxu0 %v4613_v34  ;;  %2264 = vmatpush.msrb.mxu1 %v4773_v37  ;;  %v1765_v34 = vand.u32 2147483647, %v4905_v60  ;;  %v5900_v37 = vld [vmem:[#allocation60_spill] sm:$0xff] }
 0x348   :  { %v1772_v54 = vmul.f32 %v1771_v13, %v1749_v4  ;;  %v1759_v53 = vmul.f32 %v4933_v49, %v1758_v24  ;;  %2177 = vmatpush.msrb.mxu3 %v4620_v8  ;;  %2289 = vmatpush.msra.mxu2 %v4841_v23  ;;  %v5908_v23 = vld [vmem:[#allocation12_spill] sm:$0xff] }
 0x349   :  { %2197 = vmatpush.msrb.mxu0 %v4622_v22  ;;  %2265 = vmatpush.msrb.mxu1 %v4786_v29  ;;  %vm1766_vm15 = vcmp.eq.f32.partialorder %v1765_v34, 8.507059e+37  ;;  %v5902_v29 = vld [vmem:[#allocation62_spill] sm:$0xff] }
 0x34a   :  { %v1773_v25 = vadd.f32 %v1772_v54, %v5884_v48  ;;  %2178 = vmatpush.msrb.mxu3 %v4628_v58  ;;  %v1760_v32 = vadd.f32 %v4933_v49, %v1759_v53  ;;  %2290 = vmatpush.msra.mxu2 %v4853_v38  ;;  %v1768_v58 = vor.u32 1.1754944e-38, %v1767_v51  ;;  %v5909_v38 = vld [vmem:[#allocation24_spill] sm:$0xff]  ;;  %v5912_v51 = vld [vmem:[#allocation23_spill] sm:$0xff] }
 0x34b   :  { %2198 = vmatpush.msrb.mxu0 %v4630_v14  ;;  %2266 = vmatpush.msrb.mxu1 %v4804_v12  ;;  %v5897_v12 = vld [vmem:[#allocation57_spill] sm:$0xff]  ;;  %v5911_v54 = vld [vmem:[#allocation48_spill] sm:$0xff] }
 0x34c   :  { %3220 = vtanh.f32 %v1773_v25  ;;  %2179 = vmatpush.msrb.mxu3 %v4635_v33  ;;  %v1764_v8 = vsel %vm1763_vm14, %v4933_v49, %v1760_v32  ;;  %2291 = vmatpush.msra.mxu2 %v4868_v17 }
 0x34d   :  { %2199 = vmatpush.msrb.mxu0 %v4641_v61  ;;  %2267 = vmatpush.msrb.mxu1 %v4817_v11  ;;  %v1769_v14 = vsel %vm1766_vm15, %v1768_v58, %v1764_v8 }
 0x34e   :  { %2180 = vmatpush.msrb.mxu3 %v4646_v2  ;;  %2292 = vmatpush.msra.mxu2 %v4879_v62  ;;  %v5886_v2 = vld [vmem:[#allocation50_spill] sm:$0xff] }
 0x34f   :  { %2200 = vmatpush.msrb.mxu0 %v4650_v6  ;;  %2268 = vmatpush.msrb.mxu1 %v4828_v10  ;;  %v5887_v6 = vld [vmem:[#allocation51_spill] sm:$0xff] }
 0x350   :  { %2181 = vmatpush.msrb.mxu3 %v4655_v39  ;;  %2293 = vmatpush.msra.mxu2 %v4890_v5  ;;  %v5888_v39 = vld [vmem:[#allocation68_spill] sm:$0xff]  ;;  %v5895_v5 = vld [vmem:[#allocation55_spill] sm:$0xff] }
 0x351   :  { %2201 = vmatpush.msrb.mxu0 %v4659_v55  ;;  %2269 = vmatpush.msrb.mxu1 %v4839_v30  ;;  %v5889_v55 = vld [vmem:[#allocation69_spill] sm:$0xff]  ;;  %v5905_v10 = vld [vmem:[#allocation67_spill] sm:$0xff] }
 0x352   :  { %v3221_v22 = vpop.eup %3220  ;;  %2182 = vmatpush.msrb.mxu3 %v4664_v19  ;;  %2294 = vmatpush.msra.mxu2 %v4900_v43  ;;  %v5890_v19 = vld [vmem:[#allocation52_spill] sm:$0xff]  ;;  %v5907_v30 = vld [vmem:[#allocation73_spill] sm:$0xff] }
 0x353   :  { %v1775_v11 = vsub.f32 %v4564_v21, %v3221_v22  ;;  %2202 = vmatpush.msrb.mxu0 %v4668_v26  ;;  %2270 = vmatpush.msrb.mxu1 %v4851_v52  ;;  %v5885_v21 = vld [vmem:[#allocation49_spill] sm:$0xff]  ;;  %v5891_v26 = vld [vmem:[#allocation72_spill] sm:$0xff] }
 0x354   :  { %2183 = vmatpush.msrb.mxu3 %v4676_v9  ;;  %2295 = vmatpush.msra.mxu2 %v4912_v28  ;;  %v5892_v9 = vld [vmem:[#allocation53_spill] sm:$0xff] }
 0x355   :  { %v1776_v33 = vmul.f32 %v1775_v11, %v1769_v14  ;;  %2203 = vmatpush.msrb.mxu0 %v4678_v57  ;;  %2271 = vmatpush.msrb.mxu1 %v4864_v27  ;;  %v5893_v57 = vld [vmem:[#allocation71_spill] sm:$0xff]  ;;  %v5910_v27 = vld [vmem:[#allocation17_spill] sm:$0xff]  ;;  %v5913_v14 = vld [vmem:[#allocation40_spill] sm:$0xff] }
 0x356   :  { %2184 = vmatpush.msrb.mxu3 %v4685_v15  ;;  %v5894_v15 = vld [vmem:[#allocation54_spill] sm:$0xff] }
 0x357   :  { %v4988_v61 = vadd.f32 %v3221_v22, %v1776_v33  ;;  %2204 = vmatpush.msrb.mxu0 %v5885_v21  ;;  %2272 = vmatpush.msrb.mxu1 %v5888_v39  ;;  %v5914_v39 = vld [vmem:[#allocation64_spill] sm:$0xff] }
 0x358   :  { %2185 = vmatpush.msrb.mxu3 %v5886_v2 }
 0x359   :  { %3110 = vst [vmem:[%s5570_s5 + $0x58] sm:$0xff] %v4988_v61  ;;  %1954 = vmatmul.f32.vlgmr.msra.gmra.mxu3 %v4988_v61  ;;  %1974 = vmatmul.f32.vlgmr.msra.gmra.mxu0 %v4988_v61 }
 0x35a   :  { %1994 = vmatmul.f32.vlgmr.msra.gmra.mxu1 %v4988_v61  ;;  %2205 = vmatpush.msrb.mxu0 %v5887_v6 }
 0x35b   :  { %2186 = vmatpush.msrb.mxu3 %v5889_v55  ;;  %2273 = vmatpush.msrb.mxu1 %v5891_v26 }
 0x35c   :  { %2206 = vmatpush.msrb.mxu0 %v5890_v19 }
 0x35d   :  { %2187 = vmatpush.msrb.mxu3 %v5892_v9  ;;  %2274 = vmatpush.msrb.mxu1 %v4897_v41 }
 0x35e   :  { %2207 = vmatpush.msrb.mxu0 %v5893_v57 }
 0x35f   :  { %2300 = vmatpush.msra.mxu3 %v5894_v15  ;;  %2275 = vmatpush.msrb.mxu1 %v4909_v20  ;;  %v5915_v15 = vld [vmem:[#allocation27_spill] sm:$0xff] }
 0x361   :  { %2301 = vmatpush.msra.mxu3 %v5895_v5 }
 0x363   :  { %2302 = vmatpush.msra.mxu3 %v5896_v44 }
 0x365   :  { %2303 = vmatpush.msra.mxu3 %v5897_v12 }
 0x367   :  { %2304 = vmatpush.msra.mxu3 %v5898_v45 }
 0x369   :  { %2305 = vmatpush.msra.mxu3 %v5899_v47 }
 0x36b   :  { %2306 = vmatpush.msra.mxu3 %v5900_v37 }
 0x36d   :  { %2307 = vmatpush.msra.mxu3 %v5901_v63 }
 0x36f   :  { %2308 = vmatpush.msra.mxu3 %v5902_v29 }
 0x371   :  { %2309 = vmatpush.msra.mxu3 %v5903_v46 }
 0x373   :  { %2310 = vmatpush.msra.mxu3 %v5904_v56 }
 0x375   :  { %2311 = vmatpush.msra.mxu3 %v5905_v10 }
 0x377   :  { %2312 = vmatpush.msra.mxu3 %v5906_v16 }
 0x379   :  { %2313 = vmatpush.msra.mxu3 %v5907_v30 }
 0x37b   :  { %2314 = vmatpush.msra.mxu3 %v5908_v23 }
 0x37d   :  { %2315 = vmatpush.msra.mxu3 %v4914_v31 }
 0x3b0   :  { %v1847_v62 = vpop.f32.mrf.mxu0  ;;  %v1867_v52 = vpop.f32.mrf.mxu1 }
 0x3b1   :  { %v2002_v1 = vadd.f32 %v1847_v62, %v5909_v38  ;;  %v2022_v17 = vadd.f32 %v1867_v52, %v5910_v27 }
 0x3b3   :  { %v3111_v43 = vmul.f32 -1.442695, %v2002_v1  ;;  %v3112_v59 = vmul.f32 -1.442695, %v2022_v17 }
 0x3b5   :  { %3222 = vpow2.f32 %v3111_v43 }
 0x3b6   :  { %3224 = vpow2.f32 %v3112_v59 }
 0x3b7   :  { %v1887_v40 = vpop.f32.mrf.mxu2 }
 0x3b8   :  { %v2042_v53 = vadd.f32 %v5911_v54, %v1887_v40  ;;  %v5069_v54 = vld [vmem:[#allocation6 + $0x160] sm:$0xff] }
 0x3bb   :  { %v3223_v60 = vpop.eup %3222 }
 0x3bc   :  { %v3225_v28 = vpop.eup %3224  ;;  %v2006_v36 = vadd.f32 1.0, %v3223_v60 }
 0x3bd   :  { %v2026_v41 = vadd.f32 1.0, %v3225_v28 }
 0x3be   :  { %3226 = vrcp.f32 %v2006_v36  ;;  %v2018_v35 = vand.u32 2147483648, %v2006_v36  ;;  %v2016_v50 = vand.u32 2147483647, %v2006_v36  ;;  %vm2012_vm1 = vweird.f32 %v2006_v36 }
 0x3bf   :  { %3228 = vrcp.f32 %v2026_v41  ;;  %v2038_v22 = vand.u32 2147483648, %v2026_v41  ;;  %vm2032_vm5 = vweird.f32 %v2026_v41  ;;  %v2036_v58 = vand.u32 2147483647, %v2026_v41 }
 0x3c0   :  { %v2019_v13 = vor.u32 1.1754944e-38, %v2018_v35  ;;  %vm2017_vm3 = vcmp.eq.f32.partialorder %v2016_v50, 8.507059e+37 }
 0x3c1   :  { %v2039_v6 = vor.u32 1.1754944e-38, %v2038_v22  ;;  %vm2037_vm7 = vcmp.eq.f32.partialorder %v2036_v58, 8.507059e+37  ;;  %v5094_v22 = vld [vmem:[#allocation6 + $0x110] sm:$0xff]  ;;  %v5096_v58 = vld [vmem:[#allocation6 + $0x118] sm:$0xff] }
 0x3c4   :  { %v3227_v20 = vpop.eup %3226 }
 0x3c5   :  { %v3229_v18 = vpop.eup %3228  ;;  %v2008_v7 = vmul.f32 %v3227_v20, %v2006_v36  ;;  %vm2013_vm0 = vweird.f32 %v3227_v20  ;;  %v5916_v36 = vld [vmem:[#allocation41_spill] sm:$0xff] }
 0x3c6   :  { %v2028_v49 = vmul.f32 %v3229_v18, %v2026_v41  ;;  %vm2014_vm2 = vmor %vm2012_vm1, %vm2013_vm0  ;;  %vm2033_vm4 = vweird.f32 %v3229_v18 }
 0x3c7   :  { %v2009_v31 = vsub.f32 1.0, %v2008_v7  ;;  %vm2034_vm6 = vmor %vm2032_vm5, %vm2033_vm4 }
 0x3c8   :  { %v2029_v3 = vsub.f32 1.0, %v2028_v49 }
 0x3c9   :  { %v2010_v42 = vmul.f32 %v3227_v20, %v2009_v31 }
 0x3ca   :  { %v2030_v32 = vmul.f32 %v3229_v18, %v2029_v3  ;;  %v5058_v3 = vld [vmem:[#allocation6 + $0x170] sm:$0xff] }
 0x3cb   :  { %v2011_v24 = vadd.f32 %v3227_v20, %v2010_v42  ;;  %2494 = vmatpush.msra.mxu1 %v5058_v3 }
 0x3cc   :  { %v2031_v8 = vadd.f32 %v3229_v18, %v2030_v32  ;;  %v5083_v32 = vld [vmem:[#allocation6 + $0x120] sm:$0xff] }
 0x3cd   :  { %v2015_v4 = vsel %vm2014_vm2, %v3227_v20, %v2011_v24  ;;  %v5056_v24 = vld [vmem:[#allocation6 + $0x168] sm:$0xff] }
 0x3ce   :  { %v2020_v48 = vsel %vm2017_vm3, %v2019_v13, %v2015_v4  ;;  %v2035_v21 = vsel %vm2034_vm6, %v3229_v18, %v2031_v8  ;;  %2474 = vmatpush.msra.mxu0 %v5056_v24  ;;  %v5065_v13 = vld [vmem:[#allocation6 + $0x150] sm:$0xff]  ;;  %v5067_v4 = vld [vmem:[#allocation6 + $0x158] sm:$0xff]  ;;  %v5092_v8 = vld [vmem:[#allocation6 + $0x108] sm:$0xff] }
 0x3cf   :  { %v2043_v25 = vmul.f32 %v2042_v53, %v2020_v48  ;;  %v2040_v26 = vsel %vm2037_vm7, %v2039_v6, %v2035_v21  ;;  %2495 = vmatpush.msra.mxu1 %v5067_v4  ;;  %v5074_v53 = vld [vmem:[#allocation6 + $0x138] sm:$0xff]  ;;  %v5076_v48 = vld [vmem:[#allocation6 + $0x140] sm:$0xff]  ;;  %v5113_v6 = vld [vmem:[#allocation6 + $0xe8] sm:$0xff] }
 0x3d0   :  { %2475 = vmatpush.msra.mxu0 %v5065_v13  ;;  %v5109_v21 = vld [vmem:[#allocation6 + $0xd8] sm:$0xff] }
 0x3d1   :  { %v2044_v34 = vadd.f32 %v2043_v25, %v5912_v51  ;;  %v5078_v25 = vld [vmem:[#allocation6 + $0x148] sm:$0xff]  ;;  %2496 = vmatpush.msra.mxu1 %v5076_v48 }
 0x3d2   :  { %2476 = vmatpush.msra.mxu0 %v5074_v53  ;;  %v5085_v51 = vld [vmem:[#allocation6 + $0x128] sm:$0xff] }
 0x3d3   :  { %3230 = vtanh.f32 %v2044_v34  ;;  %v5087_v34 = vld [vmem:[#allocation6 + $0x130] sm:$0xff]  ;;  %2497 = vmatpush.msra.mxu1 %v5085_v51 }
 0x3d4   :  { %2477 = vmatpush.msra.mxu0 %v5083_v32 }
 0x3d5   :  { %2498 = vmatpush.msra.mxu1 %v5094_v22 }
 0x3d6   :  { %v1975_v11 = vpop.f32.mrf.mxu0  ;;  %2478 = vmatpush.msra.mxu0 %v5092_v8 }
 0x3d7   :  { %v2073_v33 = vadd.f32 %v1975_v11, %v5913_v14  ;;  %v1995_v52 = vpop.f32.mrf.mxu1  ;;  %v5101_v11 = vld [vmem:[#allocation6 + $0xf0] sm:$0xff]  ;;  %v5103_v14 = vld [vmem:[#allocation6 + $0xf8] sm:$0xff] }
 0x3d8   :  { %v2093_v17 = vadd.f32 %v4559_v0, %v1995_v52  ;;  %2479 = vmatpush.msra.mxu0 %v5101_v11  ;;  %2499 = vmatpush.msra.mxu1 %v5103_v14  ;;  %v5159_v52 = vld [vmem:[#allocation6 + $0x68] sm:$0xff] }
 0x3d9   :  { %v3231_v2 = vpop.eup %3230  ;;  %v3114_v19 = vmul.f32 -1.442695, %v2073_v33  ;;  %v5105_v33 = vld [vmem:[#allocation6 + $0x100] sm:$0xff] }
 0x3da   :  { %v2046_v55 = vsub.f32 %v5914_v39, %v3231_v2  ;;  %2480 = vmatpush.msra.mxu0 %v5109_v21 }
 0x3db   :  { %3232 = vpow2.f32 %v3114_v19  ;;  %v5116_v19 = vld [vmem:[#allocation6 + $0xc0] sm:$0xff] }
 0x3dc   :  { %v1955_v9 = vpop.f32.mrf.mxu3  ;;  %v2047_v57 = vmul.f32 %v2046_v55, %v2040_v26  ;;  %v5118_v26 = vld [vmem:[#allocation6 + $0xc8] sm:$0xff]  ;;  %2481 = vmatpush.msra.mxu0 %v5116_v19 }
 0x3dd   :  { %v2053_v5 = vadd.f32 %v1955_v9, %v5915_v15  ;;  %v5917_v9 = vld [vmem:[#allocation19_spill] sm:$0xff]  ;;  %v5918_v15 = vld [vmem:[#allocation26_spill] sm:$0xff] }
 0x3de   :  { %v5035_v44 = vadd.f32 %v3231_v2, %v2047_v57  ;;  %v5111_v2 = vld [vmem:[#allocation6 + $0xe0] sm:$0xff] }
 0x3df   :  { %v3113_v12 = vmul.f32 -1.442695, %v2053_v5  ;;  %2500 = vmatpush.msra.mxu1 %v5111_v2 }
 0x3e0   :  { %3115 = vst [vmem:[%s5570_s5 + $0x20] sm:$0xff] %v5035_v44  ;;  %2168 = vmatmul.f32.vlgmr.msrb.gmra.mxu2 %v5035_v44  ;;  %2188 = vmatmul.f32.vlgmr.msrb.gmra.mxu3 %v5035_v44 }
 0x3e1   :  { %3234 = vpow2.f32 %v3113_v12  ;;  %2208 = vmatmul.f32.vlgmr.msrb.gmra.mxu0 %v5035_v44  ;;  %v3233_v45 = vpop.eup %3232  ;;  %v5124_v12 = vld [vmem:[#allocation6 + $0xd0] sm:$0xff]  ;;  %2501 = vmatpush.msra.mxu1 %v5118_v26 }
 0x3e2   :  { %v2077_v37 = vadd.f32 1.0, %v3233_v45  ;;  %v5127_v45 = vld [vmem:[#allocation6 + $0xa8] sm:$0xff] }
 0x3e3   :  { %2482 = vmatpush.msra.mxu0 %v5127_v45 }
 0x3e4   :  { %v2089_v18 = vand.u32 2147483648, %v2077_v37  ;;  %vm2083_vm13 = vweird.f32 %v2077_v37  ;;  %v2087_v7 = vand.u32 2147483647, %v2077_v37 }
 0x3e6   :  { %v2090_v35 = vor.u32 1.1754944e-38, %v2089_v18  ;;  %vm2088_vm15 = vcmp.eq.f32.partialorder %v2087_v7, 8.507059e+37  ;;  %v5187_v18 = vld [vmem:[#allocation6 + $0x18] sm:$0xff]  ;;  %v5189_v7 = vld [vmem:[#allocation6 + $0x20] sm:$0xff] }
 0x3e7   :  { %v3235_v47 = vpop.eup %3234  ;;  %5921 = vst [vmem:[#allocation10_spill] sm:$0xff] %v5189_v7 }
 0x3e8   :  { %v2057_v63 = vadd.f32 1.0, %v3235_v47  ;;  %v5129_v47 = vld [vmem:[#allocation6 + $0xb0] sm:$0xff] }
 0x3e9   :  { %2502 = vmatpush.msra.mxu1 %v5129_v47 }
 0x3ea   :  { %3236 = vrcp.f32 %v2057_v63  ;;  %v2069_v30 = vand.u32 2147483648, %v2057_v63  ;;  %v2067_v62 = vand.u32 2147483647, %v2057_v63  ;;  %vm2063_vm9 = vweird.f32 %v2057_v63 }
 0x3eb   :  { %3238 = vrcp.f32 %v2077_v37 }
 0x3ec   :  { %v2070_v27 = vor.u32 1.1754944e-38, %v2069_v30  ;;  %vm2068_vm11 = vcmp.eq.f32.partialorder %v2067_v62, 8.507059e+37  ;;  %v5147_v30 = vld [vmem:[#allocation6 + $0x80] sm:$0xff] }
 0x3ed   :  { %v5157_v62 = vld [vmem:[#allocation6 + $0x60] sm:$0xff] }
 0x3f0   :  { %v3237_v29 = vpop.eup %3236 }
 0x3f1   :  { %v3239_v46 = vpop.eup %3238  ;;  %v2059_v56 = vmul.f32 %v3237_v29, %v2057_v63  ;;  %vm2064_vm8 = vweird.f32 %v3237_v29 }
 0x3f2   :  { %v2079_v16 = vmul.f32 %v3239_v46, %v2077_v37  ;;  %vm2065_vm10 = vmor %vm2063_vm9, %vm2064_vm8  ;;  %vm2084_vm12 = vweird.f32 %v3239_v46 }
 0x3f3   :  { %v2060_v10 = vsub.f32 1.0, %v2059_v56  ;;  %vm2085_vm14 = vmor %vm2083_vm13, %vm2084_vm12  ;;  %v5138_v56 = vld [vmem:[#allocation6 + $0x98] sm:$0xff] }
 0x3f4   :  { %v2080_v1 = vsub.f32 1.0, %v2079_v16  ;;  %v5145_v16 = vld [vmem:[#allocation6 + $0x78] sm:$0xff]  ;;  %2503 = vmatpush.msra.mxu1 %v5138_v56 }
 0x3f5   :  { %v2061_v23 = vmul.f32 %v3237_v29, %v2060_v10  ;;  %v5142_v10 = vld [vmem:[#allocation6 + $0xa0] sm:$0xff] }
 0x3f6   :  { %v2081_v28 = vmul.f32 %v3239_v46, %v2080_v1  ;;  %2504 = vmatpush.msra.mxu1 %v5147_v30 }
 0x3f7   :  { %v2062_v38 = vadd.f32 %v3237_v29, %v2061_v23  ;;  %v5151_v23 = vld [vmem:[#allocation6 + $0x88] sm:$0xff] }
 0x3f8   :  { %v2082_v20 = vadd.f32 %v3239_v46, %v2081_v28  ;;  %2505 = vmatpush.msra.mxu1 %v5159_v52 }
 0x3f9   :  { %v2066_v43 = vsel %vm2065_vm10, %v3237_v29, %v2062_v38  ;;  %v5133_v29 = vld [vmem:[#allocation6 + $0xb8] sm:$0xff]  ;;  %v5161_v38 = vld [vmem:[#allocation6 + $0x70] sm:$0xff] }
 0x3fa   :  { %v2071_v59 = vsel %vm2068_vm11, %v2070_v27, %v2066_v43  ;;  %v2086_v31 = vsel %vm2085_vm14, %v3239_v46, %v2082_v20  ;;  %v5136_v46 = vld [vmem:[#allocation6 + $0x90] sm:$0xff]  ;;  %v5166_v43 = vld [vmem:[#allocation6 + $0x48] sm:$0xff]  ;;  %v5181_v20 = vld [vmem:[#allocation6 + $0x40] sm:$0xff] }
 0x3fb   :  { %v2094_v60 = vmul.f32 %v2093_v17, %v2071_v59  ;;  %v2091_v42 = vsel %vm2088_vm15, %v2090_v35, %v2086_v31  ;;  %2483 = vmatpush.msra.mxu0 %v5136_v46  ;;  %v5168_v59 = vld [vmem:[#allocation6 + $0x50] sm:$0xff]  ;;  %5920 = vst [vmem:[#allocation14_spill] sm:$0xff] %v5181_v20  ;;  %v5191_v31 = vld [vmem:[#allocation6 + $0x28] sm:$0xff] }
 0x3fc   :  { %2506 = vmatpush.msra.mxu1 %v5168_v59  ;;  %5922 = vst [vmem:[#allocation20_spill] sm:$0xff] %v5191_v31  ;;  %v5198_v35 = vld [vmem:[#allocation6 + $0x8] sm:$0xff] }
 0x3fd   :  { %v2095_v41 = vadd.f32 %v2094_v60, %v5916_v36  ;;  %2484 = vmatpush.msra.mxu0 %v5145_v16  ;;  %v5170_v60 = vld [vmem:[#allocation6 + $0x58] sm:$0xff]  ;;  %v5177_v36 = vld [vmem:[#allocation6 + $0x30] sm:$0xff]  ;;  %5923 = vst [vmem:[#allocation36_spill] sm:$0xff] %v5198_v35 }
 0x3ff   :  { %3240 = vtanh.f32 %v2095_v41  ;;  %2485 = vmatpush.msra.mxu0 %v5157_v62  ;;  %v5179_v41 = vld [vmem:[#allocation6 + $0x38] sm:$0xff] }
 0x400   :  { %5919 = vst [vmem:[#allocation11_spill] sm:$0xff] %v5179_v41  ;;  %2507 = vmatpush.msra.mxu1 %v5179_v41  ;;  %v5402_v41 = vld [vmem:[#allocation6 + $0x190] sm:$0xff] }
 0x401   :  { %2486 = vmatpush.msra.mxu0 %v5166_v43 }
 0x402   :  { %2508 = vmatpush.msra.mxu1 %v5189_v7  ;;  %v5307_v7 = vld [vmem:[#allocation6 + $0x248] sm:$0xff] }
 0x403   :  { %2487 = vmatpush.msra.mxu0 %v5177_v36 }
 0x404   :  { %2509 = vmatpush.msra.mxu1 %v5198_v35  ;;  %v5296_v35 = vld [vmem:[#allocation6 + $0x268] sm:$0xff] }
 0x405   :  { %v3241_v49 = vpop.eup %3240  ;;  %2488 = vmatpush.msra.mxu0 %v5187_v18  ;;  %5936 = vst [vmem:[#allocation38_spill] sm:$0xff] %v5296_v35 }
 0x406   :  { %v2097_v0 = vsub.f32 %v4988_v61, %v3241_v49  ;;  %v5060_v61 = vld [vmem:[#allocation6 + $0x178] sm:$0xff] }
 0x407   :  { %2514 = vmatpush.msrb.mxu2 %v5060_v61 }
 0x408   :  { %v2098_v50 = vmul.f32 %v2097_v0, %v2091_v42  ;;  %v5200_v0 = vld [vmem:[#allocation6 + $0x10] sm:$0xff] }
 0x409   :  { %2515 = vmatpush.msrb.mxu2 %v5069_v54  ;;  %5924 = vst [vmem:[#allocation66_spill] sm:$0xff] %v5200_v0 }
 0x40a   :  { %v5047_v40 = vadd.f32 %v3241_v49, %v2098_v50  ;;  %v5196_v49 = vld [vmem:[#allocation6] sm:$0xff] }
 0x40b   :  { %2516 = vmatpush.msrb.mxu2 %v5078_v25  ;;  %2489 = vmatpush.msra.mxu0 %v5196_v49 }
 0x40c   :  { %3116 = vst [vmem:[%s5570_s5 + $0x60] sm:$0xff] %v5047_v40  ;;  %2276 = vmatmul.f32.vlgmr.msrb.gmra.mxu1 %v5047_v40  ;;  %2296 = vmatmul.f32.vlgmr.msra.gmra.mxu2 %v5047_v40 }
 0x40d   :  { %2316 = vmatmul.f32.vlgmr.msra.gmra.mxu3 %v5047_v40  ;;  %2517 = vmatpush.msrb.mxu2 %v5087_v34 }
 0x40f   :  { %2518 = vmatpush.msrb.mxu2 %v5096_v58 }
 0x411   :  { %2519 = vmatpush.msrb.mxu2 %v5105_v33 }
 0x413   :  { %2520 = vmatpush.msrb.mxu2 %v5113_v6 }
 0x415   :  { %2521 = vmatpush.msrb.mxu2 %v5124_v12 }
 0x417   :  { %2522 = vmatpush.msrb.mxu2 %v5133_v29 }
 0x419   :  { %2523 = vmatpush.msrb.mxu2 %v5142_v10 }
 0x41b   :  { %2524 = vmatpush.msrb.mxu2 %v5151_v23 }
 0x41d   :  { %2525 = vmatpush.msrb.mxu2 %v5161_v38 }
 0x41f   :  { %2526 = vmatpush.msrb.mxu2 %v5170_v60 }
 0x421   :  { %2527 = vmatpush.msrb.mxu2 %v5181_v20  ;;  %v5309_v20 = vld [vmem:[#allocation6 + $0x250] sm:$0xff] }
 0x422   :  { %5937 = vst [vmem:[#allocation49_spill] sm:$0xff] %v5309_v20 }
 0x423   :  { %2528 = vmatpush.msrb.mxu2 %v5191_v31 }
 0x425   :  { %2529 = vmatpush.msrb.mxu2 %v5200_v0 }
 0x427   :  { %2796 = vmatpush.msra.mxu2 %v5056_v24  ;;  %v5216_v24 = vld [vmem:[#allocation6 + $0x2f8] sm:$0xff] }
 0x428   :  { %5925 = vst [vmem:[#allocation13_spill] sm:$0xff] %v5216_v24  ;;  %2622 = vmatpush.msrb.mxu1 %v5216_v24  ;;  %v5292_v24 = vld [vmem:[#allocation6 + $0x258] sm:$0xff] }
 0x429   :  { %2797 = vmatpush.msra.mxu2 %v5065_v13 }
 0x42b   :  { %2798 = vmatpush.msra.mxu2 %v5074_v53  ;;  %v5224_v53 = vld [vmem:[%s5569_s4] ss:$0 sm:$0xff] }
 0x42c   :  { %5926 = vst [vmem:[#allocation34_spill] sm:$0xff] %v5224_v53 }
 0x42d   :  { %2799 = vmatpush.msra.mxu2 %v5083_v32  ;;  %v5230_v32 = vld [vmem:[#allocation6 + $0x2d8] sm:$0xff] }
 0x42f   :  { %2800 = vmatpush.msra.mxu2 %v5092_v8  ;;  %v5929_v8 = vld [vmem:[#allocation22_spill] sm:$0xff] }
 0x431   :  { %2801 = vmatpush.msra.mxu2 %v5101_v11  ;;  %v5261_v11 = vld [vmem:[#allocation6 + $0x288] sm:$0xff] }
 0x433   :  { %2802 = vmatpush.msra.mxu2 %v5109_v21 }
 0x435   :  { %2803 = vmatpush.msra.mxu2 %v5116_v19 }
 0x437   :  { %2804 = vmatpush.msra.mxu2 %v5127_v45  ;;  %v5294_v45 = vld [vmem:[#allocation6 + $0x260] sm:$0xff] }
 0x439   :  { %2805 = vmatpush.msra.mxu2 %v5136_v46 }
 0x43b   :  { %2806 = vmatpush.msra.mxu2 %v5145_v16 }
 0x43d   :  { %2807 = vmatpush.msra.mxu2 %v5157_v62 }
 0x43f   :  { %2808 = vmatpush.msra.mxu2 %v5166_v43  ;;  %v5352_v43 = vld [vmem:[#allocation6 + $0x1e0] sm:$0xff] }
 0x441   :  { %2809 = vmatpush.msra.mxu2 %v5177_v36  ;;  %v5358_v36 = vld [vmem:[#allocation6 + $0x1f0] sm:$0xff] }
 0x442   :  { %5943 = vst [vmem:[#allocation52_spill] sm:$0xff] %v5358_v36 }
 0x443   :  { %2810 = vmatpush.msra.mxu2 %v5187_v18  ;;  %v5385_v18 = vld [vmem:[#allocation6 + $0x198] sm:$0xff] }
 0x445   :  { %2811 = vmatpush.msra.mxu2 %v5196_v49  ;;  %v5397_v49 = vld [vmem:[#allocation6 + $0x180] sm:$0xff] }
 0x463   :  { %v2169_v39 = vpop.f32.mrf.mxu2  ;;  %v2189_v55 = vpop.f32.mrf.mxu3 }
 0x464   :  { %v2324_v57 = vadd.f32 %v2169_v39, %v5917_v9  ;;  %v2344_v5 = vadd.f32 %v2189_v55, %v5918_v15 }
 0x466   :  { %v3117_v37 = vmul.f32 -1.442695, %v2324_v57  ;;  %v3118_v63 = vmul.f32 -1.442695, %v2344_v5 }
 0x468   :  { %3242 = vpow2.f32 %v3117_v37  ;;  %v2209_v37 = vpop.f32.mrf.mxu0 }
 0x469   :  { %3244 = vpow2.f32 %v3118_v63 }
 0x46e   :  { %v3243_v1 = vpop.eup %3242 }
 0x46f   :  { %v3245_v27 = vpop.eup %3244  ;;  %v2328_v17 = vadd.f32 1.0, %v3243_v1  ;;  %v5212_v1 = vld [vmem:[#allocation6 + $0x2e8] sm:$0xff] }
 0x470   :  { %v5172_v28 = vadd.f32 1.0, %v3245_v27  ;;  %v5214_v27 = vld [vmem:[#allocation6 + $0x2f0] sm:$0xff]  ;;  %2582 = vmatpush.msrb.mxu3 %v5212_v1 }
 0x471   :  { %3246 = vrcp.f32 %v2328_v17  ;;  %v2340_v9 = vand.u32 2147483648, %v2328_v17  ;;  %v2338_v5 = vand.u32 2147483647, %v2328_v17  ;;  %vm2334_vm1 = vweird.f32 %v2328_v17  ;;  %2602 = vmatpush.msrb.mxu0 %v5214_v27 }
 0x472   :  { %3248 = vrcp.f32 %v5172_v28  ;;  %vm2354_vm5 = vweird.f32 %v5172_v28  ;;  %v2360_v21 = vand.u32 2147483648, %v5172_v28 }
 0x473   :  { %v2341_v13 = vor.u32 1.1754944e-38, %v2340_v9  ;;  %vm2339_vm3 = vcmp.eq.f32.partialorder %v2338_v5, 8.507059e+37  ;;  %v5232_v9 = vld [vmem:[#allocation6 + $0x2e0] sm:$0xff]  ;;  %2603 = vmatpush.msrb.mxu0 %v5230_v32 }
 0x474   :  { %5927 = vst [vmem:[#allocation16_spill] sm:$0xff] %v5232_v9  ;;  %2623 = vmatpush.msrb.mxu1 %v5232_v9  ;;  %v5240_v5 = vld [vmem:[#allocation6 + $0x2c0] sm:$0xff] }
 0x475   :  { %2604 = vmatpush.msrb.mxu0 %v5240_v5 }
 0x477   :  { %v3247_v42 = vpop.eup %3246 }
 0x478   :  { %v5205_v50 = vpop.eup %3248  ;;  %v2330_v39 = vmul.f32 %v3247_v42, %v2328_v17  ;;  %vm2335_vm0 = vweird.f32 %v3247_v42  ;;  %v2364_v17 = vadd.f32 %v5224_v53, %v2209_v37  ;;  %v5242_v37 = vld [vmem:[#allocation6 + $0x2c8] sm:$0xff]  ;;  %v5276_v53 = vld [vmem:[#allocation6 + $0x278] sm:$0xff] }
 0x479   :  { %v2350_v57 = vmul.f32 %v5205_v50, %v5172_v28  ;;  %vm2336_vm2 = vmor %vm2334_vm1, %vm2335_vm0  ;;  %5928 = vst [vmem:[#allocation21_spill] sm:$0xff] %v5242_v37  ;;  %2624 = vmatpush.msrb.mxu1 %v5242_v37  ;;  %vm2355_vm4 = vweird.f32 %v5205_v50 }
 0x47a   :  { %v2331_v55 = vsub.f32 1.0, %v2330_v39  ;;  %vm5283_vm6 = vmor %vm2354_vm5, %vm2355_vm4 }
 0x47b   :  { %v2351_v39 = vsub.f32 1.0, %v2350_v57 }
 0x47c   :  { %v2332_v15 = vmul.f32 %v3247_v42, %v2331_v55 }
 0x47e   :  { %v2333_v63 = vadd.f32 %v3247_v42, %v2332_v15  ;;  %v5228_v15 = vld [vmem:[#allocation6 + $0x2d0] sm:$0xff] }
 0x47f   :  { %2583 = vmatpush.msrb.mxu3 %v5228_v15 }
 0x480   :  { %v2337_v55 = vsel %vm2336_vm2, %v3247_v42, %v2333_v63  ;;  %v5238_v42 = vld [vmem:[#allocation6 + $0x2b8] sm:$0xff]  ;;  %v2352_v63 = vmul.f32 %v5205_v50, %v2351_v39 }
 0x481   :  { %v2342_v57 = vsel %vm2339_vm3, %v2341_v13, %v2337_v55  ;;  %2584 = vmatpush.msrb.mxu3 %v5238_v42  ;;  %v5252_v55 = vld [vmem:[#allocation6 + $0x2a8] sm:$0xff]  ;;  %v5265_v39 = vld [vmem:[#allocation6 + $0x298] sm:$0xff] }
 0x482   :  { %v2365_v0 = vmul.f32 %v2364_v17, %v2342_v57  ;;  %v5250_v17 = vld [vmem:[#allocation6 + $0x2a0] sm:$0xff]  ;;  %v5254_v57 = vld [vmem:[#allocation6 + $0x2b0] sm:$0xff]  ;;  %2605 = vmatpush.msrb.mxu0 %v5252_v55  ;;  %5931 = vst [vmem:[#allocation18_spill] sm:$0xff] %v5265_v39 }
 0x483   :  { %5930 = vst [vmem:[#allocation15_spill] sm:$0xff] %v5254_v57  ;;  %2585 = vmatpush.msrb.mxu3 %v5250_v17  ;;  %2625 = vmatpush.msrb.mxu1 %v5254_v57  ;;  %v5278_v57 = vld [vmem:[#allocation6 + $0x280] sm:$0xff] }
 0x484   :  { %v2366_v13 = vadd.f32 %v2365_v0, %v5929_v8  ;;  %v5263_v0 = vld [vmem:[#allocation6 + $0x290] sm:$0xff]  ;;  %v2353_v8 = vadd.f32 %v5205_v50, %v2352_v63  ;;  %5932 = vst [vmem:[#allocation37_spill] sm:$0xff] %v5278_v57  ;;  %v2358_v63 = vand.u32 2147483647, %v5172_v28 }
 0x485   :  { %2586 = vmatpush.msrb.mxu3 %v5261_v11  ;;  %2606 = vmatpush.msrb.mxu0 %v5263_v0 }
 0x486   :  { %3250 = vtanh.f32 %v2366_v13  ;;  %2626 = vmatpush.msrb.mxu1 %v5265_v39  ;;  %v5274_v13 = vld [vmem:[#allocation6 + $0x270] sm:$0xff]  ;;  %v5935_v39 = vld [vmem:[#allocation29_spill] sm:$0xff]  ;;  %v2357_v28 = vsel %vm5283_vm6, %v5205_v50, %v2353_v8  ;;  %vm2359_vm7 = vcmp.eq.f32.partialorder %v2358_v63, 8.507059e+37 }
 0x487   :  { %2587 = vmatpush.msrb.mxu3 %v5274_v13  ;;  %2607 = vmatpush.msrb.mxu0 %v5276_v53  ;;  %v5318_v8 = vld [vmem:[#allocation6 + $0x230] sm:$0xff] }
 0x488   :  { %2627 = vmatpush.msrb.mxu1 %v5278_v57  ;;  %v5305_v57 = vld [vmem:[#allocation6 + $0x240] sm:$0xff] }
 0x489   :  { %v2277_v37 = vpop.f32.mrf.mxu1  ;;  %2588 = vmatpush.msrb.mxu3 %v5292_v24  ;;  %2608 = vmatpush.msrb.mxu0 %v5294_v45 }
 0x48a   :  { %v2375_v9 = vadd.f32 %v2277_v37, %v5935_v39  ;;  %v2361_v37 = vor.u32 1.1754944e-38, %v2360_v21  ;;  %2628 = vmatpush.msrb.mxu1 %v5296_v35  ;;  %v5320_v21 = vld [vmem:[#allocation6 + $0x238] sm:$0xff]  ;;  %v5390_v35 = vld [vmem:[#allocation6 + $0x1a8] sm:$0xff] }
 0x48b   :  { %2589 = vmatpush.msrb.mxu3 %v5305_v57  ;;  %2609 = vmatpush.msrb.mxu0 %v5307_v7  ;;  %5938 = vst [vmem:[#allocation50_spill] sm:$0xff] %v5320_v21 }
 0x48c   :  { %v3251_v31 = vpop.eup %3250  ;;  %v3119_v39 = vmul.f32 -1.442695, %v2375_v9  ;;  %v2362_v50 = vsel %vm2359_vm7, %v2361_v37, %v2357_v28  ;;  %2629 = vmatpush.msrb.mxu1 %v5309_v20  ;;  %v5316_v9 = vld [vmem:[#allocation6 + $0x228] sm:$0xff]  ;;  %v5327_v28 = vld [vmem:[#allocation6 + $0x210] sm:$0xff]  ;;  %v5329_v37 = vld [vmem:[#allocation6 + $0x218] sm:$0xff]  ;;  %5948 = vst [vmem:[#allocation55_spill] sm:$0xff] %v5390_v35 }
 0x48d   :  { %v2368_v46 = vsub.f32 %v5035_v44, %v3251_v31  ;;  %2590 = vmatpush.msrb.mxu3 %v5316_v9  ;;  %2610 = vmatpush.msrb.mxu0 %v5318_v8  ;;  %v5939_v44 = vld [vmem:[#allocation42_spill] sm:$0xff] }
 0x48e   :  { %3252 = vpow2.f32 %v3119_v39  ;;  %2630 = vmatpush.msrb.mxu1 %v5320_v21  ;;  %v5331_v39 = vld [vmem:[#allocation6 + $0x220] sm:$0xff] }
 0x48f   :  { %v2297_v16 = vpop.f32.mrf.mxu2  ;;  %v2369_v19 = vmul.f32 %v2368_v46, %v2362_v50  ;;  %5940 = vst [vmem:[#allocation51_spill] sm:$0xff] %v5331_v39  ;;  %2591 = vmatpush.msrb.mxu3 %v5327_v28  ;;  %2611 = vmatpush.msrb.mxu0 %v5329_v37  ;;  %v5339_v46 = vld [vmem:[#allocation6 + $0x1f8] sm:$0xff]  ;;  %v5341_v50 = vld [vmem:[#allocation6 + $0x200] sm:$0xff] }
 0x490   :  { %v2395_v63 = vadd.f32 %v2297_v16, %v5939_v44  ;;  %2631 = vmatpush.msrb.mxu1 %v5331_v39  ;;  %v5343_v16 = vld [vmem:[#allocation6 + $0x208] sm:$0xff]  ;;  %v5367_v39 = vld [vmem:[#allocation6 + $0x1d0] sm:$0xff] }
 0x491   :  { %v5334_v20 = vadd.f32 %v3251_v31, %v2369_v19  ;;  %5942 = vst [vmem:[#allocation69_spill] sm:$0xff] %v5343_v16  ;;  %2592 = vmatpush.msrb.mxu3 %v5339_v46  ;;  %v5356_v19 = vld [vmem:[#allocation6 + $0x1e8] sm:$0xff]  ;;  %2612 = vmatpush.msrb.mxu0 %v5341_v50 }
 0x492   :  { %v3120_v62 = vmul.f32 -1.442695, %v2395_v63  ;;  %2632 = vmatpush.msrb.mxu1 %v5343_v16  ;;  %v5364_v63 = vld [vmem:[#allocation6 + $0x1c8] sm:$0xff]  ;;  %v5380_v16 = vld [vmem:[#allocation6 + $0x1c0] sm:$0xff] }
 0x493   :  { %5941 = vst [vmem:[#allocation68_spill] sm:$0xff] %v5334_v20  ;;  %2490 = vmatmul.f32.vlgmr.msra.gmra.mxu0 %v5334_v20  ;;  %2510 = vmatmul.f32.vlgmr.msra.gmra.mxu1 %v5334_v20 }
 0x494   :  { %3121 = vst [vmem:[%s5570_s5 + $0x28] sm:$0xff] %v5334_v20  ;;  %v3253_v31 = vpop.eup %3252  ;;  %3254 = vpow2.f32 %v3120_v62  ;;  %2530 = vmatmul.f32.vlgmr.msrb.gmra.mxu2 %v5334_v20  ;;  %2593 = vmatpush.msrb.mxu3 %v5352_v43  ;;  %v5369_v62 = vld [vmem:[#allocation6 + $0x1d8] sm:$0xff] }
 0x495   :  { %v5360_v44 = vadd.f32 1.0, %v3253_v31  ;;  %5944 = vst [vmem:[#allocation72_spill] sm:$0xff] %v5364_v63  ;;  %2613 = vmatpush.msrb.mxu0 %v5356_v19  ;;  %2633 = vmatpush.msrb.mxu1 %v5358_v36  ;;  %v5375_v31 = vld [vmem:[#allocation6 + $0x1b0] sm:$0xff]  ;;  %v5378_v20 = vld [vmem:[#allocation6 + $0x1b8] sm:$0xff]  ;;  %v5388_v36 = vld [vmem:[#allocation6 + $0x1a0] sm:$0xff] }
 0x496   :  { %5945 = vst [vmem:[#allocation53_spill] sm:$0xff] %v5369_v62  ;;  %2594 = vmatpush.msrb.mxu3 %v5364_v63  ;;  %2924 = vmatpush.msrb.mxu2 %v5214_v27 }
 0x497   :  { %3256 = vrcp.f32 %v5360_v44  ;;  %5946 = vst [vmem:[#allocation71_spill] sm:$0xff] %v5375_v31  ;;  %2614 = vmatpush.msrb.mxu0 %v5367_v39  ;;  %2634 = vmatpush.msrb.mxu1 %v5369_v62  ;;  %v5400_v62 = vld [vmem:[#allocation6 + $0x188] sm:$0xff]  ;;  %vm2385_vm9 = vweird.f32 %v5360_v44 }
 0x498   :  { %5947 = vst [vmem:[#allocation54_spill] sm:$0xff] %v5380_v16  ;;  %2595 = vmatpush.msrb.mxu3 %v5375_v31  ;;  %2925 = vmatpush.msrb.mxu2 %v5230_v32  ;;  %v2391_v32 = vand.u32 2147483648, %v5360_v44 }
 0x499   :  { %2615 = vmatpush.msrb.mxu0 %v5378_v20  ;;  %2635 = vmatpush.msrb.mxu1 %v5380_v16  ;;  %v2389_v16 = vand.u32 2147483647, %v5360_v44 }
 0x49a   :  { %v3255_v21 = vpop.eup %3254  ;;  %2596 = vmatpush.msrb.mxu3 %v5385_v18  ;;  %2926 = vmatpush.msrb.mxu2 %v5240_v5 }
 0x49b   :  { %v5393_v63 = vadd.f32 1.0, %v3255_v21  ;;  %2616 = vmatpush.msrb.mxu0 %v5388_v36  ;;  %2636 = vmatpush.msrb.mxu1 %v5390_v35  ;;  %vm2390_vm11 = vcmp.eq.f32.partialorder %v2389_v16, 8.507059e+37  ;;  %v5974_v16 = vld [vmem:[#allocation25_spill] sm:$0xff] }
 0x49c   :  { %2597 = vmatpush.msrb.mxu3 %v5397_v49  ;;  %2927 = vmatpush.msrb.mxu2 %v5252_v55  ;;  %v5964_v55 = vld [vmem:[#allocation38_spill] sm:$0xff] }
 0x49d   :  { %v3257_v31 = vpop.eup %3256  ;;  %3258 = vrcp.f32 %v5393_v63  ;;  %2617 = vmatpush.msrb.mxu0 %v5400_v62  ;;  %2637 = vmatpush.msrb.mxu1 %v5402_v41  ;;  %vm2405_vm13 = vweird.f32 %v5393_v63 }
 0x49e   :  { %v2381_v27 = vmul.f32 %v3257_v31, %v5360_v44  ;;  %2816 = vmatpush.msra.mxu3 %v5058_v3  ;;  %vm2386_vm8 = vweird.f32 %v3257_v31  ;;  %2928 = vmatpush.msrb.mxu2 %v5263_v0  ;;  %v5967_v0 = vld [vmem:[#allocation51_spill] sm:$0xff] }
 0x49f   :  { %2836 = vmatpush.msra.mxu0 %v5060_v61  ;;  %2904 = vmatpush.msra.mxu1 %v5212_v1  ;;  %vm2387_vm10 = vmor %vm2385_vm9, %vm2386_vm8 }
 0x4a0   :  { %v2382_v21 = vsub.f32 1.0, %v2381_v27  ;;  %2817 = vmatpush.msra.mxu3 %v5067_v4  ;;  %v2317_v27 = vpop.f32.mrf.mxu3  ;;  %v2392_v4 = vor.u32 1.1754944e-38, %v2391_v32  ;;  %2929 = vmatpush.msrb.mxu2 %v5276_v53 }
 0x4a1   :  { %2837 = vmatpush.msra.mxu0 %v5069_v54  ;;  %2905 = vmatpush.msra.mxu1 %v5228_v15  ;;  %v5435_v15 = vld [vmem:[%s5569_s4 + $0x1] ss:$0 sm:$0xff] }
 0x4a2   :  { %v2383_v35 = vmul.f32 %v3257_v31, %v2382_v21  ;;  %2818 = vmatpush.msra.mxu3 %v5076_v48  ;;  %2930 = vmatpush.msrb.mxu2 %v5294_v45  ;;  %v5969_v45 = vld [vmem:[#allocation52_spill] sm:$0xff] }
 0x4a3   :  { %v5421_v5 = vpop.eup %3258  ;;  %2838 = vmatpush.msra.mxu0 %v5078_v25  ;;  %2906 = vmatpush.msra.mxu1 %v5238_v42  ;;  %v5949_v42 = vld [vmem:[#allocation43_spill] sm:$0xff] }
 0x4a4   :  { %v2401_v3 = vmul.f32 %v5421_v5, %v5393_v63  ;;  %v2384_v61 = vadd.f32 %v3257_v31, %v2383_v35  ;;  %v2415_v35 = vadd.f32 %v5435_v15, %v2317_v27  ;;  %2819 = vmatpush.msra.mxu3 %v5085_v51  ;;  %2931 = vmatpush.msrb.mxu2 %v5307_v7  ;;  %vm2406_vm12 = vweird.f32 %v5421_v5  ;;  %v5961_v7 = vld [vmem:[#allocation15_spill] sm:$0xff] }
 0x4a5   :  { %2839 = vmatpush.msra.mxu0 %v5087_v34  ;;  %2907 = vmatpush.msra.mxu1 %v5250_v17  ;;  %vm2407_vm14 = vmor %vm2405_vm13, %vm2406_vm12  ;;  %v5963_v17 = vld [vmem:[#allocation37_spill] sm:$0xff] }
 0x4a6   :  { %v2402_v54 = vsub.f32 1.0, %v2401_v3  ;;  %v2388_v1 = vsel %vm2387_vm10, %v3257_v31, %v2384_v61  ;;  %2820 = vmatpush.msra.mxu3 %v5094_v22  ;;  %2932 = vmatpush.msrb.mxu2 %v5318_v8  ;;  %v2411_v22 = vand.u32 2147483648, %v5393_v63  ;;  %v5971_v8 = vld [vmem:[#allocation54_spill] sm:$0xff] }
 0x4a7   :  { %v2393_v48 = vsel %vm2390_vm11, %v2392_v4, %v2388_v1  ;;  %2840 = vmatpush.msra.mxu0 %v5096_v58  ;;  %2908 = vmatpush.msra.mxu1 %v5261_v11  ;;  %v2409_v58 = vand.u32 2147483647, %v5393_v63  ;;  %v5966_v11 = vld [vmem:[#allocation50_spill] sm:$0xff] }
 0x4a8   :  { %v2416_v25 = vmul.f32 %v2415_v35, %v2393_v48  ;;  %v2403_v53 = vmul.f32 %v5421_v5, %v2402_v54  ;;  %2821 = vmatpush.msra.mxu3 %v5103_v14  ;;  %2933 = vmatpush.msrb.mxu2 %v5329_v37  ;;  %v5975_v48 = vld [vmem:[#allocation34_spill] sm:$0xff] }
 0x4a9   :  { %2841 = vmatpush.msra.mxu0 %v5105_v33  ;;  %2909 = vmatpush.msra.mxu1 %v5274_v13  ;;  %vm2410_vm15 = vcmp.eq.f32.partialorder %v2409_v58, 8.507059e+37  ;;  %v5968_v13 = vld [vmem:[#allocation69_spill] sm:$0xff] }
 0x4aa   :  { %v2417_v51 = vadd.f32 %v2416_v25, %v5949_v42  ;;  %2822 = vmatpush.msra.mxu3 %v5111_v2  ;;  %v2404_v34 = vadd.f32 %v5421_v5, %v2403_v53  ;;  %2934 = vmatpush.msrb.mxu2 %v5341_v50  ;;  %v2412_v2 = vor.u32 1.1754944e-38, %v2411_v22 }
 0x4ab   :  { %2842 = vmatpush.msra.mxu0 %v5113_v6  ;;  %2910 = vmatpush.msra.mxu1 %v5292_v24  ;;  %v5962_v24 = vld [vmem:[#allocation18_spill] sm:$0xff] }
 0x4ac   :  { %3260 = vtanh.f32 %v2417_v51  ;;  %2823 = vmatpush.msra.mxu3 %v5118_v26  ;;  %v2408_v14 = vsel %vm2407_vm14, %v5421_v5, %v2404_v34  ;;  %2935 = vmatpush.msrb.mxu2 %v5356_v19  ;;  %v5976_v34 = vld [vmem:[#allocation30_spill] sm:$0xff] }
 0x4ad   :  { %2843 = vmatpush.msra.mxu0 %v5124_v12  ;;  %2911 = vmatpush.msra.mxu1 %v5305_v57  ;;  %v2413_v26 = vsel %vm2410_vm15, %v2412_v2, %v2408_v14  ;;  %v5965_v57 = vld [vmem:[#allocation49_spill] sm:$0xff] }
 0x4ae   :  { %2824 = vmatpush.msra.mxu3 %v5129_v47  ;;  %2936 = vmatpush.msrb.mxu2 %v5367_v39 }
 0x4af   :  { %2844 = vmatpush.msra.mxu0 %v5133_v29  ;;  %2912 = vmatpush.msra.mxu1 %v5316_v9  ;;  %v5951_v29 = vld [vmem:[#allocation14_spill] sm:$0xff]  ;;  %v5970_v9 = vld [vmem:[#allocation53_spill] sm:$0xff] }
 0x4b0   :  { %2825 = vmatpush.msra.mxu3 %v5138_v56  ;;  %2937 = vmatpush.msrb.mxu2 %v5378_v20  ;;  %v5952_v56 = vld [vmem:[#allocation72_spill] sm:$0xff]  ;;  %v5960_v20 = vld [vmem:[#allocation21_spill] sm:$0xff] }
 0x4b1   :  { %2845 = vmatpush.msra.mxu0 %v5142_v10  ;;  %2913 = vmatpush.msra.mxu1 %v5327_v28  ;;  %v5953_v10 = vld [vmem:[#allocation10_spill] sm:$0xff]  ;;  %v5972_v28 = vld [vmem:[#allocation55_spill] sm:$0xff] }
 0x4b2   :  { %v3261_v33 = vpop.eup %3260  ;;  %2826 = vmatpush.msra.mxu3 %v5147_v30  ;;  %2938 = vmatpush.msrb.mxu2 %v5388_v36  ;;  %v5954_v30 = vld [vmem:[#allocation20_spill] sm:$0xff] }
 0x4b3   :  { %v2419_v6 = vsub.f32 %v5047_v40, %v3261_v33  ;;  %2846 = vmatpush.msra.mxu0 %v5151_v23  ;;  %2914 = vmatpush.msra.mxu1 %v5339_v46  ;;  %v5950_v40 = vld [vmem:[#allocation11_spill] sm:$0xff]  ;;  %v5973_v46 = vld [vmem:[#allocation32_spill] sm:$0xff] }
 0x4b4   :  { %2827 = vmatpush.msra.mxu3 %v5159_v52  ;;  %2939 = vmatpush.msrb.mxu2 %v5400_v62  ;;  %v5955_v23 = vld [vmem:[#allocation71_spill] sm:$0xff]  ;;  %v5956_v52 = vld [vmem:[#allocation36_spill] sm:$0xff] }
 0x4b5   :  { %v2420_v12 = vmul.f32 %v2419_v6, %v2413_v26  ;;  %2847 = vmatpush.msra.mxu0 %v5161_v38  ;;  %2915 = vmatpush.msra.mxu1 %v5352_v43  ;;  %v5957_v38 = vld [vmem:[#allocation66_spill] sm:$0xff]  ;;  %v5977_v6 = vld [vmem:[#allocation44_spill] sm:$0xff] }
 0x4b6   :  { %2828 = vmatpush.msra.mxu3 %v5168_v59  ;;  %v5958_v59 = vld [vmem:[#allocation13_spill] sm:$0xff] }
 0x4b7   :  { %v5481_v47 = vadd.f32 %v3261_v33, %v2420_v12  ;;  %2848 = vmatpush.msra.mxu0 %v5170_v60  ;;  %2916 = vmatpush.msra.mxu1 %v5952_v56  ;;  %v5959_v60 = vld [vmem:[#allocation16_spill] sm:$0xff] }
 0x4b8   :  { %2829 = vmatpush.msra.mxu3 %v5950_v40  ;;  %v5978_v56 = vld [vmem:[#allocation68_spill] sm:$0xff] }
 0x4b9   :  { %3122 = vst [vmem:[%s5570_s5 + $0x68] sm:$0xff] %v5481_v47  ;;  %2598 = vmatmul.f32.vlgmr.msrb.gmra.mxu3 %v5481_v47  ;;  %2618 = vmatmul.f32.vlgmr.msrb.gmra.mxu0 %v5481_v47 }
 0x4ba   :  { %2638 = vmatmul.f32.vlgmr.msrb.gmra.mxu1 %v5481_v47  ;;  %2849 = vmatpush.msra.mxu0 %v5951_v29 }
 0x4bb   :  { %2830 = vmatpush.msra.mxu3 %v5953_v10  ;;  %2917 = vmatpush.msra.mxu1 %v5955_v23 }
 0x4bc   :  { %2850 = vmatpush.msra.mxu0 %v5954_v30 }
 0x4bd   :  { %2831 = vmatpush.msra.mxu3 %v5956_v52  ;;  %2918 = vmatpush.msra.mxu1 %v5385_v18 }
 0x4be   :  { %2851 = vmatpush.msra.mxu0 %v5957_v38 }
 0x4bf   :  { %2944 = vmatpush.msrb.mxu3 %v5958_v59  ;;  %2919 = vmatpush.msra.mxu1 %v5397_v49  ;;  %v5979_v59 = vld [vmem:[#allocation35_spill] sm:$0xff] }
 0x4c1   :  { %2945 = vmatpush.msrb.mxu3 %v5959_v60 }
 0x4c3   :  { %2946 = vmatpush.msrb.mxu3 %v5960_v20 }
 0x4c5   :  { %2947 = vmatpush.msrb.mxu3 %v5961_v7 }
 0x4c7   :  { %2948 = vmatpush.msrb.mxu3 %v5962_v24 }
 0x4c9   :  { %2949 = vmatpush.msrb.mxu3 %v5963_v17 }
 0x4cb   :  { %2950 = vmatpush.msrb.mxu3 %v5964_v55 }
 0x4cd   :  { %2951 = vmatpush.msrb.mxu3 %v5965_v57 }
 0x4cf   :  { %2952 = vmatpush.msrb.mxu3 %v5966_v11 }
 0x4d1   :  { %2953 = vmatpush.msrb.mxu3 %v5967_v0 }
 0x4d3   :  { %2954 = vmatpush.msrb.mxu3 %v5968_v13 }
 0x4d5   :  { %2955 = vmatpush.msrb.mxu3 %v5969_v45 }
 0x4d7   :  { %2956 = vmatpush.msrb.mxu3 %v5970_v9 }
 0x4d9   :  { %2957 = vmatpush.msrb.mxu3 %v5971_v8 }
 0x4db   :  { %2958 = vmatpush.msrb.mxu3 %v5972_v28 }
 0x4dd   :  { %2959 = vmatpush.msrb.mxu3 %v5402_v41 }
 0x510   :  { %v2491_v37 = vpop.f32.mrf.mxu0  ;;  %v2511_v39 = vpop.f32.mrf.mxu1 }
 0x511   :  { %v2646_v50 = vadd.f32 %v2491_v37, %v5973_v46  ;;  %v2666_v43 = vadd.f32 %v2511_v39, %v5974_v16 }
 0x513   :  { %v3123_v19 = vmul.f32 -1.442695, %v2646_v50  ;;  %v3124_v36 = vmul.f32 -1.442695, %v2666_v43 }
 0x515   :  { %3262 = vpow2.f32 %v3123_v19 }
 0x516   :  { %3264 = vpow2.f32 %v3124_v36 }
 0x517   :  { %v2531_v61 = vpop.f32.mrf.mxu2 }
 0x518   :  { %v2686_v25 = vadd.f32 %v5975_v48, %v2531_v61 }
 0x51b   :  { %v3263_v44 = vpop.eup %3262 }
 0x51c   :  { %v3265_v63 = vpop.eup %3264  ;;  %v2650_v62 = vadd.f32 1.0, %v3263_v44 }
 0x51d   :  { %v2670_v31 = vadd.f32 1.0, %v3265_v63 }
 0x51e   :  { %3266 = vrcp.f32 %v2650_v62  ;;  %v2662_v5 = vand.u32 2147483648, %v2650_v62  ;;  %v2660_v3 = vand.u32 2147483647, %v2650_v62  ;;  %vm2656_vm1 = vweird.f32 %v2650_v62 }
 0x51f   :  { %3268 = vrcp.f32 %v2670_v31  ;;  %v2682_v14 = vand.u32 2147483648, %v2670_v31  ;;  %vm2676_vm5 = vweird.f32 %v2670_v31  ;;  %v2680_v33 = vand.u32 2147483647, %v2670_v31 }
 0x520   :  { %v2663_v1 = vor.u32 1.1754944e-38, %v2662_v5  ;;  %vm2661_vm3 = vcmp.eq.f32.partialorder %v2660_v3, 8.507059e+37 }
 0x521   :  { %v2683_v29 = vor.u32 1.1754944e-38, %v2682_v14  ;;  %vm2681_vm7 = vcmp.eq.f32.partialorder %v2680_v33, 8.507059e+37 }
 0x524   :  { %v3267_v18 = vpop.eup %3266 }
 0x525   :  { %v3269_v49 = vpop.eup %3268  ;;  %v2652_v21 = vmul.f32 %v3267_v18, %v2650_v62  ;;  %vm2657_vm0 = vweird.f32 %v3267_v18  ;;  %v5980_v62 = vld [vmem:[#allocation45_spill] sm:$0xff] }
 0x526   :  { %v2672_v32 = vmul.f32 %v3269_v49, %v2670_v31  ;;  %vm2658_vm2 = vmor %vm2656_vm1, %vm2657_vm0  ;;  %vm2677_vm4 = vweird.f32 %v3269_v49 }
 0x527   :  { %v2653_v41 = vsub.f32 1.0, %v2652_v21  ;;  %vm2678_vm6 = vmor %vm2676_vm5, %vm2677_vm4 }
 0x528   :  { %v2673_v54 = vsub.f32 1.0, %v2672_v32 }
 0x529   :  { %v2654_v27 = vmul.f32 %v3267_v18, %v2653_v41 }
 0x52a   :  { %v2674_v51 = vmul.f32 %v3269_v49, %v2673_v54 }
 0x52b   :  { %v2655_v4 = vadd.f32 %v3267_v18, %v2654_v27 }
 0x52c   :  { %v2675_v58 = vadd.f32 %v3269_v49, %v2674_v51 }
 0x52d   :  { %v2659_v35 = vsel %vm2658_vm2, %v3267_v18, %v2655_v4 }
 0x52e   :  { %v2664_v53 = vsel %vm2661_vm3, %v2663_v1, %v2659_v35  ;;  %v2679_v12 = vsel %vm2678_vm6, %v3269_v49, %v2675_v58  ;;  %v5981_v35 = vld [vmem:[#allocation28_spill] sm:$0xff] }
 0x52f   :  { %v2687_v42 = vmul.f32 %v2686_v25, %v2664_v53  ;;  %v2684_v23 = vsel %vm2681_vm7, %v2683_v29, %v2679_v12 }
 0x531   :  { %v2688_v22 = vadd.f32 %v2687_v42, %v5976_v34 }
 0x533   :  { %3270 = vtanh.f32 %v2688_v22 }
 0x536   :  { %v2619_v2 = vpop.f32.mrf.mxu0 }
 0x537   :  { %v2717_v26 = vadd.f32 %v2619_v2, %v5977_v6  ;;  %v2639_v39 = vpop.f32.mrf.mxu1 }
 0x538   :  { %v2737_v43 = vadd.f32 %v5435_v15, %v2639_v39 }
 0x539   :  { %v3271_v40 = vpop.eup %3270  ;;  %v3126_v30 = vmul.f32 -1.442695, %v2717_v26 }
 0x53a   :  { %v2690_v10 = vsub.f32 %v5978_v56, %v3271_v40 }
 0x53b   :  { %3272 = vpow2.f32 %v3126_v30 }
 0x53c   :  { %v2599_v52 = vpop.f32.mrf.mxu3  ;;  %v2691_v38 = vmul.f32 %v2690_v10, %v2684_v23 }
 0x53d   :  { %v2697_v60 = vadd.f32 %v2599_v52, %v5979_v59 }
 0x53e   :  { %v5528_v20 = vadd.f32 %v3271_v40, %v2691_v38 }
 0x53f   :  { %v3125_v7 = vmul.f32 -1.442695, %v2697_v60 }
 0x540   :  { %3127 = vst [vmem:[%s5570_s5 + $0x30] sm:$0xff] %v5528_v20  ;;  %2812 = vmatmul.f32.vlgmr.msra.gmra.mxu2 %v5528_v20  ;;  %2832 = vmatmul.f32.vlgmr.msra.gmra.mxu3 %v5528_v20 }
 0x541   :  { %3274 = vpow2.f32 %v3125_v7  ;;  %2852 = vmatmul.f32.vlgmr.msra.gmra.mxu0 %v5528_v20  ;;  %v3273_v24 = vpop.eup %3272 }
 0x542   :  { %v2721_v55 = vadd.f32 1.0, %v3273_v24 }
 0x544   :  { %v2733_v49 = vand.u32 2147483648, %v2721_v55  ;;  %vm2727_vm13 = vweird.f32 %v2721_v55  ;;  %v2731_v21 = vand.u32 2147483647, %v2721_v55 }
 0x546   :  { %v2734_v5 = vor.u32 1.1754944e-38, %v2733_v49  ;;  %vm2732_vm15 = vcmp.eq.f32.partialorder %v2731_v21, 8.507059e+37 }
 0x547   :  { %v3275_v17 = vpop.eup %3274 }
 0x548   :  { %v2701_v57 = vadd.f32 1.0, %v3275_v17  ;;  %v5983_v17 = vld [vmem:[#allocation39_spill] sm:$0xff] }
 0x54a   :  { %3276 = vrcp.f32 %v2701_v57  ;;  %v2713_v8 = vand.u32 2147483648, %v2701_v57  ;;  %v2711_v37 = vand.u32 2147483647, %v2701_v57  ;;  %vm2707_vm9 = vweird.f32 %v2701_v57 }
 0x54b   :  { %3278 = vrcp.f32 %v2721_v55 }
 0x54c   :  { %v2714_v16 = vor.u32 1.1754944e-38, %v2713_v8  ;;  %vm2712_vm11 = vcmp.eq.f32.partialorder %v2711_v37, 8.507059e+37 }
 0x550   :  { %v3277_v11 = vpop.eup %3276 }
 0x551   :  { %v3279_v0 = vpop.eup %3278  ;;  %v2703_v13 = vmul.f32 %v3277_v11, %v2701_v57  ;;  %vm2708_vm8 = vweird.f32 %v3277_v11 }
 0x552   :  { %v2723_v9 = vmul.f32 %v3279_v0, %v2721_v55  ;;  %vm2709_vm10 = vmor %vm2707_vm9, %vm2708_vm8  ;;  %vm2728_vm12 = vweird.f32 %v3279_v0 }
 0x553   :  { %v2704_v45 = vsub.f32 1.0, %v2703_v13  ;;  %vm2729_vm14 = vmor %vm2727_vm13, %vm2728_vm12 }
 0x554   :  { %v2724_v50 = vsub.f32 1.0, %v2723_v9 }
 0x555   :  { %v2705_v28 = vmul.f32 %v3277_v11, %v2704_v45  ;;  %v5984_v45 = vld [vmem:[#allocation31_spill] sm:$0xff] }
 0x556   :  { %v2725_v63 = vmul.f32 %v3279_v0, %v2724_v50 }
 0x557   :  { %v2706_v46 = vadd.f32 %v3277_v11, %v2705_v28 }
 0x558   :  { %v2726_v18 = vadd.f32 %v3279_v0, %v2725_v63 }
 0x559   :  { %v2710_v19 = vsel %vm2709_vm10, %v3277_v11, %v2706_v46 }
 0x55a   :  { %v2715_v36 = vsel %vm2712_vm11, %v2714_v16, %v2710_v19  ;;  %v2730_v41 = vsel %vm2729_vm14, %v3279_v0, %v2726_v18 }
 0x55b   :  { %v2738_v44 = vmul.f32 %v2737_v43, %v2715_v36  ;;  %v2735_v3 = vsel %vm2732_vm15, %v2734_v5, %v2730_v41  ;;  %v5985_v43 = vld [vmem:[#allocation46_spill] sm:$0xff] }
 0x55d   :  { %v2739_v31 = vadd.f32 %v2738_v44, %v5980_v62 }
 0x55f   :  { %3280 = vtanh.f32 %v2739_v31 }
 0x565   :  { %v3281_v32 = vpop.eup %3280 }
 0x566   :  { %v2741_v27 = vsub.f32 %v5481_v47, %v3281_v32  ;;  %v5982_v47 = vld [vmem:[#allocation33_spill] sm:$0xff] }
 0x568   :  { %v2742_v61 = vmul.f32 %v2741_v27, %v2735_v3 }
 0x56a   :  { %v5540_v4 = vadd.f32 %v3281_v32, %v2742_v61 }
 0x56c   :  { %3128 = vst [vmem:[%s5570_s5 + $0x70] sm:$0xff] %v5540_v4  ;;  %2920 = vmatmul.f32.vlgmr.msra.gmra.mxu1 %v5540_v4  ;;  %2940 = vmatmul.f32.vlgmr.msrb.gmra.mxu2 %v5540_v4 }
 0x56d   :  { %2960 = vmatmul.f32.vlgmr.msrb.gmra.mxu3 %v5540_v4 }
 0x5be   :  { %v2853_v10 = vpop.f32.mrf.mxu0 }
 0x5bf   :  { %v3008_v38 = vadd.f32 %v5975_v48, %v2853_v10 }
 0x5c3   :  { %v2813_v54 = vpop.f32.mrf.mxu2  ;;  %v2833_v1 = vpop.f32.mrf.mxu3 }
 0x5c4   :  { %v2968_v25 = vadd.f32 %v2813_v54, %v5981_v35  ;;  %v2988_v53 = vadd.f32 %v2833_v1, %v5982_v47 }
 0x5c6   :  { %v3129_v42 = vmul.f32 -1.442695, %v2968_v25  ;;  %v3130_v51 = vmul.f32 -1.442695, %v2988_v53 }
 0x5c8   :  { %3282 = vpow2.f32 %v3129_v42 }
 0x5c9   :  { %3284 = vpow2.f32 %v3130_v51 }
 0x5ce   :  { %v3283_v34 = vpop.eup %3282 }
 0x5cf   :  { %v3285_v22 = vpop.eup %3284  ;;  %v2972_v58 = vadd.f32 1.0, %v3283_v34  ;;  %v5986_v34 = vld [vmem:[#allocation47_spill] sm:$0xff] }
 0x5d0   :  { %v2992_v14 = vadd.f32 1.0, %v3285_v22 }
 0x5d1   :  { %3286 = vrcp.f32 %v2972_v58  ;;  %v2984_v12 = vand.u32 2147483648, %v2972_v58  ;;  %v2982_v56 = vand.u32 2147483647, %v2972_v58  ;;  %vm2978_vm1 = vweird.f32 %v2972_v58 }
 0x5d2   :  { %3288 = vrcp.f32 %v2992_v14  ;;  %v3004_v11 = vand.u32 2147483648, %v2992_v14  ;;  %vm2998_vm5 = vweird.f32 %v2992_v14  ;;  %v3002_v0 = vand.u32 2147483647, %v2992_v14 }
 0x5d3   :  { %v2985_v23 = vor.u32 1.1754944e-38, %v2984_v12  ;;  %vm2983_vm3 = vcmp.eq.f32.partialorder %v2982_v56, 8.507059e+37 }
 0x5d4   :  { %v3005_v48 = vor.u32 1.1754944e-38, %v3004_v11  ;;  %vm3003_vm7 = vcmp.eq.f32.partialorder %v3002_v0, 8.507059e+37 }
 0x5d7   :  { %v3287_v33 = vpop.eup %3286 }
 0x5d8   :  { %v3289_v2 = vpop.eup %3288  ;;  %v2974_v6 = vmul.f32 %v3287_v33, %v2972_v58  ;;  %vm2979_vm0 = vweird.f32 %v3287_v33 }
 0x5d9   :  { %v2994_v40 = vmul.f32 %v3289_v2, %v2992_v14  ;;  %vm2980_vm2 = vmor %vm2978_vm1, %vm2979_vm0  ;;  %vm2999_vm4 = vweird.f32 %v3289_v2 }
 0x5da   :  { %v2975_v26 = vsub.f32 1.0, %v2974_v6  ;;  %vm3000_vm6 = vmor %vm2998_vm5, %vm2999_vm4 }
 0x5db   :  { %v2995_v52 = vsub.f32 1.0, %v2994_v40 }
 0x5dc   :  { %v2976_v29 = vmul.f32 %v3287_v33, %v2975_v26 }
 0x5dd   :  { %v2996_v24 = vmul.f32 %v3289_v2, %v2995_v52 }
 0x5de   :  { %v2977_v30 = vadd.f32 %v3287_v33, %v2976_v29 }
 0x5df   :  { %v2997_v57 = vadd.f32 %v3289_v2, %v2996_v24 }
 0x5e0   :  { %v2981_v59 = vsel %vm2980_vm2, %v3287_v33, %v2977_v30 }
 0x5e1   :  { %v2986_v60 = vsel %vm2983_vm3, %v2985_v23, %v2981_v59  ;;  %v3001_v8 = vsel %vm3000_vm6, %v3289_v2, %v2997_v57 }
 0x5e2   :  { %v3009_v7 = vmul.f32 %v3008_v38, %v2986_v60  ;;  %v3006_v46 = vsel %vm3003_vm7, %v3005_v48, %v3001_v8 }
 0x5e4   :  { %v3010_v55 = vadd.f32 %v3009_v7, %v5983_v17 }
 0x5e6   :  { %3290 = vtanh.f32 %v3010_v55 }
 0x5e9   :  { %v2921_v13 = vpop.f32.mrf.mxu1 }
 0x5ea   :  { %v3019_v9 = vadd.f32 %v2921_v13, %v5984_v45 }
 0x5ec   :  { %v3291_v28 = vpop.eup %3290  ;;  %v3131_v37 = vmul.f32 -1.442695, %v3019_v9 }
 0x5ed   :  { %v3012_v39 = vsub.f32 %v5528_v20, %v3291_v28 }
 0x5ee   :  { %3292 = vpow2.f32 %v3131_v37 }
 0x5ef   :  { %v3013_v50 = vmul.f32 %v3012_v39, %v3006_v46  ;;  %v2941_v16 = vpop.f32.mrf.mxu2 }
 0x5f0   :  { %v3039_v19 = vadd.f32 %v2941_v16, %v5985_v43  ;;  %v2961_v3 = vpop.f32.mrf.mxu3 }
 0x5f1   :  { %v3014_v36 = vadd.f32 %v3291_v28, %v3013_v50  ;;  %v3059_v47 = vadd.f32 %v5435_v15, %v2961_v3 }
 0x5f2   :  { %v3132_v44 = vmul.f32 -1.442695, %v3039_v19 }
 0x5f3   :  { %3133 = vst [vmem:[%s5570_s5 + $0x38] sm:$0xff] %v3014_v36 }
 0x5f4   :  { %v3293_v63 = vpop.eup %3292  ;;  %3294 = vpow2.f32 %v3132_v44 }
 0x5f5   :  { %v3023_v62 = vadd.f32 1.0, %v3293_v63 }
 0x5f7   :  { %3296 = vrcp.f32 %v3023_v62  ;;  %v3035_v41 = vand.u32 2147483648, %v3023_v62  ;;  %v3033_v5 = vand.u32 2147483647, %v3023_v62  ;;  %vm3029_vm9 = vweird.f32 %v3023_v62 }
 0x5f9   :  { %v3036_v1 = vor.u32 1.1754944e-38, %v3035_v41  ;;  %vm3034_vm11 = vcmp.eq.f32.partialorder %v3033_v5, 8.507059e+37 }
 0x5fa   :  { %v3295_v31 = vpop.eup %3294 }
 0x5fb   :  { %v3043_v18 = vadd.f32 1.0, %v3295_v31 }
 0x5fd   :  { %v3297_v49 = vpop.eup %3296  ;;  %3298 = vrcp.f32 %v3043_v18  ;;  %v3055_v14 = vand.u32 2147483648, %v3043_v18  ;;  %vm3049_vm13 = vweird.f32 %v3043_v18  ;;  %v3053_v33 = vand.u32 2147483647, %v3043_v18 }
 0x5fe   :  { %v3025_v20 = vmul.f32 %v3297_v49, %v3023_v62  ;;  %vm3030_vm8 = vweird.f32 %v3297_v49 }
 0x5ff   :  { %vm3031_vm10 = vmor %vm3029_vm9, %vm3030_vm8  ;;  %v3056_v26 = vor.u32 1.1754944e-38, %v3055_v14  ;;  %vm3054_vm15 = vcmp.eq.f32.partialorder %v3053_v33, 8.507059e+37 }
 0x600   :  { %v3026_v21 = vsub.f32 1.0, %v3025_v20 }
 0x602   :  { %v3027_v32 = vmul.f32 %v3297_v49, %v3026_v21 }
 0x603   :  { %v3299_v27 = vpop.eup %3298 }
 0x604   :  { %v3045_v61 = vmul.f32 %v3299_v27, %v3043_v18  ;;  %v3028_v54 = vadd.f32 %v3297_v49, %v3027_v32  ;;  %vm3050_vm12 = vweird.f32 %v3299_v27 }
 0x605   :  { %vm3051_vm14 = vmor %vm3049_vm13, %vm3050_vm12 }
 0x606   :  { %v3046_v35 = vsub.f32 1.0, %v3045_v61  ;;  %v3032_v25 = vsel %vm3031_vm10, %v3297_v49, %v3028_v54 }
 0x607   :  { %v3037_v53 = vsel %vm3034_vm11, %v3036_v1, %v3032_v25 }
 0x608   :  { %v3060_v42 = vmul.f32 %v3059_v47, %v3037_v53  ;;  %v3047_v51 = vmul.f32 %v3299_v27, %v3046_v35 }
 0x60a   :  { %v3061_v22 = vadd.f32 %v3060_v42, %v5986_v34  ;;  %v3048_v58 = vadd.f32 %v3299_v27, %v3047_v51 }
 0x60c   :  { %3300 = vtanh.f32 %v3061_v22  ;;  %v3052_v2 = vsel %vm3051_vm14, %v3299_v27, %v3048_v58 }
 0x60d   :  { %v3057_v40 = vsel %vm3054_vm15, %v3056_v26, %v3052_v2 }
 0x612   :  { %v3301_v6 = vpop.eup %3300 }
 0x613   :  { %v3063_v12 = vsub.f32 %v5540_v4, %v3301_v6 }
 0x615   :  { %v3064_v15 = vmul.f32 %v3063_v12, %v3057_v40 }
 0x617   :  { %v3065_v29 = vadd.f32 %v3301_v6, %v3064_v15 }
 0x619   :  { %3134 = vst [vmem:[%s5570_s5 + $0x78] sm:$0xff] %v3065_v29 }
 0x61a   :  { %3076 = vsyncpa [#allocation5], 1 }
 0x61b   :  { %3077 = vsyncpa [#allocation7], 1 }

</bundles_post_ra>
